<compile_context>
chip_gen: v5e
topology: v5e:2x2
jax: 0.10.0
libtpu: 0.0.40
codegen_flags: <defaults>
</compile_context>

<pallas_src>
import math
from functools import partial

import jax
import jax.numpy as jnp
from jax import lax
from jax.experimental import pallas as pl
from jax.experimental.pallas import tpu as pltpu

DEFAULT_MASK_VALUE = -0.7 * float(jnp.finfo(jnp.float32).max)


def _flash_attn_kernel(*refs, scale, causal, mask_mode, n_rep,
                       block_q, block_kv, q_len, kv_len):
    if mask_mode == "none":
        q_ref, k_ref, v_ref, o_ref, m_sc, l_sc, acc_sc = refs
        mask_ref = None
    else:
        q_ref, k_ref, v_ref, mask_ref, o_ref, m_sc, l_sc, acc_sc = refs

    qi = pl.program_id(2)
    ki = pl.program_id(3)
    head_dim = q_ref.shape[-1]

    @pl.when(ki == 0)
    def _init():
        m_sc[...] = jnp.full(m_sc.shape, -jnp.inf, dtype=m_sc.dtype)
        l_sc[...] = jnp.zeros(l_sc.shape, dtype=l_sc.dtype)
        acc_sc[...] = jnp.zeros(acc_sc.shape, dtype=acc_sc.dtype)

    def _compute():
        # Fold 1/sqrt(D) into Q (touches tq*D elements instead of tq*tkv scores).
        q = q_ref[...] * jnp.asarray(scale, dtype=q_ref.dtype)      # (n_rep, tq, D)
        q2 = q.reshape(n_rep * block_q, head_dim)                   # merge major dims (free)
        k = k_ref[...]                                              # (tkv, D)

        # QK^T in input dtype, fp32 accumulate; contraction on minor dims (no K transpose).
        s = lax.dot_general(q2, k, (((1,), (1,)), ((), ())),
                            preferred_element_type=jnp.float32)
        s = s.reshape(n_rep, block_q, block_kv)                     # (n_rep, tq, tkv) fp32

        if causal:
            offset = kv_len - q_len
            row = qi * block_q + lax.broadcasted_iota(jnp.int32, (block_q, block_kv), 0)
            col = ki * block_kv + lax.broadcasted_iota(jnp.int32, (block_q, block_kv), 1)
            s = jnp.where((col <= row + offset)[None, :, :], s, DEFAULT_MASK_VALUE)
        if mask_ref is not None:
            m_tile = mask_ref[...].astype(jnp.float32)
            if m_tile.ndim == 2:                                    # (tq, tkv): broadcast over heads
                m_tile = m_tile[None, :, :]
            s = s + m_tile

        # Online softmax (fp32), matching softmax(dtype=float32) semantics.
        m_prev = m_sc[...]
        m_cur = jnp.max(s, axis=-1, keepdims=True)
        m_new = jnp.maximum(m_prev, m_cur)
        alpha = jnp.exp(m_prev - m_new)
        p = jnp.exp(s - m_new)
        l_sc[...] = alpha * l_sc[...] + jnp.sum(p, axis=-1, keepdims=True)

        # P @ V: probabilities cast back to value dtype (torch `.to(query.dtype)`),
        # fp32 accumulation.
        p2 = p.reshape(n_rep * block_q, block_kv).astype(v_ref.dtype)
        pv = lax.dot_general(p2, v_ref[...], (((1,), (0,)), ((), ())),
                             preferred_element_type=jnp.float32)
        acc_sc[...] = alpha * acc_sc[...] + pv.reshape(n_rep, block_q, head_dim)
        m_sc[...] = m_new

    if causal:
        # Skip KV blocks that lie entirely above the diagonal (fully masked).
        pl.when(ki * block_kv <= qi * block_q + (block_q - 1) + (kv_len - q_len))(_compute)
    else:
        _compute()

    @pl.when(ki == pl.num_programs(3) - 1)
    def _finalize():
        l = l_sc[...]
        inv = jnp.where(l == 0.0, 0.0, pl.reciprocal(l, approx=True))
        o_ref[...] = (acc_sc[...] * inv).astype(o_ref.dtype)


def attention_forward(query_states, key_states, value_states, attention_mask=None,
                      *, causal=False, block_q=256, block_kv=512):
    """Eager GQA attention: softmax((QK^T)/sqrt(d) + mask) @ V, flash-tiled."""
    B, Hq, Sq, D = query_states.shape
    _, Hkv, Skv, _ = key_states.shape
    assert Hq % Hkv == 0
    n_rep = Hq // Hkv
    scale = 1.0 / math.sqrt(D)

    block_q = min(block_q, Sq)
    block_kv = min(block_kv, Skv)
    assert Sq % block_q == 0 and Skv % block_kv == 0
    assert block_q == Sq or block_q % 8 == 0
    assert block_kv == Skv or block_kv % 128 == 0  # lane-dim constraint of score/mask tiles

    grid = (B, Hkv, Sq // block_q, Skv // block_kv)

    # GQA grouping: view Q/O as (B, Hkv, n_rep, Sq, D); repeat_kv never materialized.
    q5 = query_states.reshape(B, Hkv, n_rep, Sq, D)

    q_spec = pl.BlockSpec((None, None, n_rep, block_q, D),
                          lambda b, hk, qi, ki: (b, hk, 0, qi, 0))
    k_spec = pl.BlockSpec((None, None, block_kv, D),
                          lambda b, hk, qi, ki: (b, hk, ki, 0))
    v_spec = pl.BlockSpec((None, None, block_kv, D),
                          lambda b, hk, qi, ki: (b, hk, ki, 0))
    o_spec = pl.BlockSpec((None, None, n_rep, block_q, D),
                          lambda b, hk, qi, ki: (b, hk, 0, qi, 0))

    in_specs = [q_spec, k_spec, v_spec]
    inputs = [q5, key_states, value_states]
    mask_bytes = 0

    if attention_mask is None:
        mask_mode = "none"
    else:
        attention_mask = attention_mask[:, :, :, :Skv]   # module slices mask to kv_seq_len
        mh = attention_mask.shape[1]
        if mh == 1:
            mask_mode = "bcast"
            in_specs.append(pl.BlockSpec((None, None, block_q, block_kv),
                                         lambda b, hk, qi, ki: (b, 0, qi, ki)))
            inputs.append(attention_mask)
        else:
            assert mh == Hq, "attention_mask head dim must be 1 or num_attention_heads"
            mask_mode = "per_head"
            mask5 = attention_mask.reshape(B, Hkv, n_rep, Sq, Skv)
            in_specs.append(pl.BlockSpec((None, None, n_rep, block_q, block_kv),
                                         lambda b, hk, qi, ki: (b, hk, 0, qi, ki)))
            inputs.append(mask5)
        mask_bytes = attention_mask.size * attention_mask.dtype.itemsize

    kernel = partial(_flash_attn_kernel, scale=scale, causal=causal,
                     mask_mode=mask_mode, n_rep=n_rep,
                     block_q=block_q, block_kv=block_kv, q_len=Sq, kv_len=Skv)

    itemsize = query_states.dtype.itemsize
    bytes_accessed = (2 * B * Hq * Sq * D * itemsize          # Q + O
                      + 2 * B * Hkv * Skv * D * itemsize      # K + V
                      + mask_bytes)
    cost = pl.CostEstimate(flops=4 * B * Hq * Sq * Skv * D,
                           transcendentals=B * Hq * Sq * Skv,
                           bytes_accessed=bytes_accessed)

    out5 = pl.pallas_call(
        kernel,
        out_shape=jax.ShapeDtypeStruct((B, Hkv, n_rep, Sq, D), query_states.dtype),
        grid_spec=pltpu.PrefetchScalarGridSpec(
            num_scalar_prefetch=0,
            grid=grid,
            in_specs=in_specs,
            out_specs=o_spec,
            scratch_shapes=[
                pltpu.VMEM((n_rep, block_q, 1), jnp.float32),   # m (running max)
                pltpu.VMEM((n_rep, block_q, 1), jnp.float32),   # l (running denom)
                pltpu.VMEM((n_rep, block_q, D), jnp.float32),   # acc
            ],
        ),
        compiler_params=pltpu.CompilerParams(
            dimension_semantics=("parallel", "parallel", "parallel", "arbitrary"),
            vmem_limit_bytes=32 * 1024 * 1024,
        ),
        cost_estimate=cost,
    )(*inputs)

    return out5.reshape(B, Hq, Sq, D)


def _reference_attention(q, k, v, mask, n_rep):
    """Mirrors the PyTorch eager path (repeat_kv + masked fp32 softmax)."""
    k = jnp.repeat(k, n_rep, axis=1)
    v = jnp.repeat(v, n_rep, axis=1)
    d = q.shape[-1]
    s = jnp.einsum("bhqd,bhkd->bhqk", q, k) / math.sqrt(d)
    if mask is not None:
        s = s + mask
    p = jax.nn.softmax(s.astype(jnp.float32), axis=-1).astype(q.dtype)
    return jnp.einsum("bhqk,bhkd->bhqd", p, v)


if __name__ == "__main__":
    # Small GQA config: num_attention_heads=4, num_key_value_heads=2.
    B, Hq, Hkv, Sq, Skv, D = 2, 4, 2, 256, 256, 32
    n_rep = Hq // Hkv

    key = jax.random.PRNGKey(0)
    kq, kk, kv = jax.random.split(key, 3)
    q = jax.random.normal(kq, (B, Hq, Sq, D), dtype=jnp.float32)
    k = jax.random.normal(kk, (B, Hkv, Skv, D), dtype=jnp.float32)
    v = jax.random.normal(kv, (B, Hkv, Skv, D), dtype=jnp.float32)

    # HF-style additive causal mask: 0 where allowed, finfo.min otherwise.
    neg = jnp.finfo(jnp.float32).min
    i = jnp.arange(Sq)[:, None]
    j = jnp.arange(Skv)[None, :]
    causal_add = jnp.where(j <= i, 0.0, neg).astype(jnp.float32)
    attention_mask = jnp.broadcast_to(causal_add, (B, 1, Sq, Skv))

    # Path 1: explicit additive mask (exact module semantics), streamed in tiles.
    out_mask = attention_forward(q, k, v, attention_mask, block_q=128, block_kv=128)
    # Path 2: causal mask generated in-kernel (no dense mask DMA from HBM).
    out_causal = attention_forward(q, k, v, None, causal=True, block_q=128, block_kv=128)
    out_mask, out_causal = jax.block_until_ready((out_mask, out_causal))

    ref = _reference_attention(q, k, v, attention_mask, n_rep)

    assert out_mask.shape == (B, Hq, Sq, D)
    err1 = float(jnp.max(jnp.abs(out_mask - ref)))
    err2 = float(jnp.max(jnp.abs(out_causal - ref)))
    assert jnp.allclose(out_mask, ref, atol=2e-3, rtol=2e-3), err1
    assert jnp.allclose(out_causal, ref, atol=2e-3, rtol=2e-3), err2

    print("KERNEL_OK")
</pallas_src>

<mosaic_0001>
module attributes {stable_mosaic.version = 11 : i64} {
  func.func @_flash_attn_kernel(%arg0: i32, %arg1: i32, %arg2: i32, %arg3: i32, %arg4: memref<1x1x2x128x32xf32, #tpu.memory_space<vmem>>, %arg5: memref<1x1x128x32xf32, #tpu.memory_space<vmem>>, %arg6: memref<1x1x128x32xf32, #tpu.memory_space<vmem>>, %arg7: memref<1x1x128x128xf32, #tpu.memory_space<vmem>>, %arg8: memref<1x1x2x128x32xf32, #tpu.memory_space<vmem>>, %arg9: memref<2x128x1xf32, #tpu.memory_space<vmem>>, %arg10: memref<2x128x1xf32, #tpu.memory_space<vmem>>, %arg11: memref<2x128x32xf32, #tpu.memory_space<vmem>>) attributes {dimension_semantics = [#tpu.dimension_semantics<parallel>, #tpu.dimension_semantics<parallel>, #tpu.dimension_semantics<parallel>, #tpu.dimension_semantics<arbitrary>], iteration_bounds = array<i64: 2, 2, 2, 2>, scalar_prefetch = 0 : i64, scratch_operands = 3 : i64, tpu.core_type = #tpu.core_type<tc>, window_params = [{transform_indices = @transform_0, window_bounds = array<i64: 1, 1, 2, 128, 32>}, {transform_indices = @transform_1, window_bounds = array<i64: 1, 1, 128, 32>}, {transform_indices = @transform_2, window_bounds = array<i64: 1, 1, 128, 32>}, {transform_indices = @transform_3, window_bounds = array<i64: 1, 1, 128, 128>}, {transform_indices = @transform_4, window_bounds = array<i64: 1, 1, 2, 128, 32>}]} {
    %c0_i32 = arith.constant 0 : i32
    %0 = arith.cmpi eq, %arg3, %c0_i32 : i32
    %1 = arith.extui %0 : i1 to i32
    %c0_i32_0 = arith.constant 0 : i32
    %2 = arith.cmpi ne, %1, %c0_i32_0 : i32
    scf.if %2 {
      %cst_40 = arith.constant 0xFF800000 : f32
      %46 = vector.broadcast %cst_40 : f32 to vector<2x128x1xf32>
      %c0_41 = arith.constant 0 : index
      %c0_42 = arith.constant 0 : index
      %c0_43 = arith.constant 0 : index
      %47 = vector.load %arg9[%c0_41, %c0_42, %c0_43] : memref<2x128x1xf32, #tpu.memory_space<vmem>>, vector<2x128x1xf32>
      tpu.vector_store %arg9[%c0_41, %c0_42, %c0_43], %46 {strides = array<i32>} : memref<2x128x1xf32, #tpu.memory_space<vmem>>, vector<2x128x1xf32>,
      %cst_44 = arith.constant 0.000000e+00 : f32
      %48 = vector.broadcast %cst_44 : f32 to vector<2x128x1xf32>
      %c0_45 = arith.constant 0 : index
      %c0_46 = arith.constant 0 : index
      %c0_47 = arith.constant 0 : index
      %49 = vector.load %arg10[%c0_45, %c0_46, %c0_47] : memref<2x128x1xf32, #tpu.memory_space<vmem>>, vector<2x128x1xf32>
      tpu.vector_store %arg10[%c0_45, %c0_46, %c0_47], %48 {strides = array<i32>} : memref<2x128x1xf32, #tpu.memory_space<vmem>>, vector<2x128x1xf32>,
      %cst_48 = arith.constant 0.000000e+00 : f32
      %50 = vector.broadcast %cst_48 : f32 to vector<2x128x32xf32>
      %c0_49 = arith.constant 0 : index
      %c0_50 = arith.constant 0 : index
      %c0_51 = arith.constant 0 : index
      %51 = vector.load %arg11[%c0_49, %c0_50, %c0_51] : memref<2x128x32xf32, #tpu.memory_space<vmem>>, vector<2x128x32xf32>
      tpu.vector_store %arg11[%c0_49, %c0_50, %c0_51], %50 {strides = array<i32>} : memref<2x128x32xf32, #tpu.memory_space<vmem>>, vector<2x128x32xf32>,
    } else {
    }
    %c0 = arith.constant 0 : index
    %c0_1 = arith.constant 0 : index
    %c0_2 = arith.constant 0 : index
    %c0_3 = arith.constant 0 : index
    %c0_4 = arith.constant 0 : index
    %3 = vector.load %arg4[%c0, %c0_1, %c0_2, %c0_3, %c0_4] : memref<1x1x2x128x32xf32, #tpu.memory_space<vmem>>, vector<1x1x2x128x32xf32>
    %4 = vector.shape_cast %3 : vector<1x1x2x128x32xf32> to vector<2x128x32xf32>
    %cst = arith.constant 0.176776692 : f32
    %5 = vector.broadcast %cst : f32 to vector<2x128x32xf32>
    %6 = arith.mulf %4, %5 : vector<2x128x32xf32>
    %7 = vector.shape_cast %6 : vector<2x128x32xf32> to vector<256x32xf32>
    %c0_5 = arith.constant 0 : index
    %c0_6 = arith.constant 0 : index
    %c0_7 = arith.constant 0 : index
    %c0_8 = arith.constant 0 : index
    %8 = vector.load %arg5[%c0_5, %c0_6, %c0_7, %c0_8] : memref<1x1x128x32xf32, #tpu.memory_space<vmem>>, vector<1x1x128x32xf32>
    %9 = vector.shape_cast %8 : vector<1x1x128x32xf32> to vector<128x32xf32>
    %cst_9 = arith.constant dense<0.000000e+00> : vector<256x128xf32>
    %10 = tpu.matmul %7, %9, %cst_9 {dimension_numbers = #tpu.dot_dimension_numbers<[1], [1], [0], [0], [0, 0, 1, 0], [], []>} : vector<256x32xf32>, vector<128x32xf32>, vector<256x128xf32> -> vector<256x128xf32>
    %11 = vector.shape_cast %10 : vector<256x128xf32> to vector<2x128x128xf32>
    %c0_10 = arith.constant 0 : index
    %c0_11 = arith.constant 0 : index
    %c0_12 = arith.constant 0 : index
    %c0_13 = arith.constant 0 : index
    %12 = vector.load %arg7[%c0_10, %c0_11, %c0_12, %c0_13] : memref<1x1x128x128xf32, #tpu.memory_space<vmem>>, vector<1x1x128x128xf32>
    %13 = vector.shape_cast %12 : vector<1x1x128x128xf32> to vector<128x128xf32>
    %14 = vector.shape_cast %13 : vector<128x128xf32> to vector<1x128x128xf32>
    %15 = vector.broadcast %14 : vector<1x128x128xf32> to vector<2x128x128xf32>
    %16 = arith.addf %11, %15 : vector<2x128x128xf32>
    %c0_14 = arith.constant 0 : index
    %c0_15 = arith.constant 0 : index
    %c0_16 = arith.constant 0 : index
    %17 = vector.load %arg9[%c0_14, %c0_15, %c0_16] : memref<2x128x1xf32, #tpu.memory_space<vmem>>, vector<2x128x1xf32>
    %cst_17 = arith.constant dense<0xFF800000> : vector<2x128xf32>
    %18 = vector.multi_reduction <maximumf>, %16, %cst_17 [2] : vector<2x128x128xf32> to vector<2x128xf32>
    %19 = vector.shape_cast %18 : vector<2x128xf32> to vector<2x128x1xf32>
    %20 = arith.maximumf %17, %19 : vector<2x128x1xf32>
    %21 = arith.subf %17, %20 : vector<2x128x1xf32>
    %22 = math.exp %21 : vector<2x128x1xf32>
    %23 = vector.broadcast %20 : vector<2x128x1xf32> to vector<2x128x128xf32>
    %24 = arith.subf %16, %23 : vector<2x128x128xf32>
    %25 = math.exp %24 : vector<2x128x128xf32>
    %c0_18 = arith.constant 0 : index
    %c0_19 = arith.constant 0 : index
    %c0_20 = arith.constant 0 : index
    %26 = vector.load %arg10[%c0_18, %c0_19, %c0_20] : memref<2x128x1xf32, #tpu.memory_space<vmem>>, vector<2x128x1xf32>
    %27 = arith.mulf %22, %26 : vector<2x128x1xf32>
    %cst_21 = arith.constant dense<0.000000e+00> : vector<2x128xf32>
    %28 = vector.multi_reduction <add>, %25, %cst_21 [2] : vector<2x128x128xf32> to vector<2x128xf32>
    %29 = vector.shape_cast %28 : vector<2x128xf32> to vector<2x128x1xf32>
    %30 = arith.addf %27, %29 : vector<2x128x1xf32>
    %c0_22 = arith.constant 0 : index
    %c0_23 = arith.constant 0 : index
    %c0_24 = arith.constant 0 : index
    %31 = vector.load %arg10[%c0_22, %c0_23, %c0_24] : memref<2x128x1xf32, #tpu.memory_space<vmem>>, vector<2x128x1xf32>
    tpu.vector_store %arg10[%c0_22, %c0_23, %c0_24], %30 {strides = array<i32>} : memref<2x128x1xf32, #tpu.memory_space<vmem>>, vector<2x128x1xf32>,
    %32 = vector.shape_cast %25 : vector<2x128x128xf32> to vector<256x128xf32>
    %c0_25 = arith.constant 0 : index
    %c0_26 = arith.constant 0 : index
    %c0_27 = arith.constant 0 : index
    %c0_28 = arith.constant 0 : index
    %33 = vector.load %arg6[%c0_25, %c0_26, %c0_27, %c0_28] : memref<1x1x128x32xf32, #tpu.memory_space<vmem>>, vector<1x1x128x32xf32>
    %34 = vector.shape_cast %33 : vector<1x1x128x32xf32> to vector<128x32xf32>
    %cst_29 = arith.constant dense<0.000000e+00> : vector<256x32xf32>
    %35 = tpu.matmul %32, %34, %cst_29 {dimension_numbers = #tpu.dot_dimension_numbers<[1], [0], [0], [1], [0, 0, 1, 1], [], []>} : vector<256x128xf32>, vector<128x32xf32>, vector<256x32xf32> -> vector<256x32xf32>
    %c0_30 = arith.constant 0 : index
    %c0_31 = arith.constant 0 : index
    %c0_32 = arith.constant 0 : index
    %36 = vector.load %arg11[%c0_30, %c0_31, %c0_32] : memref<2x128x32xf32, #tpu.memory_space<vmem>>, vector<2x128x32xf32>
    %37 = vector.broadcast %22 : vector<2x128x1xf32> to vector<2x128x32xf32>
    %38 = arith.mulf %37, %36 : vector<2x128x32xf32>
    %39 = vector.shape_cast %35 : vector<256x32xf32> to vector<2x128x32xf32>
    %40 = arith.addf %38, %39 : vector<2x128x32xf32>
    %c0_33 = arith.constant 0 : index
    %c0_34 = arith.constant 0 : index
    %c0_35 = arith.constant 0 : index
    %41 = vector.load %arg11[%c0_33, %c0_34, %c0_35] : memref<2x128x32xf32, #tpu.memory_space<vmem>>, vector<2x128x32xf32>
    tpu.vector_store %arg11[%c0_33, %c0_34, %c0_35], %40 {strides = array<i32>} : memref<2x128x32xf32, #tpu.memory_space<vmem>>, vector<2x128x32xf32>,
    %c0_36 = arith.constant 0 : index
    %c0_37 = arith.constant 0 : index
    %c0_38 = arith.constant 0 : index
    %42 = vector.load %arg9[%c0_36, %c0_37, %c0_38] : memref<2x128x1xf32, #tpu.memory_space<vmem>>, vector<2x128x1xf32>
    tpu.vector_store %arg9[%c0_36, %c0_37, %c0_38], %20 {strides = array<i32>} : memref<2x128x1xf32, #tpu.memory_space<vmem>>, vector<2x128x1xf32>,
    %c1_i32 = arith.constant 1 : i32
    %43 = arith.cmpi eq, %arg3, %c1_i32 : i32
    %44 = arith.extui %43 : i1 to i32
    %c0_i32_39 = arith.constant 0 : i32
    %45 = arith.cmpi ne, %44, %c0_i32_39 : i32
    scf.if %45 {
      %c0_40 = arith.constant 0 : index
      %c0_41 = arith.constant 0 : index
      %c0_42 = arith.constant 0 : index
      %46 = vector.load %arg10[%c0_40, %c0_41, %c0_42] : memref<2x128x1xf32, #tpu.memory_space<vmem>>, vector<2x128x1xf32>
      %cst_43 = arith.constant 0.000000e+00 : f32
      %47 = vector.broadcast %cst_43 : f32 to vector<2x128x1xf32>
      %48 = arith.cmpf oeq, %46, %47 : vector<2x128x1xf32>
      %49 = tpu.reciprocal %46 {approx = true} : vector<2x128x1xf32> -> vector<2x128x1xf32>
      %cst_44 = arith.constant 0.000000e+00 : f32
      %50 = vector.broadcast %cst_44 : f32 to vector<2x128x1xf32>
      %51 = arith.select %48, %50, %49 : vector<2x128x1xi1>, vector<2x128x1xf32>
      %c0_45 = arith.constant 0 : index
      %c0_46 = arith.constant 0 : index
      %c0_47 = arith.constant 0 : index
      %52 = vector.load %arg11[%c0_45, %c0_46, %c0_47] : memref<2x128x32xf32, #tpu.memory_space<vmem>>, vector<2x128x32xf32>
      %53 = vector.broadcast %51 : vector<2x128x1xf32> to vector<2x128x32xf32>
      %54 = arith.mulf %52, %53 : vector<2x128x32xf32>
      %c0_48 = arith.constant 0 : index
      %c0_49 = arith.constant 0 : index
      %c0_50 = arith.constant 0 : index
      %c0_51 = arith.constant 0 : index
      %c0_52 = arith.constant 0 : index
      %55 = vector.load %arg8[%c0_48, %c0_49, %c0_50, %c0_51, %c0_52] : memref<1x1x2x128x32xf32, #tpu.memory_space<vmem>>, vector<1x1x2x128x32xf32>
      %56 = vector.shape_cast %55 : vector<1x1x2x128x32xf32> to vector<2x128x32xf32>
      %57 = vector.shape_cast %54 : vector<2x128x32xf32> to vector<1x1x2x128x32xf32>
      tpu.vector_store %arg8[%c0_48, %c0_49, %c0_50, %c0_51, %c0_52], %57 {strides = array<i32>} : memref<1x1x2x128x32xf32, #tpu.memory_space<vmem>>, vector<1x1x2x128x32xf32>,
    } else {
    }
    return
  }
  func.func @transform_0(%arg0: i32, %arg1: i32, %arg2: i32, %arg3: i32) -> (i32, i32, i32, i32, i32) {
    %c0_i32 = arith.constant 0 : i32
    %c0_i32_0 = arith.constant 0 : i32
    %c0_i32_1 = arith.constant 0 : i32
    return %arg0, %arg1, %c0_i32, %arg2, %c0_i32_0 : i32, i32, i32, i32, i32
  }
  func.func @transform_1(%arg0: i32, %arg1: i32, %arg2: i32, %arg3: i32) -> (i32, i32, i32, i32) {
    %c0_i32 = arith.constant 0 : i32
    %c0_i32_0 = arith.constant 0 : i32
    return %arg0, %arg1, %arg3, %c0_i32 : i32, i32, i32, i32
  }
  func.func @transform_2(%arg0: i32, %arg1: i32, %arg2: i32, %arg3: i32) -> (i32, i32, i32, i32) {
    %c0_i32 = arith.constant 0 : i32
    %c0_i32_0 = arith.constant 0 : i32
    return %arg0, %arg1, %arg3, %c0_i32 : i32, i32, i32, i32
  }
  func.func @transform_3(%arg0: i32, %arg1: i32, %arg2: i32, %arg3: i32) -> (i32, i32, i32, i32) {
    %c0_i32 = arith.constant 0 : i32
    %c0_i32_0 = arith.constant 0 : i32
    return %arg0, %c0_i32, %arg2, %arg3 : i32, i32, i32, i32
  }
  func.func @transform_4(%arg0: i32, %arg1: i32, %arg2: i32, %arg3: i32) -> (i32, i32, i32, i32, i32) {
    %c0_i32 = arith.constant 0 : i32
    %c0_i32_0 = arith.constant 0 : i32
    %c0_i32_1 = arith.constant 0 : i32
    return %arg0, %arg1, %c0_i32, %arg2, %c0_i32_0 : i32, i32, i32, i32, i32
  }
}

</mosaic_0001>

<bundles_post_ra>
// kernel: tpu_custom_call.1
= control target key start
LH: loop header
LB: loop body
LE: loop exit
PB: predicated region body
PF: predicated region fallthrough
CT: control target
= control target key end

     0   :  { %s5178_s0 = inlined_call_operand.vmem [shape: f32[2,2,2,256,32], index: 0, kind: input, shape index: {}]   ;;  %s5179_s1 = inlined_call_operand.vmem [shape: f32[2,2,256,32], index: 1, kind: input, shape index: {}]   ;;  %s5180_s2 = inlined_call_operand.vmem [shape: f32[2,2,256,32], index: 2, kind: input, shape index: {}]   ;;  %s5181_s3 = inlined_call_operand.vmem [shape: f32[2,1,256,256], index: 3, kind: input, shape index: {}]   ;;  %s5182_s4 = inlined_call_operand.vmem [shape: f32[2,2,2,256,32], index: 4, kind: output, shape index: {}]  }
   0x1   :  { %5228 = sst [smem:[#allocation54_spill]] %s5178_s0 }
   0x2   :  { %5229 = sst [smem:[#allocation55_spill]] %s5179_s1 }
   0x3   :  { %5230 = sst [smem:[#allocation56_spill]] %s5180_s2 }
   0x4   :  { %5231 = sst [smem:[#allocation57_spill]] %s5181_s3 }
   0x5   :  { %5232 = sst [smem:[#allocation58_spill]] %s5182_s4 }
   0x6   :  { %s3533_s15 = smov 0   ;;  %s3535_s16 = smov 0  }
   0x7   :  { %s3537_s17 = smov 0   ;;  %s3539_s18 = smov 0  }
   0x8   :  { %s3541_s19 = smov 0   ;;  %s3543_s20 = smov 0  }
   0x9   :  { %s3545_s21 = smov 0   ;;  %s3547_s22 = smov 0  }
   0xa   :  { %s3549_s23 = smov 0   ;;  %s3551_s24 = smov 0  }
   0xb   :  { %s3553_s25 = smov 0   ;;  %s3555_s26 = smov 0  }
   0xc   :  { %s3557_s27 = smov 0  }
   0xd LB: > { %5233 = sst [smem:[#allocation8_spill]] %s3474_s20  ;;  %s29_s28 = sadd.s32 1, %s3486_s23  ;;  %s3502_s27 = sphi %s3557_s27, %s14_s27   ;;  %s3498_s26 = sphi %s3555_s26, %s5362_s26   ;;  %s3494_s25 = sphi %s3553_s25, %s5361_s25   ;;  %s3490_s24 = sphi %s3551_s24, %s5360_s24   ;;  %s3486_s23 = sphi %s3549_s23, %s5359_s23   ;;  %s3482_s22 = sphi %s3547_s22, %s5358_s22   ;;  %s3478_s21 = sphi %s3545_s21, %s5357_s21   ;;  %s3474_s20 = sphi %s3543_s20, %s5356_s20   ;;  %s3470_s19 = sphi %s3541_s19, %s5355_s19   ;;  %s3466_s18 = sphi %s3539_s18, %s5354_s18   ;;  %s3462_s17 = sphi %s3537_s17, %s5353_s17   ;;  %s3458_s16 = sphi %s3535_s16, %s5352_s16   ;;  %s3454_s15 = sphi %s3533_s15, %s5351_s15  }
   0xe   : > { %5234 = sst [smem:[#allocation9_spill]] %s3478_s21  ;;  %p30_p0 = scmp.ge.s32.totalorder %s29_s28, 2 }
   0xf   : > { %5235 = sst [smem:[#allocation10_spill]] %s3482_s22  ;;  %s32_s29 = sadd.s32 1, %s3490_s24 }
  0x10   : > { %5236 = sst [smem:[#allocation11_spill]] %s3498_s26  ;;  %s2946_s30 = sadd.s32 4294967295, %s3502_s27  }
  0x11   : > { %s5364_s29 = smov (!%p30_p0, %s32_s29), %s3490_s24  ;;  %s36_s5 = sadd.s32 1, %s3494_s25 }
  0x12   : > { %p58_p1 = scmp.ne.s32.totalorder %s3466_s18, %s3462_s17  ;;  %p34_p2 = scmp.ge.s32.totalorder %s5364_s29, 2 }
  0x13   : > { %p59_p3 = scmp.eq.s32.totalorder %s3502_s27, 0  ;;  %s5366_s28 = smov (%p30_p0, %s29_s28), 0 }
  0x14   : > { %5237 = sst [smem:[#allocation12_spill]] %s5366_s28  ;;  %s5368_s29 = smov (%p34_p2, %s5364_s29), 0 }
  0x15   : > { %5238 = sst [smem:[#allocation13_spill]] %s5368_s29  ;;  %s5370_s5 = smov (!%p34_p2, %s36_s5), %s3494_s25 }
  0x16   : > { %s40_s6 = sadd.s32 1, %s3498_s26  ;;  %p3615_p4 = por %p59_p3, %p58_p1 }
  0x17   : > { %p38_p5 = scmp.ge.s32.totalorder %s5370_s5, 2  ;;  %p148_p6 = scmp.ne.s32.totalorder %s3458_s16, %s3454_s15 }
  0x18   : > { %p182_p7 = scmp.eq.s32.totalorder %s2946_s30, 15  ;;  %s47_s11 = ssub.s32 %s3490_s24, %s5368_s29 }
  0x19   : > { %s5372_s5 = smov (%p38_p5, %s5370_s5), 0  ;;  %s5374_s6 = smov (!%p38_p5, %s40_s6), %s3498_s26 }
  0x1a   : > { %5240 = sst [smem:[#allocation14_spill]] %s5372_s5  ;;  %p3624_p8 = por %p148_p6, %p59_p3 }
  0x1b   : > { %p42_p9 = scmp.ge.s32.totalorder %s5374_s6, 2  ;;  %p3631_p10 = por %p182_p7, %p58_p1 }
  0x1c   : > { %s45_s10 = ssub.s32 %s3494_s25, %s5372_s5  ;;  %s51_s12 = sadd.s32 1, %s3466_s18 }
  0x1d   : > { %s5376_s6 = smov (%p42_p9, %s5374_s6), 0  ;;  %s137_s13 = ssub.s32 %s3486_s23, %s5366_s28 }
  0x1e   : > { %5243 = sst [smem:[#allocation15_spill]] %s5376_s6  ;;  %s44_s14 = ssub.s32 %s3498_s26, %s5376_s6 }
  0x1f   : > { %s141_s30 = sadd.s32 1, %s3458_s16  ;;  %s46_s4 = sor.u32 %s45_s10, %s44_s14 }
  0x20   : > { %s136_s20 = sor.u32 %s47_s11, %s44_s14  ;;  %s48_s2 = sor.u32 %s47_s11, %s46_s4 }
  0x21   : > { %s138_s1 = sor.u32 %s137_s13, %s136_s20  ;;  %p49_p11 = scmp.eq.s32.totalorder %s48_s2, 0 }
  0x22   : > { %p139_p12 = scmp.eq.s32.totalorder %s138_s1, 0  ;;  %p2949_p13 = scmp.ge.s32.totalorder %s3502_s27, 16 }
  0x23   : > { %s3648_s21 = scalar_select %p49_p11, %s3466_s18, %s51_s12  }
  0x24   : > { %s3651_s22 = scalar_select %p139_p12, %s3458_s16, %s141_s30  }
  0x25   : > { %204 = sbr.rel (%p2949_p13) target bundleno = 112 (0x70), region = 16 }
  0x2a   : > { %207 = sbr.rel (!%p3615_p4) target bundleno = 85 (0x55), region = 20  ;;  %s209_s10 = sand.u32 (%p3615_p4), 1, %s3466_s18  }
  0x2b   : > { %s2951_s14 = sshll.u32 (%p3615_p4), %s3490_s24, 4  ;;  %s2952_s4 = sshll.u32 (%p3615_p4), %s3494_s25, 6 }
  0x2c   : > { %s2950_s20 = sshll.u32 (%p3615_p4), %s209_s10, 8  ;;  %s214_s2 = sadd.s32 (%p3615_p4), %s2952_s4, %s2951_s14 }
  0x2d   : > { %s2953_s1 = sshll.u32 (%p3615_p4), %s3498_s26, 7  ;;  %s5244_s0 = sld [smem:[#allocation54_spill]] (%p3615_p4) }
  0x2e   : > { %s216_s11 = sadd.s32 (%p3615_p4), %s2953_s1, %s214_s2  ;;  %s3668_s7 = scalar_lea.vmem (%p3615_p4), [#allocation5], %s2950_s20 }
  0x2f   : > { %s2954_s12 = sshll.u32 %s216_s11, 3 }
  0x33   : > { %s3663_s6 = scalar_lea.vmem %s5244_s0, %s2954_s12 }
  0x34   : > { %v309_v0 = vld [vmem:[%s3663_s6] sm:$0xff]  ;;  %v311_v1 = vld [vmem:[%s3663_s6 + $0x8] sm:$0xff]  ;;  %v313_v2 = vld [vmem:[%s3663_s6 + $0x10] sm:$0xff] }
  0x35   : > { %310 = vst [vmem:[%s3668_s7] sm:$0xff] %v309_v0  ;;  %v315_v3 = vld [vmem:[%s3663_s6 + $0x18] sm:$0xff]  ;;  %v317_v4 = vld [vmem:[%s3663_s6 + $0x20] sm:$0xff]  ;;  %v319_v5 = vld [vmem:[%s3663_s6 + $0x28] sm:$0xff] }
  0x36   : > { %312 = vst [vmem:[%s3668_s7 + $0x8] sm:$0xff] %v311_v1  ;;  %v321_v6 = vld [vmem:[%s3663_s6 + $0x30] sm:$0xff]  ;;  %v323_v7 = vld [vmem:[%s3663_s6 + $0x38] sm:$0xff]  ;;  %v325_v8 = vld [vmem:[%s3663_s6 + $0x40] sm:$0xff] }
  0x37   : > { %314 = vst [vmem:[%s3668_s7 + $0x10] sm:$0xff] %v313_v2  ;;  %v327_v9 = vld [vmem:[%s3663_s6 + $0x48] sm:$0xff]  ;;  %v329_v10 = vld [vmem:[%s3663_s6 + $0x50] sm:$0xff]  ;;  %v331_v11 = vld [vmem:[%s3663_s6 + $0x58] sm:$0xff] }
  0x38   : > { %316 = vst [vmem:[%s3668_s7 + $0x18] sm:$0xff] %v315_v3  ;;  %v333_v12 = vld [vmem:[%s3663_s6 + $0x60] sm:$0xff]  ;;  %v335_v13 = vld [vmem:[%s3663_s6 + $0x68] sm:$0xff]  ;;  %v337_v14 = vld [vmem:[%s3663_s6 + $0x70] sm:$0xff] }
  0x39   : > { %318 = vst [vmem:[%s3668_s7 + $0x20] sm:$0xff] %v317_v4  ;;  %v339_v15 = vld [vmem:[%s3663_s6 + $0x78] sm:$0xff]  ;;  %v341_v16 = vld [vmem:[%s3663_s6 + $0x100] sm:$0xff]  ;;  %v343_v17 = vld [vmem:[%s3663_s6 + $0x108] sm:$0xff] }
  0x3a   : > { %320 = vst [vmem:[%s3668_s7 + $0x28] sm:$0xff] %v319_v5  ;;  %v345_v18 = vld [vmem:[%s3663_s6 + $0x110] sm:$0xff]  ;;  %v347_v19 = vld [vmem:[%s3663_s6 + $0x118] sm:$0xff]  ;;  %v349_v20 = vld [vmem:[%s3663_s6 + $0x120] sm:$0xff] }
  0x3b   : > { %322 = vst [vmem:[%s3668_s7 + $0x30] sm:$0xff] %v321_v6  ;;  %v351_v21 = vld [vmem:[%s3663_s6 + $0x128] sm:$0xff]  ;;  %v353_v22 = vld [vmem:[%s3663_s6 + $0x130] sm:$0xff]  ;;  %v355_v23 = vld [vmem:[%s3663_s6 + $0x138] sm:$0xff] }
  0x3c   : > { %324 = vst [vmem:[%s3668_s7 + $0x38] sm:$0xff] %v323_v7  ;;  %v357_v24 = vld [vmem:[%s3663_s6 + $0x140] sm:$0xff]  ;;  %v359_v25 = vld [vmem:[%s3663_s6 + $0x148] sm:$0xff]  ;;  %v361_v26 = vld [vmem:[%s3663_s6 + $0x150] sm:$0xff] }
  0x3d   : > { %326 = vst [vmem:[%s3668_s7 + $0x40] sm:$0xff] %v325_v8  ;;  %v363_v27 = vld [vmem:[%s3663_s6 + $0x158] sm:$0xff]  ;;  %v365_v28 = vld [vmem:[%s3663_s6 + $0x160] sm:$0xff]  ;;  %v367_v29 = vld [vmem:[%s3663_s6 + $0x168] sm:$0xff] }
  0x3e   : > { %328 = vst [vmem:[%s3668_s7 + $0x48] sm:$0xff] %v327_v9  ;;  %v369_v30 = vld [vmem:[%s3663_s6 + $0x170] sm:$0xff]  ;;  %v371_v31 = vld [vmem:[%s3663_s6 + $0x178] sm:$0xff] }
  0x3f   : > { %330 = vst [vmem:[%s3668_s7 + $0x50] sm:$0xff] %v329_v10 }
  0x40   : > { %332 = vst [vmem:[%s3668_s7 + $0x58] sm:$0xff] %v331_v11 }
  0x41   : > { %334 = vst [vmem:[%s3668_s7 + $0x60] sm:$0xff] %v333_v12 }
  0x42   : > { %336 = vst [vmem:[%s3668_s7 + $0x68] sm:$0xff] %v335_v13 }
  0x43   : > { %338 = vst [vmem:[%s3668_s7 + $0x70] sm:$0xff] %v337_v14 }
  0x44   : > { %340 = vst [vmem:[%s3668_s7 + $0x78] sm:$0xff] %v339_v15 }
  0x45   : > { %342 = vst [vmem:[%s3668_s7 + $0x80] sm:$0xff] %v341_v16 }
  0x46   : > { %344 = vst [vmem:[%s3668_s7 + $0x88] sm:$0xff] %v343_v17 }
  0x47   : > { %346 = vst [vmem:[%s3668_s7 + $0x90] sm:$0xff] %v345_v18 }
  0x48   : > { %348 = vst [vmem:[%s3668_s7 + $0x98] sm:$0xff] %v347_v19 }
  0x49   : > { %350 = vst [vmem:[%s3668_s7 + $0xa0] sm:$0xff] %v349_v20 }
  0x4a   : > { %352 = vst [vmem:[%s3668_s7 + $0xa8] sm:$0xff] %v351_v21 }
  0x4b   : > { %354 = vst [vmem:[%s3668_s7 + $0xb0] sm:$0xff] %v353_v22 }
  0x4c   : > { %356 = vst [vmem:[%s3668_s7 + $0xb8] sm:$0xff] %v355_v23 }
  0x4d   : > { %358 = vst [vmem:[%s3668_s7 + $0xc0] sm:$0xff] %v357_v24 }
  0x4e   : > { %360 = vst [vmem:[%s3668_s7 + $0xc8] sm:$0xff] %v359_v25 }
  0x4f   : > { %362 = vst [vmem:[%s3668_s7 + $0xd0] sm:$0xff] %v361_v26 }
  0x50   : > { %364 = vst [vmem:[%s3668_s7 + $0xd8] sm:$0xff] %v363_v27 }
  0x51   : > { %366 = vst [vmem:[%s3668_s7 + $0xe0] sm:$0xff] %v365_v28 }
  0x52   : > { %368 = vst [vmem:[%s3668_s7 + $0xe8] sm:$0xff] %v367_v29 }
  0x53   : > { %370 = vst [vmem:[%s3668_s7 + $0xf0] sm:$0xff] %v369_v30 }
  0x54   : > { %372 = vst [vmem:[%s3668_s7 + $0xf8] sm:$0xff] %v371_v31 }
  0x55 PF: > { %412 = sbr.rel (!%p3624_p8) target bundleno = 112 (0x70), region = 66  ;;  %s414_s10 = sand.u32 (%p3624_p8), 1, %s3458_s16  }
  0x56   : > { %s3029_s14 = sshll.u32 (%p3624_p8), %s3490_s24, 5  ;;  %s2955_s4 = sshll.u32 (%p3624_p8), %s414_s10, 7 }
  0x57   : > { %s419_s20 = sadd.s32 (%p3624_p8), %s3486_s23, %s3029_s14  ;;  %s2958_s2 = sshll.u32 (%p3624_p8), %s3498_s26, 6 }
  0x58   : > { %s421_s1 = sadd.s32 (%p3624_p8), %s2958_s2, %s419_s20  ;;  %s5245_s3 = sld [smem:[#allocation57_spill]] (%p3624_p8) }
  0x59   : > { %s2959_s11 = sshll.u32 (%p3624_p8), %s421_s1, 3  ;;  %s416_s8 = scalar_lea.vmem (%p3624_p8), [#allocation6], %s2955_s4 }
  0x5e   : > { %s3740_s13 = scalar_lea.vmem %s5245_s3, %s2959_s11 }
  0x5f   : > { %v482_v32 = vld [vmem:[%s3740_s13] sm:$0xff]  ;;  %v484_v33 = vld [vmem:[%s3740_s13 + $0x10] sm:$0xff] }
  0x60   : > { %v486_v34 = vld [vmem:[%s3740_s13 + $0x20] sm:$0xff]  ;;  %483 = vst [vmem:[%s416_s8] sm:$0xff] %v482_v32  ;;  %v488_v35 = vld [vmem:[%s3740_s13 + $0x30] sm:$0xff] }
  0x61   : > { %485 = vst [vmem:[%s416_s8 + $0x8] sm:$0xff] %v484_v33  ;;  %v490_v36 = vld [vmem:[%s3740_s13 + $0x40] sm:$0xff]  ;;  %v492_v37 = vld [vmem:[%s3740_s13 + $0x50] sm:$0xff] }
  0x62   : > { %487 = vst [vmem:[%s416_s8 + $0x10] sm:$0xff] %v486_v34  ;;  %v494_v38 = vld [vmem:[%s3740_s13 + $0x60] sm:$0xff]  ;;  %v496_v39 = vld [vmem:[%s3740_s13 + $0x70] sm:$0xff] }
  0x63   : > { %489 = vst [vmem:[%s416_s8 + $0x18] sm:$0xff] %v488_v35  ;;  %v498_v40 = vld [vmem:[%s3740_s13 + $0x80] sm:$0xff]  ;;  %v500_v41 = vld [vmem:[%s3740_s13 + $0x90] sm:$0xff] }
  0x64   : > { %491 = vst [vmem:[%s416_s8 + $0x20] sm:$0xff] %v490_v36  ;;  %v502_v42 = vld [vmem:[%s3740_s13 + $0xa0] sm:$0xff]  ;;  %v504_v43 = vld [vmem:[%s3740_s13 + $0xb0] sm:$0xff] }
  0x65   : > { %493 = vst [vmem:[%s416_s8 + $0x28] sm:$0xff] %v492_v37  ;;  %v506_v44 = vld [vmem:[%s3740_s13 + $0xc0] sm:$0xff]  ;;  %v508_v45 = vld [vmem:[%s3740_s13 + $0xd0] sm:$0xff] }
  0x66   : > { %495 = vst [vmem:[%s416_s8 + $0x30] sm:$0xff] %v494_v38  ;;  %v510_v46 = vld [vmem:[%s3740_s13 + $0xe0] sm:$0xff]  ;;  %v512_v47 = vld [vmem:[%s3740_s13 + $0xf0] sm:$0xff] }
  0x67   : > { %497 = vst [vmem:[%s416_s8 + $0x38] sm:$0xff] %v496_v39 }
  0x68   : > { %499 = vst [vmem:[%s416_s8 + $0x40] sm:$0xff] %v498_v40 }
  0x69   : > { %501 = vst [vmem:[%s416_s8 + $0x48] sm:$0xff] %v500_v41 }
  0x6a   : > { %503 = vst [vmem:[%s416_s8 + $0x50] sm:$0xff] %v502_v42 }
  0x6b   : > { %505 = vst [vmem:[%s416_s8 + $0x58] sm:$0xff] %v504_v43 }
  0x6c   : > { %507 = vst [vmem:[%s416_s8 + $0x60] sm:$0xff] %v506_v44 }
  0x6d   : > { %509 = vst [vmem:[%s416_s8 + $0x68] sm:$0xff] %v508_v45 }
  0x6e   : > { %511 = vst [vmem:[%s416_s8 + $0x70] sm:$0xff] %v510_v46 }
  0x6f   : > { %513 = vst [vmem:[%s416_s8 + $0x78] sm:$0xff] %v512_v47 }
  0x70 PF: > { %p2960_p0 = scmp.ge.s32.totalorder %s3502_s27, 1  ;;  %p518_p1 = scmp.lt.s32.totalorder %s3502_s27, 17 }
  0x72   : > { %p519_p2 = pnand %p2960_p0, %p518_p1 }
  0x74   : > { %522 = sbr.rel (%p519_p2) target bundleno = 1229 (0x4cd), region = 104 }
  0x79   : > { %s5246_s30 = sld [smem:[#allocation10_spill]]  ;;  %s525_s10 = sand.u32 1, %s3462_s17  }
  0x7a   : > { %s5247_s7 = sld [smem:[#allocation9_spill]]  ;;  %s532_s14 = sand.u32 1, %s3454_s15  }
  0x7b   : > { %s2961_s4 = sshll.u32 %s525_s10, 8  ;;  %s2962_s20 = sshll.u32 %s532_s14, 7 }
  0x7c   : > { %s2964_s2 = sshll.u32 %s3470_s19, 4  ;;  %s5248_s3 = sld [smem:[#allocation55_spill]] }
  0x7d   : > { %p592_p5 = scmp.lt.s32.totalorder %s2964_s2, 31  ;;  %s5249_s10 = sld [smem:[#allocation56_spill]] }
  0x7e   : > { %s3777_s29 = scalar_lea.vmem [#allocation5], %s2961_s4  ;;  %s3779_s28 = scalar_lea.vmem [#allocation6], %s2962_s20 }
  0x7f   : > { %p588_p3 = scmp.lt.s32.totalorder %s5246_s30, 1  ;;  %s5382_s2 = smov (!%p592_p5, %s2964_s2), 31 }
  0x80   : > { %p590_p4 = scmp.lt.s32.totalorder %s5247_s7, 1  ;;  %s3781_s26 = scalar_lea.vmem [#allocation7], %s2961_s4 }
  0x81   : > { %s5378_s30 = smov (!%p588_p3, %s5246_s30), 1  ;;  %p2972_p6 = scmp.ne.s32.totalorder %s3470_s19, 0 }
  0x82   : > { %s5380_s7 = smov (!%p590_p4, %s5247_s7), 1  ;;  %s2966_s11 = sshll.u32 %s5378_s30, 6 }
  0x83   : > { %s2965_s1 = sshll.u32 %s5380_s7, 5  ;;  %620 = sbr.rel (%p2972_p6) target bundleno = 233 (0xe9), region = 116 }
  0x84   : > { %s595_s12 = sadd.s32 %s2965_s1, %s5382_s2 }
  0x85   : > { %s597_s6 = sadd.s32 %s2966_s11, %s595_s12 }
  0x86   : > { %s2967_s13 = sshll.u32 %s597_s6, 3 }
  0x87   : > { %s3770_s5 = scalar_lea.vmem %s5248_s3, %s2967_s13  ;;  %s3775_s14 = scalar_lea.vmem %s5249_s10, %s2967_s13 }
  0x88   : > { %vm621_vm0 = vcmask 7168   ;;  %v3504_v48 = vmov -inf   ;;  %v3505_v49 = vmov 0.0   ;;  %vm686_vm1 = vcmask 261120  }
  0x89   : > { %622 = vst.msk [vmem:[#allocation2] sm:$0xff] %vm621_vm0, %v3504_v48 }
  0x8a   : > { %623 = vst.msk [vmem:[#allocation2 + $0x8] sm:$0xff] %vm621_vm0, %v3504_v48 }
  0x8b   : > { %624 = vst.msk [vmem:[#allocation2 + $0x10] sm:$0xff] %vm621_vm0, %v3504_v48 }
  0x8c   : > { %625 = vst.msk [vmem:[#allocation2 + $0x18] sm:$0xff] %vm621_vm0, %v3504_v48 }
  0x8d   : > { %626 = vst.msk [vmem:[#allocation2 + $0x20] sm:$0xff] %vm621_vm0, %v3504_v48 }
  0x8e   : > { %627 = vst.msk [vmem:[#allocation2 + $0x28] sm:$0xff] %vm621_vm0, %v3504_v48 }
  0x8f   : > { %628 = vst.msk [vmem:[#allocation2 + $0x30] sm:$0xff] %vm621_vm0, %v3504_v48 }
  0x90   : > { %629 = vst.msk [vmem:[#allocation2 + $0x38] sm:$0xff] %vm621_vm0, %v3504_v48 }
  0x91   : > { %630 = vst.msk [vmem:[#allocation2 + $0x40] sm:$0xff] %vm621_vm0, %v3504_v48 }
  0x92   : > { %631 = vst.msk [vmem:[#allocation2 + $0x48] sm:$0xff] %vm621_vm0, %v3504_v48 }
  0x93   : > { %632 = vst.msk [vmem:[#allocation2 + $0x50] sm:$0xff] %vm621_vm0, %v3504_v48 }
  0x94   : > { %633 = vst.msk [vmem:[#allocation2 + $0x58] sm:$0xff] %vm621_vm0, %v3504_v48 }
  0x95   : > { %634 = vst.msk [vmem:[#allocation2 + $0x60] sm:$0xff] %vm621_vm0, %v3504_v48 }
  0x96   : > { %635 = vst.msk [vmem:[#allocation2 + $0x68] sm:$0xff] %vm621_vm0, %v3504_v48 }
  0x97   : > { %636 = vst.msk [vmem:[#allocation2 + $0x70] sm:$0xff] %vm621_vm0, %v3504_v48 }
  0x98   : > { %637 = vst.msk [vmem:[#allocation2 + $0x78] sm:$0xff] %vm621_vm0, %v3504_v48 }
  0x99   : > { %638 = vst.msk [vmem:[#allocation2 + $0x80] sm:$0xff] %vm621_vm0, %v3504_v48 }
  0x9a   : > { %639 = vst.msk [vmem:[#allocation2 + $0x88] sm:$0xff] %vm621_vm0, %v3504_v48 }
  0x9b   : > { %640 = vst.msk [vmem:[#allocation2 + $0x90] sm:$0xff] %vm621_vm0, %v3504_v48 }
  0x9c   : > { %641 = vst.msk [vmem:[#allocation2 + $0x98] sm:$0xff] %vm621_vm0, %v3504_v48 }
  0x9d   : > { %642 = vst.msk [vmem:[#allocation2 + $0xa0] sm:$0xff] %vm621_vm0, %v3504_v48 }
  0x9e   : > { %643 = vst.msk [vmem:[#allocation2 + $0xa8] sm:$0xff] %vm621_vm0, %v3504_v48 }
  0x9f   : > { %644 = vst.msk [vmem:[#allocation2 + $0xb0] sm:$0xff] %vm621_vm0, %v3504_v48 }
  0xa0   : > { %645 = vst.msk [vmem:[#allocation2 + $0xb8] sm:$0xff] %vm621_vm0, %v3504_v48 }
  0xa1   : > { %646 = vst.msk [vmem:[#allocation2 + $0xc0] sm:$0xff] %vm621_vm0, %v3504_v48 }
  0xa2   : > { %647 = vst.msk [vmem:[#allocation2 + $0xc8] sm:$0xff] %vm621_vm0, %v3504_v48 }
  0xa3   : > { %648 = vst.msk [vmem:[#allocation2 + $0xd0] sm:$0xff] %vm621_vm0, %v3504_v48 }
  0xa4   : > { %649 = vst.msk [vmem:[#allocation2 + $0xd8] sm:$0xff] %vm621_vm0, %v3504_v48 }
  0xa5   : > { %650 = vst.msk [vmem:[#allocation2 + $0xe0] sm:$0xff] %vm621_vm0, %v3504_v48 }
  0xa6   : > { %651 = vst.msk [vmem:[#allocation2 + $0xe8] sm:$0xff] %vm621_vm0, %v3504_v48 }
  0xa7   : > { %652 = vst.msk [vmem:[#allocation2 + $0xf0] sm:$0xff] %vm621_vm0, %v3504_v48 }
  0xa8   : > { %653 = vst.msk [vmem:[#allocation2 + $0xf8] sm:$0xff] %vm621_vm0, %v3504_v48 }
  0xa9   : > { %654 = vst.msk [vmem:[#allocation3] sm:$0xff] %vm621_vm0, %v3505_v49 }
  0xaa   : > { %655 = vst.msk [vmem:[#allocation3 + $0x8] sm:$0xff] %vm621_vm0, %v3505_v49 }
  0xab   : > { %656 = vst.msk [vmem:[#allocation3 + $0x10] sm:$0xff] %vm621_vm0, %v3505_v49 }
  0xac   : > { %657 = vst.msk [vmem:[#allocation3 + $0x18] sm:$0xff] %vm621_vm0, %v3505_v49 }
  0xad   : > { %658 = vst.msk [vmem:[#allocation3 + $0x20] sm:$0xff] %vm621_vm0, %v3505_v49 }
  0xae   : > { %659 = vst.msk [vmem:[#allocation3 + $0x28] sm:$0xff] %vm621_vm0, %v3505_v49 }
  0xaf   : > { %660 = vst.msk [vmem:[#allocation3 + $0x30] sm:$0xff] %vm621_vm0, %v3505_v49 }
  0xb0   : > { %661 = vst.msk [vmem:[#allocation3 + $0x38] sm:$0xff] %vm621_vm0, %v3505_v49 }
  0xb1   : > { %662 = vst.msk [vmem:[#allocation3 + $0x40] sm:$0xff] %vm621_vm0, %v3505_v49 }
  0xb2   : > { %663 = vst.msk [vmem:[#allocation3 + $0x48] sm:$0xff] %vm621_vm0, %v3505_v49 }
  0xb3   : > { %664 = vst.msk [vmem:[#allocation3 + $0x50] sm:$0xff] %vm621_vm0, %v3505_v49 }
  0xb4   : > { %665 = vst.msk [vmem:[#allocation3 + $0x58] sm:$0xff] %vm621_vm0, %v3505_v49 }
  0xb5   : > { %666 = vst.msk [vmem:[#allocation3 + $0x60] sm:$0xff] %vm621_vm0, %v3505_v49 }
  0xb6   : > { %667 = vst.msk [vmem:[#allocation3 + $0x68] sm:$0xff] %vm621_vm0, %v3505_v49 }
  0xb7   : > { %668 = vst.msk [vmem:[#allocation3 + $0x70] sm:$0xff] %vm621_vm0, %v3505_v49 }
  0xb8   : > { %669 = vst.msk [vmem:[#allocation3 + $0x78] sm:$0xff] %vm621_vm0, %v3505_v49 }
  0xb9   : > { %670 = vst.msk [vmem:[#allocation3 + $0x80] sm:$0xff] %vm621_vm0, %v3505_v49 }
  0xba   : > { %671 = vst.msk [vmem:[#allocation3 + $0x88] sm:$0xff] %vm621_vm0, %v3505_v49 }
  0xbb   : > { %672 = vst.msk [vmem:[#allocation3 + $0x90] sm:$0xff] %vm621_vm0, %v3505_v49 }
  0xbc   : > { %673 = vst.msk [vmem:[#allocation3 + $0x98] sm:$0xff] %vm621_vm0, %v3505_v49 }
  0xbd   : > { %674 = vst.msk [vmem:[#allocation3 + $0xa0] sm:$0xff] %vm621_vm0, %v3505_v49 }
  0xbe   : > { %675 = vst.msk [vmem:[#allocation3 + $0xa8] sm:$0xff] %vm621_vm0, %v3505_v49 }
  0xbf   : > { %676 = vst.msk [vmem:[#allocation3 + $0xb0] sm:$0xff] %vm621_vm0, %v3505_v49 }
  0xc0   : > { %677 = vst.msk [vmem:[#allocation3 + $0xb8] sm:$0xff] %vm621_vm0, %v3505_v49 }
  0xc1   : > { %678 = vst.msk [vmem:[#allocation3 + $0xc0] sm:$0xff] %vm621_vm0, %v3505_v49 }
  0xc2   : > { %679 = vst.msk [vmem:[#allocation3 + $0xc8] sm:$0xff] %vm621_vm0, %v3505_v49 }
  0xc3   : > { %680 = vst.msk [vmem:[#allocation3 + $0xd0] sm:$0xff] %vm621_vm0, %v3505_v49 }
  0xc4   : > { %681 = vst.msk [vmem:[#allocation3 + $0xd8] sm:$0xff] %vm621_vm0, %v3505_v49 }
  0xc5   : > { %682 = vst.msk [vmem:[#allocation3 + $0xe0] sm:$0xff] %vm621_vm0, %v3505_v49 }
  0xc6   : > { %683 = vst.msk [vmem:[#allocation3 + $0xe8] sm:$0xff] %vm621_vm0, %v3505_v49 }
  0xc7   : > { %684 = vst.msk [vmem:[#allocation3 + $0xf0] sm:$0xff] %vm621_vm0, %v3505_v49 }
  0xc8   : > { %685 = vst.msk [vmem:[#allocation3 + $0xf8] sm:$0xff] %vm621_vm0, %v3505_v49 }
  0xc9   : > { %687 = vst.msk [vmem:[#allocation4] sm:$0xff] %vm686_vm1, %v3505_v49 }
  0xca   : > { %688 = vst.msk [vmem:[#allocation4 + $0x8] sm:$0xff] %vm686_vm1, %v3505_v49 }
  0xcb   : > { %689 = vst.msk [vmem:[#allocation4 + $0x10] sm:$0xff] %vm686_vm1, %v3505_v49 }
  0xcc   : > { %690 = vst.msk [vmem:[#allocation4 + $0x18] sm:$0xff] %vm686_vm1, %v3505_v49 }
  0xcd   : > { %691 = vst.msk [vmem:[#allocation4 + $0x20] sm:$0xff] %vm686_vm1, %v3505_v49 }
  0xce   : > { %692 = vst.msk [vmem:[#allocation4 + $0x28] sm:$0xff] %vm686_vm1, %v3505_v49 }
  0xcf   : > { %693 = vst.msk [vmem:[#allocation4 + $0x30] sm:$0xff] %vm686_vm1, %v3505_v49 }
  0xd0   : > { %694 = vst.msk [vmem:[#allocation4 + $0x38] sm:$0xff] %vm686_vm1, %v3505_v49 }
  0xd1   : > { %695 = vst.msk [vmem:[#allocation4 + $0x40] sm:$0xff] %vm686_vm1, %v3505_v49 }
  0xd2   : > { %696 = vst.msk [vmem:[#allocation4 + $0x48] sm:$0xff] %vm686_vm1, %v3505_v49 }
  0xd3   : > { %697 = vst.msk [vmem:[#allocation4 + $0x50] sm:$0xff] %vm686_vm1, %v3505_v49 }
  0xd4   : > { %698 = vst.msk [vmem:[#allocation4 + $0x58] sm:$0xff] %vm686_vm1, %v3505_v49 }
  0xd5   : > { %699 = vst.msk [vmem:[#allocation4 + $0x60] sm:$0xff] %vm686_vm1, %v3505_v49 }
  0xd6   : > { %700 = vst.msk [vmem:[#allocation4 + $0x68] sm:$0xff] %vm686_vm1, %v3505_v49 }
  0xd7   : > { %701 = vst.msk [vmem:[#allocation4 + $0x70] sm:$0xff] %vm686_vm1, %v3505_v49 }
  0xd8   : > { %702 = vst.msk [vmem:[#allocation4 + $0x78] sm:$0xff] %vm686_vm1, %v3505_v49 }
  0xd9   : > { %703 = vst.msk [vmem:[#allocation4 + $0x80] sm:$0xff] %vm686_vm1, %v3505_v49 }
  0xda   : > { %704 = vst.msk [vmem:[#allocation4 + $0x88] sm:$0xff] %vm686_vm1, %v3505_v49 }
  0xdb   : > { %705 = vst.msk [vmem:[#allocation4 + $0x90] sm:$0xff] %vm686_vm1, %v3505_v49 }
  0xdc   : > { %706 = vst.msk [vmem:[#allocation4 + $0x98] sm:$0xff] %vm686_vm1, %v3505_v49 }
  0xdd   : > { %707 = vst.msk [vmem:[#allocation4 + $0xa0] sm:$0xff] %vm686_vm1, %v3505_v49 }
  0xde   : > { %708 = vst.msk [vmem:[#allocation4 + $0xa8] sm:$0xff] %vm686_vm1, %v3505_v49 }
  0xdf   : > { %709 = vst.msk [vmem:[#allocation4 + $0xb0] sm:$0xff] %vm686_vm1, %v3505_v49 }
  0xe0   : > { %710 = vst.msk [vmem:[#allocation4 + $0xb8] sm:$0xff] %vm686_vm1, %v3505_v49 }
  0xe1   : > { %711 = vst.msk [vmem:[#allocation4 + $0xc0] sm:$0xff] %vm686_vm1, %v3505_v49 }
  0xe2   : > { %712 = vst.msk [vmem:[#allocation4 + $0xc8] sm:$0xff] %vm686_vm1, %v3505_v49 }
  0xe3   : > { %713 = vst.msk [vmem:[#allocation4 + $0xd0] sm:$0xff] %vm686_vm1, %v3505_v49 }
  0xe4   : > { %714 = vst.msk [vmem:[#allocation4 + $0xd8] sm:$0xff] %vm686_vm1, %v3505_v49 }
  0xe5   : > { %715 = vst.msk [vmem:[#allocation4 + $0xe0] sm:$0xff] %vm686_vm1, %v3505_v49 }
  0xe6   : > { %716 = vst.msk [vmem:[#allocation4 + $0xe8] sm:$0xff] %vm686_vm1, %v3505_v49 }
  0xe7   : > { %717 = vst.msk [vmem:[#allocation4 + $0xf0] sm:$0xff] %vm686_vm1, %v3505_v49 }
  0xe8   : > { %718 = vst.msk [vmem:[#allocation4 + $0xf8] sm:$0xff] %vm686_vm1, %v3505_v49 }
  0xe9 PF: > { %v798_v50 = vld [vmem:[%s3770_s5 + $0x78] sm:$0xff]  ;;  %vm799_vm2 = vcmask 261120   ;;  %v797_v51 = vld [vmem:[%s3770_s5 + $0x70] sm:$0xff]  ;;  %v796_v52 = vld [vmem:[%s3770_s5 + $0x68] sm:$0xff]  ;;  %vm1745_vm3 = vcmask 7168   ;;  %p3021_p7 = scmp.ne.s32.totalorder %s3470_s19, 1 }
  0xea   : > { %3030 = vmatpush.xpose.msk.msra.mxu2 %vm799_vm2, %v798_v50  ;;  %2973 = vmatpush.xpose.msk.msra.mxu0 %vm799_vm2, %v798_v50  ;;  %v795_v53 = vld [vmem:[%s3770_s5 + $0x60] sm:$0xff]  ;;  %v794_v54 = vld [vmem:[%s3770_s5 + $0x58] sm:$0xff]  ;;  %v793_v55 = vld [vmem:[%s3770_s5 + $0x50] sm:$0xff] }
  0xeb   : > { %3031 = vmatpush.xpose.msk.msra.mxu3 %vm799_vm2, %v798_v50  ;;  %v792_v56 = vld [vmem:[%s3770_s5 + $0x48] sm:$0xff]  ;;  %v791_v57 = vld [vmem:[%s3770_s5 + $0x40] sm:$0xff]  ;;  %v790_v58 = vld [vmem:[%s3770_s5 + $0x38] sm:$0xff] }
  0xec   : > { %v789_v59 = vld [vmem:[%s3770_s5 + $0x30] sm:$0xff]  ;;  %v788_v60 = vld [vmem:[%s3770_s5 + $0x28] sm:$0xff]  ;;  %v787_v61 = vld [vmem:[%s3770_s5 + $0x20] sm:$0xff] }
  0xed   : > { %v786_v62 = vld [vmem:[%s3770_s5 + $0x18] sm:$0xff]  ;;  %v785_v63 = vld [vmem:[%s3770_s5 + $0x10] sm:$0xff]  ;;  %v784_v0 = vld [vmem:[%s3770_s5 + $0x8] sm:$0xff] }
  0xee   : > { %3032 = vmatpush.xpose.msk.msra.mxu2 %vm799_vm2, %v797_v51  ;;  %2974 = vmatpush.xpose.msk.msra.mxu0 %vm799_vm2, %v797_v51  ;;  %v732_v1 = vld [vmem:[%s3777_s29 + $0x68] sm:$0xff]  ;;  %v719_v2 = vld [vmem:[%s3777_s29] sm:$0xff]  ;;  %v733_v8 = vld [vmem:[%s3777_s29 + $0x70] sm:$0xff] }
  0xef   : > { %3033 = vmatpush.xpose.msk.msra.mxu3 %vm799_vm2, %v797_v51  ;;  %v783_v3 = vld [vmem:[%s3770_s5] sm:$0xff]  ;;  %v764_v5 = vmul.f32 0.17677669, %v732_v1  ;;  %v751_v6 = vmul.f32 0.17677669, %v719_v2  ;;  %v720_v9 = vld [vmem:[%s3777_s29 + $0x8] sm:$0xff] }
  0xf0   : > { %v747_v4 = vld [vmem:[%s3777_s29 + $0xe0] sm:$0xff]  ;;  %v748_v10 = vld [vmem:[%s3777_s29 + $0xe8] sm:$0xff]  ;;  %v765_v11 = vmul.f32 0.17677669, %v733_v8  ;;  %v752_v12 = vmul.f32 0.17677669, %v720_v9 }
  0xf1   : > { %v779_v7 = vmul.f32 0.17677669, %v747_v4  ;;  %v780_v13 = vmul.f32 0.17677669, %v748_v10  ;;  %v734_v14 = vld [vmem:[%s3777_s29 + $0x78] sm:$0xff]  ;;  %v721_v15 = vld [vmem:[%s3777_s29 + $0x10] sm:$0xff] }
  0xf2   : > { %3034 = vmatpush.xpose.msk.msra.mxu2 %vm799_vm2, %v796_v52  ;;  %2975 = vmatpush.xpose.msk.msra.mxu0 %vm799_vm2, %v796_v52  ;;  %v749_v16 = vld [vmem:[%s3777_s29 + $0xf0] sm:$0xff]  ;;  %v766_v17 = vmul.f32 0.17677669, %v734_v14  ;;  %v753_v18 = vmul.f32 0.17677669, %v721_v15  ;;  %v735_v20 = vld [vmem:[%s3777_s29 + $0x80] sm:$0xff] }
  0xf3   : > { %3035 = vmatpush.xpose.msk.msra.mxu3 %vm799_vm2, %v796_v52  ;;  %v781_v19 = vmul.f32 0.17677669, %v749_v16  ;;  %v722_v21 = vld [vmem:[%s3777_s29 + $0x18] sm:$0xff]  ;;  %v767_v23 = vmul.f32 0.17677669, %v735_v20  ;;  %v736_v26 = vld [vmem:[%s3777_s29 + $0x88] sm:$0xff] }
  0xf4   : > { %v750_v22 = vld [vmem:[%s3777_s29 + $0xf8] sm:$0xff]  ;;  %v754_v24 = vmul.f32 0.17677669, %v722_v21  ;;  %v723_v27 = vld [vmem:[%s3777_s29 + $0x20] sm:$0xff]  ;;  %v768_v28 = vmul.f32 0.17677669, %v736_v26 }
  0xf5   : > { %v782_v25 = vmul.f32 0.17677669, %v750_v22  ;;  %v755_v29 = vmul.f32 0.17677669, %v723_v27  ;;  %v737_v30 = vld [vmem:[%s3777_s29 + $0x90] sm:$0xff]  ;;  %v724_v31 = vld [vmem:[%s3777_s29 + $0x28] sm:$0xff] }
  0xf6   : > { %3036 = vmatpush.xpose.msk.msra.mxu2 %vm799_vm2, %v795_v53  ;;  %2976 = vmatpush.xpose.msk.msra.mxu0 %vm799_vm2, %v795_v53  ;;  %v769_v32 = vmul.f32 0.17677669, %v737_v30  ;;  %v756_v33 = vmul.f32 0.17677669, %v724_v31  ;;  %v738_v34 = vld [vmem:[%s3777_s29 + $0x98] sm:$0xff]  ;;  %v725_v35 = vld [vmem:[%s3777_s29 + $0x30] sm:$0xff] }
  0xf7   : > { %3037 = vmatpush.xpose.msk.msra.mxu3 %vm799_vm2, %v795_v53  ;;  %v770_v36 = vmul.f32 0.17677669, %v738_v34  ;;  %v757_v37 = vmul.f32 0.17677669, %v725_v35  ;;  %v739_v38 = vld [vmem:[%s3777_s29 + $0xa0] sm:$0xff]  ;;  %v726_v39 = vld [vmem:[%s3777_s29 + $0x38] sm:$0xff] }
  0xf8   : > { %v771_v40 = vmul.f32 0.17677669, %v739_v38  ;;  %v758_v41 = vmul.f32 0.17677669, %v726_v39  ;;  %v740_v42 = vld [vmem:[%s3777_s29 + $0xa8] sm:$0xff]  ;;  %v727_v43 = vld [vmem:[%s3777_s29 + $0x40] sm:$0xff] }
  0xf9   : > { %v772_v44 = vmul.f32 0.17677669, %v740_v42  ;;  %v759_v45 = vmul.f32 0.17677669, %v727_v43  ;;  %v741_v46 = vld [vmem:[%s3777_s29 + $0xb0] sm:$0xff]  ;;  %v728_v47 = vld [vmem:[%s3777_s29 + $0x48] sm:$0xff] }
  0xfa   : > { %3038 = vmatpush.xpose.msk.msra.mxu2 %vm799_vm2, %v794_v54  ;;  %2977 = vmatpush.xpose.msk.msra.mxu0 %vm799_vm2, %v794_v54  ;;  %v773_v48 = vmul.f32 0.17677669, %v741_v46  ;;  %v760_v49 = vmul.f32 0.17677669, %v728_v47  ;;  %v742_v50 = vld [vmem:[%s3777_s29 + $0xb8] sm:$0xff]  ;;  %v729_v51 = vld [vmem:[%s3777_s29 + $0x50] sm:$0xff] }
  0xfb   : > { %3039 = vmatpush.xpose.msk.msra.mxu3 %vm799_vm2, %v794_v54  ;;  %v774_v52 = vmul.f32 0.17677669, %v742_v50  ;;  %v761_v53 = vmul.f32 0.17677669, %v729_v51  ;;  %v743_v54 = vld [vmem:[%s3777_s29 + $0xc0] sm:$0xff]  ;;  %v1072_v20 = vld [vmem:[%s3779_s28 + $0x78] sm:$0xff] }
  0xfc   : > { %v1057_v2 = vld [vmem:[%s3779_s28] sm:$0xff]  ;;  %v1060_v26 = vld [vmem:[%s3779_s28 + $0x18] sm:$0xff]  ;;  %v1062_v39 = vld [vmem:[%s3779_s28 + $0x28] sm:$0xff] }
  0xfd   : > { %v1061_v31 = vld [vmem:[%s3779_s28 + $0x20] sm:$0xff]  ;;  %v1064_v50 = vld [vmem:[%s3779_s28 + $0x38] sm:$0xff] }
  0xfe   : > { %3040 = vmatpush.xpose.msk.msra.mxu2 %vm799_vm2, %v793_v55  ;;  %2978 = vmatpush.xpose.msk.msra.mxu0 %vm799_vm2, %v793_v55 }
  0xff   : > { %3041 = vmatpush.xpose.msk.msra.mxu3 %vm799_vm2, %v793_v55  ;;  %v730_v55 = vld [vmem:[%s3777_s29 + $0x58] sm:$0xff] }
 0x102   : > { %3042 = vmatpush.xpose.msk.msra.mxu2 %vm799_vm2, %v792_v56  ;;  %2979 = vmatpush.xpose.msk.msra.mxu0 %vm799_vm2, %v792_v56 }
 0x103   : > { %3043 = vmatpush.xpose.msk.msra.mxu3 %vm799_vm2, %v792_v56  ;;  %v775_v56 = vmul.f32 0.17677669, %v743_v54 }
 0x106   : > { %3044 = vmatpush.xpose.msk.msra.mxu2 %vm799_vm2, %v791_v57  ;;  %2980 = vmatpush.xpose.msk.msra.mxu0 %vm799_vm2, %v791_v57 }
 0x107   : > { %3045 = vmatpush.xpose.msk.msra.mxu3 %vm799_vm2, %v791_v57  ;;  %v762_v57 = vmul.f32 0.17677669, %v730_v55  ;;  %v1065_v55 = vld [vmem:[%s3779_s28 + $0x40] sm:$0xff] }
 0x10a   : > { %3046 = vmatpush.xpose.msk.msra.mxu2 %vm799_vm2, %v790_v58  ;;  %2981 = vmatpush.xpose.msk.msra.mxu0 %vm799_vm2, %v790_v58 }
 0x10b   : > { %3047 = vmatpush.xpose.msk.msra.mxu3 %vm799_vm2, %v790_v58  ;;  %v744_v58 = vld [vmem:[%s3777_s29 + $0xc8] sm:$0xff] }
 0x10e   : > { %3048 = vmatpush.xpose.msk.msra.mxu2 %vm799_vm2, %v789_v59  ;;  %2982 = vmatpush.xpose.msk.msra.mxu0 %vm799_vm2, %v789_v59 }
 0x10f   : > { %3049 = vmatpush.xpose.msk.msra.mxu3 %vm799_vm2, %v789_v59  ;;  %v731_v59 = vld [vmem:[%s3777_s29 + $0x60] sm:$0xff] }
 0x112   : > { %3050 = vmatpush.xpose.msk.msra.mxu2 %vm799_vm2, %v788_v60  ;;  %2983 = vmatpush.xpose.msk.msra.mxu0 %vm799_vm2, %v788_v60 }
 0x113   : > { %3051 = vmatpush.xpose.msk.msra.mxu3 %vm799_vm2, %v788_v60  ;;  %v776_v60 = vmul.f32 0.17677669, %v744_v58 }
 0x116   : > { %3052 = vmatpush.xpose.msk.msra.mxu2 %vm799_vm2, %v787_v61  ;;  %2984 = vmatpush.xpose.msk.msra.mxu0 %vm799_vm2, %v787_v61 }
 0x117   : > { %3053 = vmatpush.xpose.msk.msra.mxu3 %vm799_vm2, %v787_v61  ;;  %v763_v61 = vmul.f32 0.17677669, %v731_v59 }
 0x11a   : > { %3054 = vmatpush.xpose.msk.msra.mxu2 %vm799_vm2, %v786_v62  ;;  %2985 = vmatpush.xpose.msk.msra.mxu0 %vm799_vm2, %v786_v62 }
 0x11b   : > { %3055 = vmatpush.xpose.msk.msra.mxu3 %vm799_vm2, %v786_v62  ;;  %v745_v62 = vld [vmem:[%s3777_s29 + $0xd0] sm:$0xff] }
 0x11e   : > { %3056 = vmatpush.xpose.msk.msra.mxu2 %vm799_vm2, %v785_v63  ;;  %2986 = vmatpush.xpose.msk.msra.mxu0 %vm799_vm2, %v785_v63 }
 0x11f   : > { %3057 = vmatpush.xpose.msk.msra.mxu3 %vm799_vm2, %v785_v63  ;;  %v777_v63 = vmul.f32 0.17677669, %v745_v62 }
 0x122   : > { %3058 = vmatpush.xpose.msk.msra.mxu2 %vm799_vm2, %v784_v0  ;;  %2987 = vmatpush.xpose.msk.msra.mxu0 %vm799_vm2, %v784_v0 }
 0x123   : > { %3059 = vmatpush.xpose.msk.msra.mxu3 %vm799_vm2, %v784_v0  ;;  %v746_v0 = vld [vmem:[%s3777_s29 + $0xd8] sm:$0xff] }
 0x124   : > { %v778_v1 = vmul.f32 0.17677669, %v746_v0 }
 0x126   : > { %3060 = vmatpush.xpose.msk.msra.mxu2 %vm799_vm2, %v783_v3  ;;  %2988 = vmatpush.xpose.msk.msra.mxu0 %vm799_vm2, %v783_v3 }
 0x127   : > { %3061 = vmatpush.xpose.msk.msra.mxu3 %vm799_vm2, %v783_v3 }
 0x129   : > { %3002 = vmatmul.msk.f32.vlgmr.msra.gmra.mxu2 %vm799_vm2, %v764_v5  ;;  %2989 = vmatmul.msk.f32.vlgmr.msra.gmra.mxu0 %vm799_vm2, %v751_v6  ;;  %v1070_v5 = vld [vmem:[%s3779_s28 + $0x68] sm:$0xff] }
 0x12a   : > { %3017 = vmatmul.msk.f32.vlgmr.msra.gmra.mxu3 %vm799_vm2, %v779_v7  ;;  %v1058_v7 = vld [vmem:[%s3779_s28 + $0x8] sm:$0xff] }
 0x131   : > { %3003 = vmatmul.msk.f32.gmra.mxu2 %vm799_vm2, %v765_v11  ;;  %2990 = vmatmul.msk.f32.gmra.mxu0 %vm799_vm2, %v752_v12  ;;  %v4084_v12 = vld [vmem:[%s3779_s28 + $0x60] sm:$0xff] }
 0x132   : > { %3018 = vmatmul.msk.f32.gmra.mxu3 %vm799_vm2, %v780_v13  ;;  %v1071_v13 = vld [vmem:[%s3779_s28 + $0x70] sm:$0xff] }
 0x139   : > { %3004 = vmatmul.msk.f32.gmra.mxu2 %vm799_vm2, %v766_v17  ;;  %2991 = vmatmul.msk.f32.gmra.mxu0 %vm799_vm2, %v753_v18 }
 0x13a   : > { %3019 = vmatmul.msk.f32.gmra.mxu3 %vm799_vm2, %v781_v19  ;;  %v1059_v19 = vld [vmem:[%s3779_s28 + $0x10] sm:$0xff] }
 0x141   : > { %3005 = vmatmul.msk.f32.gmra.mxu2 %vm799_vm2, %v767_v23  ;;  %2992 = vmatmul.msk.f32.gmra.mxu0 %vm799_vm2, %v754_v24 }
 0x142   : > { %3020 = vmatmul.msk.f32.gmra.mxu3 %vm799_vm2, %v782_v25 }
 0x149   : > { %3006 = vmatmul.msk.f32.gmra.mxu2 %vm799_vm2, %v768_v28  ;;  %2993 = vmatmul.msk.f32.gmra.mxu0 %vm799_vm2, %v755_v29 }
 0x151   : > { %3007 = vmatmul.msk.f32.gmra.mxu2 %vm799_vm2, %v769_v32  ;;  %2994 = vmatmul.msk.f32.gmra.mxu0 %vm799_vm2, %v756_v33 }
 0x159   : > { %3008 = vmatmul.msk.f32.gmra.mxu2 %vm799_vm2, %v770_v36  ;;  %2995 = vmatmul.msk.f32.gmra.mxu0 %vm799_vm2, %v757_v37 }
 0x161   : > { %3009 = vmatmul.msk.f32.gmra.mxu2 %vm799_vm2, %v771_v40  ;;  %2996 = vmatmul.msk.f32.gmra.mxu0 %vm799_vm2, %v758_v41 }
 0x169   : > { %3010 = vmatmul.msk.f32.gmra.mxu2 %vm799_vm2, %v772_v44  ;;  %2997 = vmatmul.msk.f32.gmra.mxu0 %vm799_vm2, %v759_v45  ;;  %v1063_v45 = vld [vmem:[%s3779_s28 + $0x30] sm:$0xff] }
 0x171   : > { %3011 = vmatmul.msk.f32.gmra.mxu2 %vm799_vm2, %v773_v48  ;;  %2998 = vmatmul.msk.f32.gmra.mxu0 %vm799_vm2, %v760_v49 }
 0x179   : > { %3012 = vmatmul.msk.f32.gmra.mxu2 %vm799_vm2, %v774_v52  ;;  %2999 = vmatmul.msk.f32.gmra.mxu0 %vm799_vm2, %v761_v53 }
 0x181   : > { %3013 = vmatmul.msk.f32.gmra.mxu2 %vm799_vm2, %v775_v56  ;;  %3000 = vmatmul.msk.f32.gmra.mxu0 %vm799_vm2, %v762_v57 }
 0x189   : > { %3014 = vmatmul.msk.f32.gmra.mxu2 %vm799_vm2, %v776_v60  ;;  %3001 = vmatmul.msk.f32.gmra.mxu0 %vm799_vm2, %v763_v61  ;;  %v1066_v60 = vld [vmem:[%s3779_s28 + $0x48] sm:$0xff] }
 0x191   : > { %3015 = vmatmul.msk.f32.gmra.mxu2 %vm799_vm2, %v777_v63 }
 0x199   : > { %3016 = vmatmul.msk.f32.gmra.mxu2 %vm799_vm2, %v778_v1  ;;  %v1067_v1 = vld [vmem:[%s3779_s28 + $0x50] sm:$0xff] }
 0x1a6   : > { %v961_v3 = vpop.f32.mrf.mxu0 }
 0x1a7   : > { %v4073_v4 = vadd.f32 %v1057_v2, %v961_v3 }
 0x1a9   : > { %1137 = vmax.xlane.f32.xlu0 %v4073_v4 }
 0x1ac   : > { %v1000_v6 = vpop.f32.mrf.mxu2 }
 0x1ad   : > { %v4078_v8 = vadd.f32 %v1070_v5, %v1000_v6  ;;  %v1045_v10 = vpop.f32.mrf.mxu3 }
 0x1ae   : > { %v964_v9 = vpop.f32.mrf.mxu0  ;;  %v4089_v14 = vadd.f32 %v4084_v12, %v1045_v10 }
 0x1af   : > { %1163 = vmax.xlane.f32.xlu1 %v4078_v8  ;;  %v4081_v11 = vadd.f32 %v1058_v7, %v964_v9 }
 0x1b1   : > { %1139 = vmax.xlane.f32.xlu0 %v4081_v11 }
 0x1b4   : > { %v1003_v15 = vpop.f32.mrf.mxu2 }
 0x1b5   : > { %v4091_v16 = vadd.f32 %v1071_v13, %v1003_v15  ;;  %v1048_v18 = vpop.f32.mrf.mxu3 }
 0x1b6   : > { %v967_v17 = vpop.f32.mrf.mxu0  ;;  %v4099_v23 = vadd.f32 %v1070_v5, %v1048_v18 }
 0x1b7   : > { %1193 = vmax.xlane.f32.xlu1 %v4089_v14  ;;  %1165 = vmax.xlane.f32.xlu2 %v4091_v16  ;;  %v4097_v21 = vadd.f32 %v1059_v19, %v967_v17  ;;  %v3506_v17 = vmov 0  }
 0x1b8   : > { %3203 = vset.pattern.permute.xlu1 %v3506_v17  ;;  %3202 = vset.pattern.permute.xlu2 %v3506_v17 }
 0x1b9   : > { %3204 = vset.pattern.permute.xlu0 %v3506_v17 }
 0x1bc   : > { %v1006_v22 = vpop.f32.mrf.mxu2 }
 0x1bd   : > { %v4101_v24 = vadd.f32 %v1072_v20, %v1006_v22  ;;  %v1051_v27 = vpop.f32.mrf.mxu3 }
 0x1be   : > { %v970_v25 = vpop.f32.mrf.mxu0  ;;  %v4109_v29 = vadd.f32 %v1071_v13, %v1051_v27 }
 0x1bf   : > { %5250 = vst [vmem:[#allocation16_spill] sm:$0xff] %v4101_v24  ;;  %1141 = vmax.xlane.f32.xlu1 %v4097_v21  ;;  %1167 = vmax.xlane.f32.xlu0 %v4101_v24  ;;  %v4107_v28 = vadd.f32 %v1060_v26, %v970_v25 }
 0x1c0   : > { %1195 = vmax.xlane.f32.xlu2 %v4099_v23  ;;  %5251 = vst [vmem:[#allocation17_spill] sm:$0xff] %v4109_v29 }
 0x1c4   : > { %v1009_v30 = vpop.f32.mrf.mxu2 }
 0x1c5   : > { %v4117_v35 = vadd.f32 %v1057_v2, %v1009_v30  ;;  %v1054_v38 = vpop.f32.mrf.mxu3 }
 0x1c6   : > { %v973_v32 = vpop.f32.mrf.mxu0  ;;  %v4124_v40 = vadd.f32 %v1072_v20, %v1054_v38  ;;  %v4199_v38 = vld [vmem:[#allocation2 + $0x8] sm:$0xff] }
 0x1c7   : > { %1143 = vmax.xlane.f32.xlu1 %v4107_v28  ;;  %1197 = vmax.xlane.f32.xlu0 %v4109_v29  ;;  %v4114_v33 = vadd.f32 %v1061_v31, %v973_v32  ;;  %5252 = vst [vmem:[#allocation18_spill] sm:$0xff] %v4117_v35 }
 0x1c8   : > { %5254 = vst [vmem:[#allocation20_spill] sm:$0xff] %v4124_v40 }
 0x1c9   : > { %1145 = vmax.xlane.f32.xlu2 %v4114_v33 }
 0x1cc   : > { %v1012_v34 = vpop.f32.mrf.mxu2 }
 0x1cd   : > { %v4119_v36 = vadd.f32 %v1058_v7, %v1012_v34  ;;  %v1068_v7 = vld [vmem:[%s3779_s28 + $0x58] sm:$0xff]  ;;  %v4197_v34 = vld [vmem:[#allocation2 + $0x68] sm:$0xff] }
 0x1ce   : > { %v976_v37 = vpop.f32.mrf.mxu0 }
 0x1cf   : > { %5253 = vst [vmem:[#allocation19_spill] sm:$0xff] %v4119_v36  ;;  %1169 = vmax.xlane.f32.xlu1 %v4117_v35  ;;  %v4128_v43 = vadd.f32 %v1062_v39, %v976_v37 }
 0x1d1   : > { %1171 = vmax.xlane.f32.xlu2 %v4119_v36  ;;  %v1791_v36 = vld [vmem:[%s3775_s14 + $0x68] sm:$0xff] }
 0x1d4   : > { %v1015_v41 = vpop.f32.mrf.mxu2 }
 0x1d5   : > { %v4126_v42 = vadd.f32 %v1059_v19, %v1015_v41 }
 0x1d6   : > { %v979_v44 = vpop.f32.mrf.mxu0 }
 0x1d7   : > { %5255 = vst [vmem:[#allocation21_spill] sm:$0xff] %v4126_v42  ;;  %1199 = vmax.xlane.f32.xlu1 %v4124_v40  ;;  %1173 = vmax.xlane.f32.xlu0 %v4126_v42  ;;  %v4134_v46 = vadd.f32 %v1063_v45, %v979_v44 }
 0x1d9   : > { %1147 = vmax.xlane.f32.xlu2 %v4128_v43 }
 0x1dc   : > { %v1018_v47 = vpop.f32.mrf.mxu2 }
 0x1dd   : > { %v4136_v48 = vadd.f32 %v1060_v26, %v1018_v47  ;;  %v4185_v26 = vld [vmem:[#allocation2] sm:$0xff] }
 0x1de   : > { %v982_v49 = vpop.f32.mrf.mxu0  ;;  %v4214_v47 = vld [vmem:[#allocation2 + $0xe0] sm:$0xff] }
 0x1df   : > { %5256 = vst [vmem:[#allocation22_spill] sm:$0xff] %v4136_v48  ;;  %1175 = vmax.xlane.f32.xlu1 %v4136_v48  ;;  %1149 = vmax.xlane.f32.xlu0 %v4134_v46  ;;  %v4141_v51 = vadd.f32 %v1064_v50, %v982_v49  ;;  %v4216_v49 = vld [vmem:[#allocation2 + $0x70] sm:$0xff] }
 0x1e4   : > { %v1021_v52 = vpop.f32.mrf.mxu2 }
 0x1e5   : > { %v4143_v53 = vadd.f32 %v1061_v31, %v1021_v52 }
 0x1e6   : > { %v985_v54 = vpop.f32.mrf.mxu0 }
 0x1e7   : > { %5257 = vst [vmem:[#allocation23_spill] sm:$0xff] %v4143_v53  ;;  %1177 = vmax.xlane.f32.xlu2 %v4143_v53  ;;  %1151 = vmax.xlane.f32.xlu1 %v4141_v51  ;;  %v4148_v56 = vadd.f32 %v1065_v55, %v985_v54 }
 0x1ec   : > { %v1024_v57 = vpop.f32.mrf.mxu2 }
 0x1ed   : > { %v4150_v58 = vadd.f32 %v1062_v39, %v1024_v57 }
 0x1ee   : > { %v988_v59 = vpop.f32.mrf.mxu0 }
 0x1ef   : > { %1153 = vmax.xlane.f32.xlu2 %v4148_v56  ;;  %1179 = vmax.xlane.f32.xlu0 %v4150_v58  ;;  %v4155_v61 = vadd.f32 %v1066_v60, %v988_v59 }
 0x1f4   : > { %v1027_v62 = vpop.f32.mrf.mxu2 }
 0x1f5   : > { %v4157_v63 = vadd.f32 %v1063_v45, %v1027_v62  ;;  %v4234_v62 = vld [vmem:[#allocation2 + $0x78] sm:$0xff] }
 0x1f6   : > { %v991_v0 = vpop.f32.mrf.mxu0 }
 0x1f7   : > { %1181 = vmax.xlane.f32.xlu1 %v4157_v63  ;;  %1155 = vmax.xlane.f32.xlu0 %v4155_v61  ;;  %v4162_v2 = vadd.f32 %v1067_v1, %v991_v0  ;;  %v4236_v0 = vld [vmem:[#allocation2 + $0xe8] sm:$0xff] }
 0x1f8   : > { %5265 = vst [vmem:[#allocation31_spill] sm:$0xff] %v4236_v0 }
 0x1f9   : > { %5258 = vst [vmem:[#allocation24_spill] sm:$0xff] %v4162_v2 }
 0x1fc   : > { %v1030_v3 = vpop.f32.mrf.mxu2 }
 0x1fd   : > { %v4164_v5 = vadd.f32 %v1064_v50, %v1030_v3 }
 0x1fe   : > { %v994_v6 = vpop.f32.mrf.mxu0 }
 0x1ff   : > { %1183 = vmax.xlane.f32.xlu2 %v4164_v5  ;;  %1157 = vmax.xlane.f32.xlu1 %v4162_v2  ;;  %v4169_v9 = vadd.f32 %v1068_v7, %v994_v6 }
 0x201   : > { %5259 = vst [vmem:[#allocation25_spill] sm:$0xff] %v4169_v9 }
 0x204   : > { %v1033_v10 = vpop.f32.mrf.mxu2 }
 0x205   : > { %v4171_v13 = vadd.f32 %v1065_v55, %v1033_v10 }
 0x206   : > { %v997_v15 = vpop.f32.mrf.mxu0 }
 0x207   : > { %5260 = vst [vmem:[#allocation26_spill] sm:$0xff] %v4171_v13  ;;  %1159 = vmax.xlane.f32.xlu2 %v4169_v9  ;;  %1185 = vmax.xlane.f32.xlu0 %v4171_v13  ;;  %v4176_v18 = vadd.f32 %v4084_v12, %v997_v15  ;;  %v1783_v13 = vld [vmem:[%s3775_s14 + $0x28] sm:$0xff]  ;;  %v1782_v9 = vld [vmem:[%s3775_s14 + $0x20] sm:$0xff] }
 0x209   : > { %5261 = vst [vmem:[#allocation27_spill] sm:$0xff] %v4176_v18 }
 0x20c   : > { %v1036_v19 = vpop.f32.mrf.mxu2 }
 0x20d   : > { %v4178_v20 = vadd.f32 %v1066_v60, %v1036_v19  ;;  %v1107_v60 = vld [vmem:[#allocation2 + $0x10] sm:$0xff]  ;;  %v4282_v19 = vld [vmem:[#allocation2 + $0x88] sm:$0xff] }
 0x20f   : > { %5262 = vst [vmem:[#allocation28_spill] sm:$0xff] %v4178_v20  ;;  %1187 = vmax.xlane.f32.xlu1 %v4178_v20  ;;  %1161 = vmax.xlane.f32.xlu0 %v4176_v18 }
 0x214   : > { %v1039_v22 = vpop.f32.mrf.mxu2 }
 0x215   : > { %v4182_v25 = vadd.f32 %v1067_v1, %v1039_v22  ;;  %v4255_v22 = vld [vmem:[#allocation2 + $0x18] sm:$0xff] }
 0x217   : > { %5263 = vst [vmem:[#allocation29_spill] sm:$0xff] %v4182_v25  ;;  %1189 = vmax.xlane.f32.xlu2 %v4182_v25 }
 0x21c   : > { %v1042_v27 = vpop.f32.mrf.mxu2  ;;  %v1138_v30 = vpop.xlane.xlu0 %1137 }
 0x21d   : > { %v4187_v31 = vadd.f32 %v1068_v7, %v1042_v27  ;;  %v4190_v12 = vmax.f32 %v4185_v26, %v1138_v30  ;;  %v4257_v27 = vld [vmem:[#allocation2 + $0xf0] sm:$0xff] }
 0x21e   : > { %5267 = vst [vmem:[#allocation33_spill] sm:$0xff] %v4257_v27 }
 0x21f   : > { %5264 = vst [vmem:[#allocation30_spill] sm:$0xff] %v4187_v31  ;;  %1191 = vmax.xlane.f32.xlu0 %v4187_v31 }
 0x220   : > { %2195 = vst.msk [vmem:[#allocation2] sm:$0xff] %vm1745_vm3, %v4190_v12 }
 0x222   : > { %v1164_v37 = vpop.xlane.xlu1 %1163 }
 0x223   : > { %v4202_v39 = vmax.f32 %v4197_v34, %v1164_v37 }
 0x224   : > { %v1140_v41 = vpop.xlane.xlu0 %1139 }
 0x225   : > { %2208 = vst.msk [vmem:[#allocation2 + $0x68] sm:$0xff] %vm1745_vm3, %v4202_v39  ;;  %v4209_v45 = vmax.f32 %v4199_v38, %v1140_v41  ;;  %v4259_v41 = vld [vmem:[#allocation2 + $0x20] sm:$0xff] }
 0x227   : > { %2196 = vst.msk [vmem:[#allocation2 + $0x8] sm:$0xff] %vm1745_vm3, %v4209_v45 }
 0x228   : > { %1396 = vperm.xlu1 %3203, %v4202_v39  }
 0x22a   : > { %v1194_v50 = vpop.xlane.xlu1 %1193  ;;  %v1166_v52 = vpop.xlane.xlu2 %1165 }
 0x22b   : > { %v4219_v54 = vmax.f32 %v4214_v47, %v1194_v50  ;;  %v4222_v55 = vmax.f32 %v4216_v49, %v1166_v52 }
 0x22d   : > { %2223 = vst.msk [vmem:[#allocation2 + $0xe0] sm:$0xff] %vm1745_vm3, %v4219_v54 }
 0x22e   : > { %2209 = vst.msk [vmem:[#allocation2 + $0x70] sm:$0xff] %vm1745_vm3, %v4222_v55 }
 0x22f   : > { %1331 = vperm.xlu2 %3202, %v4190_v12  }
 0x230   : > { %1471 = vperm.xlu1 %3203, %v4219_v54  }
 0x232   : > { %v1142_v1 = vpop.xlane.xlu1 %1141  ;;  %v1168_v3 = vpop.xlane.xlu0 %1167 }
 0x233   : > { %v1203_v6 = vmax.f32 %v1107_v60, %v1142_v1  ;;  %1336 = vperm.xlu0 %3204, %v4209_v45   ;;  %v4240_v7 = vmax.f32 %v4234_v62, %v1168_v3  ;;  %v1196_v10 = vpop.xlane.xlu2 %1195 }
 0x234   : > { %v4243_v15 = vmax.f32 %v4236_v0, %v1196_v10 }
 0x235   : > { %2197 = vst.msk [vmem:[#allocation2 + $0x10] sm:$0xff] %vm1745_vm3, %v1203_v6 }
 0x236   : > { %5266 = vst [vmem:[#allocation32_spill] sm:$0xff] %v4243_v15 }
 0x237   : > { %2210 = vst.msk [vmem:[#allocation2 + $0x78] sm:$0xff] %vm1745_vm3, %v4240_v7  ;;  %1406 = vperm.xlu2 %3202, %v4240_v7  }
 0x238   : > { %2224 = vst.msk [vmem:[#allocation2 + $0xe8] sm:$0xff] %vm1745_vm3, %v4243_v15  ;;  %1341 = vperm.xlu1 %3203, %v1203_v6  }
 0x23a   : > { %v1144_v30 = vpop.xlane.xlu1 %1143  ;;  %v1198_v37 = vpop.xlane.xlu0 %1197 }
 0x23b   : > { %v4262_v50 = vmax.f32 %v4255_v22, %v1144_v30  ;;  %1401 = vperm.xlu0 %3204, %v4222_v55   ;;  %v4266_v52 = vmax.f32 %v4257_v27, %v1198_v37  ;;  %v4280_v30 = vld [vmem:[#allocation2 + $0x80] sm:$0xff] }
 0x23c   : > { %v1146_v1 = vpop.xlane.xlu2 %1145 }
 0x23d   : > { %5268 = vst [vmem:[#allocation34_spill] sm:$0xff] %v4266_v52  ;;  %v4273_v10 = vmax.f32 %v4259_v41, %v1146_v1  ;;  %v1235_v1 = vsub.f32 %v1107_v60, %v1203_v6  ;;  %v4301_v6 = vld [vmem:[#allocation2 + $0xf8] sm:$0xff] }
 0x23e   : > { %2198 = vst.msk [vmem:[#allocation2 + $0x18] sm:$0xff] %vm1745_vm3, %v4262_v50 }
 0x23f   : > { %2225 = vst.msk [vmem:[#allocation2 + $0xf0] sm:$0xff] %vm1745_vm3, %v4266_v52  ;;  %1481 = vperm.xlu2 %3202, %v4266_v52   ;;  %v1269_v60 = vmul.f32 1.442695, %v1235_v1 }
 0x240   : > { %2199 = vst.msk [vmem:[#allocation2 + $0x20] sm:$0xff] %vm1745_vm3, %v4273_v10 }
 0x241   : > { %5269 = vst [vmem:[#allocation35_spill] sm:$0xff] %v4301_v6  ;;  %3205 = vpow2.f32 %v1269_v60  ;;  %v4331_v60 = vld [vmem:[#allocation2 + $0x30] sm:$0xff] }
 0x242   : > { %v1170_v37 = vpop.xlane.xlu1 %1169 }
 0x243   : > { %v4285_v57 = vmax.f32 %v4280_v30, %v1170_v37  ;;  %1476 = vperm.xlu0 %3204, %v4243_v15   ;;  %v4303_v37 = vld [vmem:[#allocation2 + $0x90] sm:$0xff]  ;;  %v4305_v15 = vld [vmem:[#allocation2 + $0x28] sm:$0xff] }
 0x244   : > { %v1172_v3 = vpop.xlane.xlu2 %1171 }
 0x245   : > { %2211 = vst.msk [vmem:[#allocation2 + $0x80] sm:$0xff] %vm1745_vm3, %v4285_v57  ;;  %1411 = vperm.xlu1 %3203, %v4285_v57   ;;  %v4294_v17 = vmax.f32 %v4282_v19, %v1172_v3 }
 0x247   : > { %2212 = vst.msk [vmem:[#allocation2 + $0x88] sm:$0xff] %vm1745_vm3, %v4294_v17  ;;  %1346 = vperm.xlu2 %3202, %v4262_v50   ;;  %v4333_v1 = vpop.eup %3205 }
 0x248   : > { %5271 = vst [vmem:[#allocation37_spill] sm:$0xff] %v4333_v1 }
 0x24a   : > { %v1200_v59 = vpop.xlane.xlu1 %1199  ;;  %v1174_v32 = vpop.xlane.xlu0 %1173 }
 0x24b   : > { %v4308_v3 = vmax.f32 %v4301_v6, %v1200_v59  ;;  %1416 = vperm.xlu0 %3204, %v4294_v17   ;;  %v4312_v44 = vmax.f32 %v4303_v37, %v1174_v32  ;;  %v4329_v32 = vld [vmem:[#allocation2 + $0x98] sm:$0xff] }
 0x24c   : > { %v1148_v0 = vpop.xlane.xlu2 %1147 }
 0x24d   : > { %5270 = vst [vmem:[#allocation36_spill] sm:$0xff] %v4308_v3  ;;  %1486 = vperm.xlu1 %3203, %v4308_v3   ;;  %v4322_v59 = vmax.f32 %v4305_v15, %v1148_v0 }
 0x24e   : > { %2226 = vst.msk [vmem:[#allocation2 + $0xf8] sm:$0xff] %vm1745_vm3, %v4308_v3 }
 0x24f   : > { %2213 = vst.msk [vmem:[#allocation2 + $0x90] sm:$0xff] %vm1745_vm3, %v4312_v44  ;;  %1351 = vperm.xlu2 %3202, %v4273_v10  }
 0x250   : > { %2200 = vst.msk [vmem:[#allocation2 + $0x28] sm:$0xff] %vm1745_vm3, %v4322_v59 }
 0x252   : > { %v1176_v27 = vpop.xlane.xlu1 %1175  ;;  %v1150_v3 = vpop.xlane.xlu0 %1149 }
 0x253   : > { %1951 = vperm.xlu0 %3204, %v4333_v1   ;;  %v4337_v0 = vmax.f32 %v4329_v32, %v1176_v27  ;;  %v4340_v52 = vmax.f32 %v4331_v60, %v1150_v3  ;;  %v1234_v27 = vsub.f32 %v4199_v38, %v4209_v45  ;;  %v4352_v1 = vld [vmem:[#allocation2 + $0xa0] sm:$0xff]  ;;  %v4354_v3 = vld [vmem:[#allocation2 + $0x38] sm:$0xff]  ;;  %v1237_v38 = vsub.f32 %v4259_v41, %v4273_v10  ;;  %v4376_v45 = vld [vmem:[#allocation2 + $0xa8] sm:$0xff] }
 0x254   : > { %v5272_v41 = vsub.f32 %v4185_v26, %v4190_v12  ;;  %v1789_v26 = vld [vmem:[%s3775_s14 + $0x58] sm:$0xff] }
 0x255   : > { %1356 = vperm.xlu1 %3203, %v4322_v59   ;;  %2214 = vst.msk [vmem:[#allocation2 + $0x98] sm:$0xff] %vm1745_vm3, %v4337_v0  ;;  %v1267_v48 = vmul.f32 1.442695, %v1234_v27  ;;  %v1792_v27 = vld [vmem:[%s3775_s14 + $0x70] sm:$0xff]  ;;  %v1273_v42 = vmul.f32 1.442695, %v1237_v38 }
 0x256   : > { %2201 = vst.msk [vmem:[#allocation2 + $0x30] sm:$0xff] %vm1745_vm3, %v4340_v52  ;;  %v1265_v10 = vmul.f32 1.442695, %v5272_v41  ;;  %v1788_v38 = vld [vmem:[%s3775_s14 + $0x50] sm:$0xff] }
 0x257   : > { %1421 = vperm.xlu2 %3202, %v4312_v44   ;;  %3207 = vpow2.f32 %v1267_v48 }
 0x258   : > { %3209 = vpow2.f32 %v1265_v10 }
 0x259   : > { %3211 = vpow2.f32 %v1273_v42  ;;  %v1787_v42 = vld [vmem:[%s3775_s14 + $0x48] sm:$0xff] }
 0x25a   : > { %v1178_v31 = vpop.xlane.xlu2 %1177  ;;  %v1152_v25 = vpop.xlane.xlu1 %1151 }
 0x25b   : > { %v4357_v6 = vmax.f32 %v4352_v1, %v1178_v31  ;;  %v4360_v53 = vmax.f32 %v4354_v3, %v1152_v25  ;;  %v1793_v25 = vld [vmem:[%s3775_s14 + $0x78] sm:$0xff]  ;;  %v4374_v31 = vld [vmem:[#allocation2 + $0x40] sm:$0xff] }
 0x25c   : > { %1794 = vmatpush.msrb.mxu0 %v1793_v25  ;;  %3062 = vmatpush.msra.mxu1 %v1793_v25 }
 0x25d   : > { %2215 = vst.msk [vmem:[#allocation2 + $0xa0] sm:$0xff] %vm1745_vm3, %v4357_v6  ;;  %1426 = vperm.xlu1 %3203, %v4337_v0   ;;  %1431 = vperm.xlu0 %3204, %v4357_v6   ;;  %v4397_v12 = vpop.eup %3207 }
 0x25e   : > { %2202 = vst.msk [vmem:[#allocation2 + $0x38] sm:$0xff] %vm1745_vm3, %v4360_v53  ;;  %3063 = vmatpush.msrb.mxu3 %v1793_v25  ;;  %1795 = vmatpush.msrb.mxu0 %v1792_v27  ;;  %v1790_v25 = vld [vmem:[%s3775_s14 + $0x60] sm:$0xff]  ;;  %v4408_v10 = vpop.eup %3209 }
 0x25f   : > { %1361 = vperm.xlu2 %3202, %v4340_v52   ;;  %3064 = vmatpush.msra.mxu1 %v1792_v27  ;;  %5273 = vst [vmem:[#allocation38_spill] sm:$0xff] %v4397_v12 }
 0x260   : > { %3065 = vmatpush.msrb.mxu3 %v1792_v27  ;;  %1796 = vmatpush.msrb.mxu0 %v1791_v36  ;;  %5274 = vst [vmem:[#allocation39_spill] sm:$0xff] %v4408_v10 }
 0x261   : > { %3066 = vmatpush.msra.mxu1 %v1791_v36 }
 0x262   : > { %v1154_v20 = vpop.xlane.xlu2 %1153  ;;  %v1180_v40 = vpop.xlane.xlu0 %1179  ;;  %3067 = vmatpush.msrb.mxu3 %v1791_v36  ;;  %1797 = vmatpush.msrb.mxu0 %v1790_v25  ;;  %v4402_v36 = vld [vmem:[#allocation2 + $0xb0] sm:$0xff] }
 0x263   : > { %v4384_v48 = vmax.f32 %v4374_v31, %v1154_v20  ;;  %v4387_v18 = vmax.f32 %v4376_v45, %v1180_v40  ;;  %3068 = vmatpush.msra.mxu1 %v1790_v25  ;;  %v4404_v40 = vld [vmem:[#allocation2 + $0x48] sm:$0xff] }
 0x264   : > { %3069 = vmatpush.msrb.mxu3 %v1790_v25  ;;  %1798 = vmatpush.msrb.mxu0 %v1789_v26 }
 0x265   : > { %2203 = vst.msk [vmem:[#allocation2 + $0x40] sm:$0xff] %vm1745_vm3, %v4384_v48  ;;  %1366 = vperm.xlu1 %3203, %v4360_v53   ;;  %1371 = vperm.xlu0 %3204, %v4384_v48  }
 0x266   : > { %2216 = vst.msk [vmem:[#allocation2 + $0xa8] sm:$0xff] %vm1745_vm3, %v4387_v18  ;;  %3070 = vmatpush.msra.mxu1 %v1789_v26  ;;  %3071 = vmatpush.msrb.mxu3 %v1789_v26  ;;  %v1786_v26 = vld [vmem:[%s3775_s14 + $0x40] sm:$0xff] }
 0x267   : > { %1946 = vperm.xlu2 %3202, %v4397_v12   ;;  %1799 = vmatpush.msrb.mxu0 %v1788_v38  ;;  %v4416_v12 = vpop.eup %3211 }
 0x268   : > { %3072 = vmatpush.msra.mxu1 %v1788_v38  ;;  %3073 = vmatpush.msrb.mxu3 %v1788_v38  ;;  %5275 = vst [vmem:[#allocation40_spill] sm:$0xff] %v4416_v12  ;;  %v1238_v38 = vsub.f32 %v4305_v15, %v4322_v59 }
 0x269   : > { %1800 = vmatpush.msrb.mxu0 %v1787_v42 }
 0x26a   : > { %v1182_v27 = vpop.xlane.xlu1 %1181  ;;  %v1156_v41 = vpop.xlane.xlu0 %1155  ;;  %3074 = vmatpush.msra.mxu1 %v1787_v42  ;;  %3075 = vmatpush.msrb.mxu3 %v1787_v42  ;;  %v1275_v59 = vmul.f32 1.442695, %v1238_v38  ;;  %v4458_v38 = vld [vmem:[#allocation2 + $0xc0] sm:$0xff] }
 0x26b   : > { %v4411_v20 = vmax.f32 %v4402_v36, %v1182_v27  ;;  %v4414_v25 = vmax.f32 %v4404_v40, %v1156_v41  ;;  %1801 = vmatpush.msrb.mxu0 %v1786_v26  ;;  %v1785_v27 = vld [vmem:[%s3775_s14 + $0x38] sm:$0xff] }
 0x26c   : > { %3076 = vmatpush.msra.mxu1 %v1786_v26  ;;  %v4429_v41 = vld [vmem:[#allocation2 + $0xb8] sm:$0xff]  ;;  %3077 = vmatpush.msrb.mxu3 %v1786_v26  ;;  %v1236_v26 = vsub.f32 %v4255_v22, %v4262_v50  ;;  %v1780_v22 = vld [vmem:[%s3775_s14 + $0x10] sm:$0xff]  ;;  %3213 = vpow2.f32 %v1275_v59  ;;  %v1241_v50 = vsub.f32 %v4374_v31, %v4384_v48  ;;  %v1779_v31 = vld [vmem:[%s3775_s14 + $0x8] sm:$0xff] }
 0x26d   : > { %1941 = vperm.xlu1 %3203, %v4408_v10   ;;  %1961 = vperm.xlu0 %3204, %v4416_v12   ;;  %2217 = vst.msk [vmem:[#allocation2 + $0xb0] sm:$0xff] %vm1745_vm3, %v4411_v20  ;;  %v4431_v12 = vld [vmem:[#allocation2 + $0x50] sm:$0xff] }
 0x26e   : > { %2204 = vst.msk [vmem:[#allocation2 + $0x48] sm:$0xff] %vm1745_vm3, %v4414_v25  ;;  %1802 = vmatpush.msrb.mxu0 %v1785_v27  ;;  %v1784_v10 = vld [vmem:[%s3775_s14 + $0x30] sm:$0xff]  ;;  %3078 = vmatpush.msra.mxu1 %v1785_v27  ;;  %v1281_v48 = vmul.f32 1.442695, %v1241_v50 }
 0x26f   : > { %1436 = vperm.xlu2 %3202, %v4387_v18   ;;  %3079 = vmatpush.msrb.mxu3 %v1785_v27  ;;  %v4456_v27 = vld [vmem:[#allocation2 + $0x58] sm:$0xff] }
 0x270   : > { %1803 = vmatpush.msrb.mxu0 %v1784_v10  ;;  %3080 = vmatpush.msra.mxu1 %v1784_v10 }
 0x271   : > { %3081 = vmatpush.msrb.mxu3 %v1784_v10 }
 0x272   : > { %v1184_v29 = vpop.xlane.xlu2 %1183  ;;  %v1158_v35 = vpop.xlane.xlu1 %1157  ;;  %1804 = vmatpush.msrb.mxu0 %v1783_v13  ;;  %3082 = vmatpush.msra.mxu1 %v1783_v13 }
 0x273   : > { %v4436_v42 = vmax.f32 %v4429_v41, %v1184_v29  ;;  %v1211_v15 = vmax.f32 %v4431_v12, %v1158_v35  ;;  %v1240_v29 = vsub.f32 %v4354_v3, %v4360_v53  ;;  %v1781_v35 = vld [vmem:[%s3775_s14 + $0x18] sm:$0xff]  ;;  %v1271_v53 = vmul.f32 1.442695, %v1236_v26  ;;  %3083 = vmatpush.msrb.mxu3 %v1783_v13  ;;  %v4473_v26 = vpop.eup %3213 }
 0x274   : > { %1805 = vmatpush.msrb.mxu0 %v1782_v9  ;;  %3084 = vmatpush.msra.mxu1 %v1782_v9  ;;  %v1239_v13 = vsub.f32 %v4331_v60, %v4340_v52  ;;  %5276 = vst [vmem:[#allocation41_spill] sm:$0xff] %v4473_v26  ;;  %v4481_v52 = vld [vmem:[#allocation2 + $0x60] sm:$0xff] }
 0x275   : > { %2218 = vst.msk [vmem:[#allocation2 + $0xb8] sm:$0xff] %vm1745_vm3, %v4436_v42  ;;  %1441 = vperm.xlu1 %3203, %v4411_v20   ;;  %1446 = vperm.xlu0 %3204, %v4436_v42   ;;  %v1279_v3 = vmul.f32 1.442695, %v1240_v29  ;;  %3215 = vpow2.f32 %v1271_v53 }
 0x276   : > { %2205 = vst.msk [vmem:[#allocation2 + $0x50] sm:$0xff] %vm1745_vm3, %v1211_v15  ;;  %1806 = vmatpush.msrb.mxu0 %v1781_v35  ;;  %3086 = vmatpush.msra.mxu1 %v1781_v35  ;;  %v1277_v60 = vmul.f32 1.442695, %v1239_v13 }
 0x277   : > { %1376 = vperm.xlu2 %3202, %v4414_v25   ;;  %3085 = vmatpush.msrb.mxu3 %v1782_v9  ;;  %3217 = vpow2.f32 %v1279_v3  ;;  %v4479_v9 = vld [vmem:[#allocation2 + $0xc8] sm:$0xff] }
 0x278   : > { %1807 = vmatpush.msrb.mxu0 %v1780_v22  ;;  %3088 = vmatpush.msra.mxu1 %v1780_v22  ;;  %3219 = vpow2.f32 %v1281_v48 }
 0x279   : > { %3087 = vmatpush.msrb.mxu3 %v1781_v35  ;;  %3221 = vpow2.f32 %v1277_v60 }
 0x27a   : > { %v1160_v24 = vpop.xlane.xlu2 %1159  ;;  %v1186_v2 = vpop.xlane.xlu0 %1185  ;;  %1808 = vmatpush.msrb.mxu0 %v1779_v31  ;;  %3090 = vmatpush.msra.mxu1 %v1779_v31 }
 0x27b   : > { %v4461_v10 = vmax.f32 %v4456_v27, %v1160_v24  ;;  %v4464_v59 = vmax.f32 %v4458_v38, %v1186_v2  ;;  %v1778_v24 = vld [vmem:[%s3775_s14] sm:$0xff]  ;;  %v1243_v2 = vsub.f32 %v4431_v12, %v1211_v15  ;;  %3089 = vmatpush.msrb.mxu3 %v1780_v22  ;;  %v4483_v3 = vpop.eup %3215  ;;  %v4499_v22 = vld [vmem:[#allocation2 + $0xd0] sm:$0xff] }
 0x27c   : > { %1809 = vmatpush.msrb.mxu0 %v1778_v24  ;;  %3092 = vmatpush.msra.mxu1 %v1778_v24 }
 0x27d   : > { %2206 = vst.msk [vmem:[#allocation2 + $0x58] sm:$0xff] %vm1745_vm3, %v4461_v10  ;;  %1381 = vperm.xlu1 %3203, %v1211_v15   ;;  %1386 = vperm.xlu0 %3204, %v4461_v10   ;;  %v1285_v29 = vmul.f32 1.442695, %v1243_v2 }
 0x27e   : > { %2219 = vst.msk [vmem:[#allocation2 + $0xc0] sm:$0xff] %vm1745_vm3, %v4464_v59  ;;  %3091 = vmatpush.msrb.mxu3 %v1779_v31  ;;  %v5279_v31 = vsub.f32 %v4197_v34, %v4202_v39  ;;  %v1242_v34 = vsub.f32 %v4404_v40, %v4414_v25  ;;  %v1244_v39 = vsub.f32 %v4456_v27, %v4461_v10 }
 0x27f   : > { %1966 = vperm.xlu2 %3202, %v4473_v26   ;;  %v4489_v26 = vpop.eup %3217  ;;  %3223 = vpow2.f32 %v1285_v29  ;;  %v5282_v25 = vsub.f32 %v4280_v30, %v4285_v57 }
 0x280   : > { %5277 = vst [vmem:[#allocation42_spill] sm:$0xff] %v4489_v26  ;;  %v4495_v35 = vpop.eup %3219  ;;  %3093 = vmatpush.msrb.mxu3 %v1778_v24  ;;  %v1291_v48 = vmul.f32 1.442695, %v5279_v31  ;;  %v4520_v24 = vld [vmem:[#allocation2 + $0xd8] sm:$0xff]  ;;  %v1283_v29 = vmul.f32 1.442695, %v1242_v34 }
 0x281   : > { %5278 = vst [vmem:[#allocation43_spill] sm:$0xff] %v4495_v35  ;;  %v4504_v2 = vpop.eup %3221  ;;  %v1297_v27 = vmul.f32 1.442695, %v5282_v25 }
 0x282   : > { %v1188_v50 = vpop.xlane.xlu1 %1187  ;;  %v1162_v53 = vpop.xlane.xlu0 %1161  ;;  %3225 = vpow2.f32 %v1291_v48  ;;  %v1287_v48 = vmul.f32 1.442695, %v1244_v39 }
 0x283   : > { %v4486_v12 = vmax.f32 %v4479_v9, %v1188_v50  ;;  %v1213_v15 = vmax.f32 %v4481_v52, %v1162_v53  ;;  %3227 = vpow2.f32 %v1283_v29  ;;  %v5284_v29 = vsub.f32 %v4216_v49, %v4222_v55 }
 0x284   : > { %v5286_v49 = vsub.f32 %v4329_v32, %v4337_v0  ;;  %v1255_v32 = vsub.f32 %v4402_v36, %v4411_v20 }
 0x285   : > { %1956 = vperm.xlu1 %3203, %v4483_v3   ;;  %1976 = vperm.xlu0 %3204, %v4489_v26   ;;  %2220 = vst.msk [vmem:[#allocation2 + $0xc8] sm:$0xff] %vm1745_vm3, %v4486_v12  ;;  %v4509_v50 = vpop.eup %3223  ;;  %v1245_v57 = vsub.f32 %v4481_v52, %v1213_v15 }
 0x286   : > { %2207 = vst.msk [vmem:[#allocation2 + $0x60] sm:$0xff] %vm1745_vm3, %v1213_v15  ;;  %v1303_v55 = vmul.f32 1.442695, %v5286_v49 }
 0x287   : > { %1981 = vperm.xlu2 %3202, %v4495_v35   ;;  %5280 = vst [vmem:[#allocation44_spill] sm:$0xff] %v4509_v50 }
 0x28a   : > { %v1190_v13 = vpop.xlane.xlu2 %1189 }
 0x28b   : > { %v4507_v60 = vmax.f32 %v4499_v22, %v1190_v13 }
 0x28d   : > { %2221 = vst.msk [vmem:[#allocation2 + $0xd0] sm:$0xff] %vm1745_vm3, %v4507_v60  ;;  %1971 = vperm.xlu1 %3203, %v4504_v2   ;;  %1991 = vperm.xlu0 %3204, %v4509_v50   ;;  %v4526_v50 = vpop.eup %3225 }
 0x28e   : > { %v4542_v39 = vpop.eup %3227 }
 0x28f   : > { %1451 = vperm.xlu2 %3202, %v4464_v59   ;;  %5283 = vst [vmem:[#allocation45_spill] sm:$0xff] %v4542_v39 }
 0x292   : > { %v1332_v53 = vpop.permute.xlu2 %1331  ;;  %v1192_v31 = vpop.xlane.xlu0 %1191 }
 0x293   : > { %v1489_v13 = vsub.f32 %v4073_v4, %v1332_v53  ;;  %v4524_v26 = vmax.f32 %v4520_v24, %v1192_v31  ;;  %v5281_v4 = vsub.f32 %v4234_v62, %v4240_v7  ;;  %v1289_v7 = vmul.f32 1.442695, %v1245_v57 }
 0x295   : > { %v1521_v35 = vmul.f32 1.442695, %v1489_v13  ;;  %1456 = vperm.xlu1 %3203, %v4486_v12   ;;  %2006 = vperm.xlu0 %3204, %v4526_v50   ;;  %2222 = vst.msk [vmem:[#allocation2 + $0xd8] sm:$0xff] %vm1745_vm3, %v4524_v26  ;;  %v1295_v40 = vmul.f32 1.442695, %v5281_v4 }
 0x297   : > { %3229 = vpow2.f32 %v1521_v35  ;;  %1391 = vperm.xlu2 %3202, %v1213_v15   ;;  %v1293_v35 = vmul.f32 1.442695, %v5284_v29 }
 0x298   : > { %3231 = vpow2.f32 %v1287_v48 }
 0x299   : > { %3233 = vpow2.f32 %v1295_v40  ;;  %v5287_v40 = vsub.f32 %v4303_v37, %v4312_v44  ;;  %v1258_v37 = vsub.f32 %v4479_v9, %v4486_v12 }
 0x29a   : > { %v4538_v10 = vpop.permute.xlu1 %1396  ;;  %v4540_v34 = vpop.permute.xlu2 %1406  ;;  %3235 = vpow2.f32 %v1297_v27  ;;  %v1309_v27 = vmul.f32 1.442695, %v1255_v32 }
 0x29b   : > { %3237 = vpow2.f32 %v1293_v35  ;;  %v1301_v25 = vmul.f32 1.442695, %v5287_v40 }
 0x29c   : > { %3239 = vpow2.f32 %v1303_v55 }
 0x29d   : > { %v4547_v53 = vpop.eup %3229  ;;  %1986 = vperm.xlu1 %3203, %v4542_v39   ;;  %1461 = vperm.xlu0 %3204, %v4507_v60   ;;  %3241 = vpow2.f32 %v1289_v7 }
 0x29e   : > { %v4551_v62 = vpop.eup %3231  ;;  %1810 = vmatmul.f32.vlgmr.msrb.gmra.mxu0 %v4547_v53 }
 0x29f   : > { %5285 = vst [vmem:[#allocation46_spill] sm:$0xff] %v4551_v62  ;;  %1996 = vperm.xlu2 %3202, %v4551_v62   ;;  %v4563_v13 = vpop.eup %3233 }
 0x2a0   : > { %v4565_v48 = vpop.eup %3235 }
 0x2a1   : > { %v4569_v15 = vpop.eup %3237 }
 0x2a2   : > { %v4559_v30 = vpop.permute.xlu1 %1471  ;;  %v4561_v31 = vpop.permute.xlu2 %1481 }
 0x2a3   : > { %v4578_v57 = vpop.eup %3239 }
 0x2a4   : > { %v4581_v55 = vpop.eup %3241 }
 0x2a5   : > { %2016 = vperm.xlu1 %3203, %v4563_v13   ;;  %2021 = vperm.xlu0 %3204, %v4565_v48   ;;  %v1337_v52 = vpop.permute.xlu0 %1336  ;;  %5288 = vst [vmem:[#allocation47_spill] sm:$0xff] %v4581_v55 }
 0x2a6   : > { %v1490_v0 = vsub.f32 %v4081_v11, %v1337_v52  ;;  %v5289_v11 = vsub.f32 %v4282_v19, %v4294_v17  ;;  %v5290_v17 = vsub.f32 %v4376_v45, %v4387_v18  ;;  %v1315_v52 = vmul.f32 1.442695, %v1258_v37 }
 0x2a7   : > { %2011 = vperm.xlu2 %3202, %v4569_v15   ;;  %v1260_v37 = vsub.f32 %v4520_v24, %v4524_v26 }
 0x2a8   : > { %v1523_v4 = vmul.f32 1.442695, %v1490_v0  ;;  %v1299_v20 = vmul.f32 1.442695, %v5289_v11  ;;  %v1307_v19 = vmul.f32 1.442695, %v5290_v17 }
 0x2aa   : > { %3243 = vpow2.f32 %v1523_v4  ;;  %v1342_v29 = vpop.permute.xlu1 %1341  ;;  %v1347_v35 = vpop.permute.xlu2 %1346 }
 0x2ab   : > { %v1491_v49 = vsub.f32 %v4097_v21, %v1342_v29  ;;  %3245 = vpow2.f32 %v1301_v25  ;;  %v1492_v21 = vsub.f32 %v4107_v28, %v1347_v35  ;;  %v5292_v28 = vsub.f32 %v4352_v1, %v4357_v6 }
 0x2ac   : > { %3247 = vpow2.f32 %v1309_v27  ;;  %v1257_v25 = vsub.f32 %v4458_v38, %v4464_v59  ;;  %v5293_v27 = vsub.f32 %v4214_v47, %v4219_v54 }
 0x2ad   : > { %v1525_v36 = vmul.f32 1.442695, %v1491_v49  ;;  %2036 = vperm.xlu0 %3204, %v4578_v57   ;;  %2001 = vperm.xlu1 %3203, %v4581_v55   ;;  %v4588_v44 = vpop.permute.xlu0 %1401  ;;  %v1527_v4 = vmul.f32 1.442695, %v1492_v21  ;;  %v1305_v12 = vmul.f32 1.442695, %v5292_v28 }
 0x2ae   : > { %v1321_v29 = vmul.f32 1.442695, %v5293_v27  ;;  %v1313_v35 = vmul.f32 1.442695, %v1257_v25  ;;  %v1319_v21 = vmul.f32 1.442695, %v1260_v37 }
 0x2af   : > { %3249 = vpow2.f32 %v1525_v36  ;;  %1466 = vperm.xlu2 %3202, %v4524_v26  }
 0x2b0   : > { %v4594_v7 = vpop.eup %3243  ;;  %3251 = vpow2.f32 %v1299_v20 }
 0x2b1   : > { %1813 = vmatmul.f32.gmra.mxu0 %v4594_v7  ;;  %v4600_v0 = vpop.eup %3245  ;;  %3253 = vpow2.f32 %v1307_v19 }
 0x2b2   : > { %v1352_v32 = vpop.permute.xlu2 %1351  ;;  %v4602_v9 = vpop.eup %3247  ;;  %3255 = vpow2.f32 %v1315_v52 }
 0x2b3   : > { %5291 = vst [vmem:[#allocation48_spill] sm:$0xff] %v4602_v9  ;;  %3257 = vpow2.f32 %v1527_v4  ;;  %v1493_v6 = vsub.f32 %v4114_v33, %v1352_v32  ;;  %v5295_v33 = vsub.f32 %v4429_v41, %v4436_v42  ;;  %v1259_v42 = vsub.f32 %v4499_v22, %v4507_v60 }
 0x2b4   : > { %3259 = vpow2.f32 %v1305_v12 }
 0x2b5   : > { %v4607_v40 = vpop.eup %3249  ;;  %2051 = vperm.xlu0 %3204, %v4602_v9   ;;  %2031 = vperm.xlu1 %3203, %v4600_v0   ;;  %v4611_v18 = vpop.permute.xlu0 %1476  ;;  %v1529_v38 = vmul.f32 1.442695, %v1493_v6  ;;  %v1311_v20 = vmul.f32 1.442695, %v5295_v33  ;;  %3261 = vpow2.f32 %v1321_v29  ;;  %v1317_v32 = vmul.f32 1.442695, %v1259_v42 }
 0x2b6   : > { %v4613_v45 = vpop.eup %3251  ;;  %1816 = vmatmul.f32.vlgmr.msra.gmra.mxu1 %v4607_v40  ;;  %3263 = vpow2.f32 %v1313_v35 }
 0x2b7   : > { %v4619_v1 = vpop.permute.xlu1 %1411  ;;  %2026 = vperm.xlu2 %3202, %v4613_v45   ;;  %v4627_v11 = vpop.eup %3253  ;;  %3265 = vpow2.f32 %v1529_v38 }
 0x2b8   : > { %v4629_v59 = vpop.eup %3255  ;;  %3267 = vpow2.f32 %v1311_v20 }
 0x2b9   : > { %5294 = vst [vmem:[#allocation49_spill] sm:$0xff] %v4629_v59  ;;  %v4634_v36 = vpop.eup %3257  ;;  %3269 = vpow2.f32 %v1319_v21 }
 0x2ba   : > { %v4625_v49 = vpop.permute.xlu2 %1421  ;;  %v4640_v54 = vpop.eup %3259  ;;  %3271 = vpow2.f32 %v1317_v32 }
 0x2bb   : > { %v4650_v19 = vpop.eup %3261 }
 0x2bc   : > { %v4652_v52 = vpop.eup %3263 }
 0x2bd   : > { %2066 = vperm.xlu0 %3204, %v4629_v59   ;;  %2046 = vperm.xlu1 %3203, %v4627_v11   ;;  %v4638_v47 = vpop.permute.xlu0 %1416  ;;  %5296 = vst [vmem:[#allocation50_spill] sm:$0xff] %v4652_v52  ;;  %v4654_v4 = vpop.eup %3265 }
 0x2be   : > { %1819 = vmatmul.f32.gmra.mxu1 %v4634_v36  ;;  %v4658_v26 = vpop.eup %3267 }
 0x2bf   : > { %v4645_v41 = vpop.permute.xlu1 %1486  ;;  %2041 = vperm.xlu2 %3202, %v4640_v54   ;;  %5297 = vst [vmem:[#allocation51_spill] sm:$0xff] %v4658_v26  ;;  %v4667_v25 = vpop.eup %3269 }
 0x2c0   : > { %5298 = vst [vmem:[#allocation52_spill] sm:$0xff] %v4667_v25  ;;  %v4671_v27 = vpop.eup %3271 }
 0x2c1   : > { %5299 = vst [vmem:[#allocation53_spill] sm:$0xff] %v4671_v27 }
 0x2c2   : > { %v1362_v17 = vpop.permute.xlu2 %1361 }
 0x2c3   : > { %v1495_v6 = vsub.f32 %v4134_v46, %v1362_v17 }
 0x2c5   : > { %2081 = vperm.xlu0 %3204, %v4650_v19   ;;  %2061 = vperm.xlu1 %3203, %v4652_v52   ;;  %v4661_v24 = vpop.permute.xlu0 %1951  ;;  %v1533_v38 = vmul.f32 1.442695, %v1495_v6 }
 0x2c6   : > { %1822 = vmatmul.f32.gmra.mxu1 %v4654_v4 }
 0x2c7   : > { %v1357_v22 = vpop.permute.xlu1 %1356  ;;  %2056 = vperm.xlu2 %3202, %v4658_v26  }
 0x2c8   : > { %v1494_v60 = vsub.f32 %v4128_v43, %v1357_v22 }
 0x2ca   : > { %v1531_v28 = vmul.f32 1.442695, %v1494_v60  ;;  %v4665_v12 = vpop.permute.xlu2 %1946 }
 0x2cc   : > { %3273 = vpow2.f32 %v1531_v28 }
 0x2cd   : > { %2076 = vperm.xlu1 %3203, %v4667_v25   ;;  %3275 = vpow2.f32 %v1533_v38 }
 0x2cf   : > { %v4673_v29 = vpop.permute.xlu1 %1426  ;;  %2071 = vperm.xlu2 %3202, %v4671_v27   ;;  %v4676_v35 = vpop.permute.xlu0 %1431 }
 0x2d2   : > { %v4678_v43 = vpop.eup %3273  ;;  %v1437_v33 = vpop.permute.xlu2 %1436 }
 0x2d3   : > { %v1510_v20 = vsub.f32 %v4150_v58, %v1437_v33  ;;  %1825 = vmatmul.f32.gmra.mxu1 %v4678_v43  ;;  %v4683_v17 = vpop.eup %3275 }
 0x2d5   : > { %v1563_v46 = vmul.f32 1.442695, %v1510_v20 }
 0x2d7   : > { %3277 = vpow2.f32 %v1563_v46  ;;  %v1367_v37 = vpop.permute.xlu1 %1366  ;;  %v1372_v42 = vpop.permute.xlu0 %1371 }
 0x2d8   : > { %v1496_v21 = vsub.f32 %v4141_v51, %v1367_v37  ;;  %v1497_v60 = vsub.f32 %v4148_v56, %v1372_v42  ;;  %v1502_v56 = vsub.f32 %v4078_v8, %v4538_v10  ;;  %v1517_v10 = vsub.f32 %v4089_v14, %v4559_v30 }
 0x2da   : > { %v1535_v32 = vmul.f32 1.442695, %v1496_v21  ;;  %v1377_v22 = vpop.permute.xlu2 %1376  ;;  %v1537_v38 = vmul.f32 1.442695, %v1497_v60  ;;  %v1503_v21 = vsub.f32 %v4091_v16, %v4588_v44  ;;  %v1577_v30 = vmul.f32 1.442695, %v1517_v10 }
 0x2db   : > { %1828 = vmatmul.f32.gmra.mxu1 %v4683_v17  ;;  %v1498_v20 = vsub.f32 %v4155_v61, %v1377_v22  ;;  %v1547_v61 = vmul.f32 1.442695, %v1502_v56 }
 0x2dc   : > { %3279 = vpow2.f32 %v1535_v32  ;;  %v1549_v8 = vmul.f32 1.442695, %v1503_v21  ;;  %v5302_v21 = vld [vmem:[#allocation25_spill] sm:$0xff] }
 0x2dd   : > { %v4687_v28 = vpop.eup %3277  ;;  %3281 = vpow2.f32 %v1537_v38  ;;  %v1539_v46 = vmul.f32 1.442695, %v1498_v20  ;;  %v1518_v38 = vsub.f32 %v4099_v23, %v4611_v18  ;;  %v5300_v20 = vld [vmem:[#allocation24_spill] sm:$0xff]  ;;  %v5303_v18 = vld [vmem:[#allocation26_spill] sm:$0xff] }
 0x2de   : > { %1873 = vmatmul.f32.vlgmr.msrb.gmra.mxu3 %v4687_v28 }
 0x2df   : > { %v4690_v58 = vpop.permute.xlu1 %1941  ;;  %v4692_v6 = vpop.permute.xlu0 %1961  ;;  %3283 = vpow2.f32 %v1539_v46  ;;  %v5301_v46 = vld [vmem:[#allocation16_spill] sm:$0xff]  ;;  %v1579_v23 = vmul.f32 1.442695, %v1518_v38 }
 0x2e2   : > { %v4694_v33 = vpop.eup %3279  ;;  %v4696_v51 = vpop.permute.xlu2 %1966 }
 0x2e3   : > { %1831 = vmatmul.f32.gmra.mxu1 %v4694_v33  ;;  %v4705_v60 = vpop.eup %3281 }
 0x2e7   : > { %v1442_v37 = vpop.permute.xlu1 %1441  ;;  %v1447_v42 = vpop.permute.xlu0 %1446 }
 0x2e8   : > { %v1511_v32 = vsub.f32 %v4157_v63, %v1442_v37  ;;  %v1512_v22 = vsub.f32 %v4164_v5, %v1447_v42  ;;  %v4717_v5 = vpop.eup %3283 }
 0x2ea   : > { %v1565_v25 = vmul.f32 1.442695, %v1511_v32  ;;  %v4707_v55 = vpop.permute.xlu2 %1981  ;;  %v1567_v16 = vmul.f32 1.442695, %v1512_v22 }
 0x2eb   : > { %1834 = vmatmul.f32.gmra.mxu1 %v4705_v60 }
 0x2ec   : > { %3285 = vpow2.f32 %v1565_v25  ;;  %v1504_v25 = vsub.f32 %v5301_v46, %v4540_v34 }
 0x2ed   : > { %3287 = vpow2.f32 %v1547_v61 }
 0x2ee   : > { %3289 = vpow2.f32 %v1549_v8  ;;  %v1551_v22 = vmul.f32 1.442695, %v1504_v25 }
 0x2ef   : > { %v1382_v44 = vpop.permute.xlu1 %1381  ;;  %1649 = vadd.xlane.f32.xlu0 %v4547_v53  ;;  %v1387_v63 = vpop.permute.xlu0 %1386  ;;  %3291 = vpow2.f32 %v1567_v16  ;;  %v5304_v16 = vld [vmem:[#allocation18_spill] sm:$0xff] }
 0x2f0   : > { %v1499_v56 = vsub.f32 %v5300_v20, %v1382_v44  ;;  %v1500_v53 = vsub.f32 %v5302_v21, %v1387_v63  ;;  %v1505_v63 = vsub.f32 %v5304_v16, %v4619_v1  ;;  %v5306_v1 = vld [vmem:[#allocation27_spill] sm:$0xff] }
 0x2f2   : > { %v4721_v37 = vpop.eup %3285  ;;  %v1541_v42 = vmul.f32 1.442695, %v1499_v56  ;;  %v1452_v14 = vpop.permute.xlu2 %1451  ;;  %v1543_v8 = vmul.f32 1.442695, %v1500_v53  ;;  %v5305_v56 = vld [vmem:[#allocation17_spill] sm:$0xff] }
 0x2f3   : > { %1837 = vmatmul.f32.gmra.mxu1 %v4717_v5  ;;  %1876 = vmatmul.f32.gmra.mxu3 %v4721_v37  ;;  %v1513_v32 = vsub.f32 %v5303_v18, %v1452_v14  ;;  %v4727_v61 = vpop.eup %3287  ;;  %v1519_v46 = vsub.f32 %v5305_v56, %v4561_v31  ;;  %v1553_v14 = vmul.f32 1.442695, %v1505_v63  ;;  %v5307_v31 = vld [vmem:[#allocation19_spill] sm:$0xff] }
 0x2f4   : > { %3293 = vpow2.f32 %v1541_v42  ;;  %v4729_v34 = vpop.eup %3289  ;;  %v1506_v18 = vsub.f32 %v5307_v31, %v4638_v47 }
 0x2f5   : > { %3295 = vpow2.f32 %v1577_v30  ;;  %v1569_v38 = vmul.f32 1.442695, %v1513_v32  ;;  %v4740_v20 = vpop.eup %3291 }
 0x2f6   : > { %3297 = vpow2.f32 %v1579_v23 }
 0x2f7   : > { %v4731_v44 = vpop.permute.xlu1 %1956  ;;  %1675 = vadd.xlane.f32.xlu0 %v4727_v61  ;;  %1677 = vadd.xlane.f32.xlu1 %v4729_v34  ;;  %v4735_v10 = vpop.permute.xlu0 %1976  ;;  %3299 = vpow2.f32 %v1551_v22 }
 0x2f8   : > { %1651 = vadd.xlane.f32.xlu2 %v4594_v7  ;;  %3301 = vpow2.f32 %v1543_v8  ;;  %v1581_v7 = vmul.f32 1.442695, %v1519_v46  ;;  %v5308_v8 = vld [vmem:[#allocation20_spill] sm:$0xff]  ;;  %v1555_v46 = vmul.f32 1.442695, %v1506_v18  ;;  %v5310_v18 = vld [vmem:[#allocation21_spill] sm:$0xff] }
 0x2f9   : > { %3303 = vpow2.f32 %v1569_v38  ;;  %v1520_v16 = vsub.f32 %v5308_v8, %v4645_v41  ;;  %v1507_v8 = vsub.f32 %v5310_v18, %v4625_v49  ;;  %v5312_v49 = vld [vmem:[#allocation23_spill] sm:$0xff] }
 0x2fa   : > { %v4744_v25 = vpop.eup %3293  ;;  %v1392_v42 = vpop.permute.xlu2 %1391  ;;  %3305 = vpow2.f32 %v1553_v14  ;;  %v1509_v18 = vsub.f32 %v5312_v49, %v4676_v35  ;;  %v1907_v35 = vld [vmem:[#allocation4] sm:$0xff] }
 0x2fb   : > { %1840 = vmatmul.f32.gmra.mxu1 %v4744_v25  ;;  %1879 = vmatmul.f32.gmra.mxu3 %v4740_v20  ;;  %v1501_v30 = vsub.f32 %v5306_v1, %v1392_v42  ;;  %v4749_v21 = vpop.eup %3295  ;;  %3307 = vpow2.f32 %v1581_v7  ;;  %v1583_v42 = vmul.f32 1.442695, %v1520_v16  ;;  %v5309_v7 = vld [vmem:[#allocation28_spill] sm:$0xff] }
 0x2fc   : > { %v4751_v53 = vpop.eup %3297  ;;  %v5316_v49 = vld [vmem:[#allocation36_spill] sm:$0xff] }
 0x2fd   : > { %v4753_v23 = vpop.eup %3299  ;;  %v1545_v63 = vmul.f32 1.442695, %v1501_v30 }
 0x2fe   : > { %v4766_v38 = vpop.eup %3301 }
 0x2ff   : > { %v4757_v32 = vpop.permute.xlu1 %1971  ;;  %1705 = vadd.xlane.f32.xlu0 %v4749_v21  ;;  %1707 = vadd.xlane.f32.xlu1 %v4751_v53  ;;  %v4761_v22 = vpop.permute.xlu0 %1991  ;;  %3309 = vpow2.f32 %v1545_v63 }
 0x300   : > { %1679 = vadd.xlane.f32.xlu2 %v4753_v23  ;;  %v4768_v56 = vpop.eup %3303  ;;  %3311 = vpow2.f32 %v1555_v46 }
 0x301   : > { %v4774_v14 = vpop.eup %3305  ;;  %3313 = vpow2.f32 %v1583_v42  ;;  %v5311_v42 = vld [vmem:[#allocation22_spill] sm:$0xff] }
 0x302   : > { %v4770_v47 = vpop.permute.xlu2 %1996  ;;  %v4776_v41 = vpop.eup %3307 }
 0x303   : > { %1843 = vmatmul.f32.gmra.mxu1 %v4766_v38  ;;  %1882 = vmatmul.f32.gmra.mxu3 %v4768_v56 }
 0x305   : > { %v4786_v16 = vpop.eup %3309 }
 0x306   : > { %v3312_v46 = vpop.eup %3311 }
 0x307   : > { %v1457_v1 = vpop.permute.xlu1 %1456  ;;  %1681 = vadd.xlane.f32.xlu0 %v4774_v14  ;;  %1653 = vadd.xlane.f32.xlu1 %v4607_v40  ;;  %v4780_v30 = vpop.permute.xlu0 %2006  ;;  %v1557_v40 = vmul.f32 1.442695, %v1507_v8 }
 0x308   : > { %v1514_v31 = vsub.f32 %v5309_v7, %v1457_v1  ;;  %1709 = vadd.xlane.f32.xlu2 %v4776_v41  ;;  %v4791_v27 = vpop.eup %3313  ;;  %v1508_v1 = vsub.f32 %v5311_v42, %v4673_v29  ;;  %v1561_v29 = vmul.f32 1.442695, %v1509_v18  ;;  %v5314_v42 = vld [vmem:[#allocation30_spill] sm:$0xff] }
 0x30a   : > { %v1571_v63 = vmul.f32 1.442695, %v1514_v31  ;;  %v4788_v59 = vpop.permute.xlu2 %2011  ;;  %v5313_v31 = vld [vmem:[#allocation29_spill] sm:$0xff]  ;;  %v1559_v39 = vmul.f32 1.442695, %v1508_v1 }
 0x30b   : > { %1846 = vmatmul.f32.gmra.mxu1 %v4786_v16 }
 0x30c   : > { %3315 = vpow2.f32 %v1571_v63 }
 0x30d   : > { %3317 = vpow2.f32 %v1557_v40  ;;  %v2099_v40 = vmul.f32 %v4690_v58, %v1907_v35  ;;  %v1909_v58 = vld [vmem:[#allocation4 + $0x10] sm:$0xff] }
 0x30f   : > { %1711 = vadd.xlane.f32.xlu0 %v4791_v27  ;;  %1683 = vadd.xlane.f32.xlu1 %v3312_v46  ;;  %v1462_v7 = vpop.permute.xlu0 %1461 }
 0x310   : > { %v1515_v52 = vsub.f32 %v5313_v31, %v1462_v7  ;;  %1655 = vadd.xlane.f32.xlu2 %v4634_v36 }
 0x312   : > { %v4800_v63 = vpop.eup %3315  ;;  %v1573_v8 = vmul.f32 1.442695, %v1515_v52  ;;  %v1467_v62 = vpop.permute.xlu2 %1466 }
 0x313   : > { %1849 = vmatmul.f32.gmra.mxu1 %v4727_v61  ;;  %1885 = vmatmul.f32.gmra.mxu3 %v4800_v63  ;;  %v1516_v9 = vsub.f32 %v5314_v42, %v1467_v62  ;;  %v3318_v26 = vpop.eup %3317 }
 0x314   : > { %3319 = vpow2.f32 %v1573_v8 }
 0x315   : > { %3321 = vpow2.f32 %v1559_v39  ;;  %v1575_v36 = vmul.f32 1.442695, %v1516_v9  ;;  %v4812_v9 = vpop.permute.xlu1 %1986 }
 0x316   : > { %3323 = vpow2.f32 %v1561_v29 }
 0x317   : > { %1657 = vadd.xlane.f32.xlu0 %v4654_v4  ;;  %1659 = vadd.xlane.f32.xlu1 %v4678_v43  ;;  %3325 = vpow2.f32 %v1575_v36  ;;  %v1908_v4 = vld [vmem:[#allocation4 + $0x8] sm:$0xff] }
 0x318   : > { %1685 = vadd.xlane.f32.xlu2 %v3318_v26  ;;  %v2100_v43 = vmul.f32 %v4665_v12, %v1908_v4 }
 0x31a   : > { %v3320_v52 = vpop.eup %3319 }
 0x31b   : > { %v1811_v61 = vpop.f32.mrf.mxu0  ;;  %1852 = vmatmul.f32.gmra.mxu1 %v4729_v34  ;;  %1888 = vmatmul.f32.gmra.mxu3 %v3320_v52  ;;  %v3322_v62 = vpop.eup %3321 }
 0x31c   : > { %v2131_v1 = vadd.f32 %v2099_v40, %v1811_v61  ;;  %v3324_v7 = vpop.eup %3323 }
 0x31d   : > { %v3326_v39 = vpop.eup %3325 }
 0x31e   : > { %2163 = vst.msk [vmem:[#allocation4] sm:$0xff] %vm799_vm2, %v2131_v1  ;;  %v1913_v1 = vld [vmem:[#allocation4 + $0x30] sm:$0xff] }
 0x31f   : > { %1687 = vadd.xlane.f32.xlu0 %v3322_v62  ;;  %1689 = vadd.xlane.f32.xlu1 %v3324_v7 }
 0x320   : > { %1661 = vadd.xlane.f32.xlu2 %v4683_v17 }
 0x323   : > { %1855 = vmatmul.f32.gmra.mxu1 %v4753_v23  ;;  %1891 = vmatmul.f32.gmra.mxu3 %v3326_v39  ;;  %v4822_v23 = vpop.permute.xlu1 %2016 }
 0x327   : > { %1663 = vadd.xlane.f32.xlu0 %v4694_v33  ;;  %1665 = vadd.xlane.f32.xlu1 %v4705_v60  ;;  %v4827_v33 = vpop.permute.xlu0 %2021 }
 0x328   : > { %1691 = vadd.xlane.f32.xlu2 %v4687_v28  ;;  %v2101_v28 = vmul.f32 %v4661_v24, %v1909_v58 }
 0x32b   : > { %1858 = vmatmul.f32.gmra.mxu1 %v4774_v14  ;;  %1894 = vmatmul.f32.gmra.mxu3 %v4749_v21  ;;  %v1911_v14 = vld [vmem:[#allocation4 + $0x20] sm:$0xff] }
 0x32e   : > { %v1814_v17 = vpop.f32.mrf.mxu0 }
 0x32f   : > { %v2132_v34 = vadd.f32 %v2100_v43, %v1814_v17  ;;  %1693 = vadd.xlane.f32.xlu0 %v4721_v37  ;;  %1695 = vadd.xlane.f32.xlu1 %v4740_v20  ;;  %v1910_v37 = vld [vmem:[#allocation4 + $0x18] sm:$0xff]  ;;  %v4835_v20 = vpop.permute.xlu1 %2001  ;;  %v4838_v21 = vpop.permute.xlu0 %2036 }
 0x330   : > { %1667 = vadd.xlane.f32.xlu2 %v4717_v5  ;;  %v2102_v5 = vmul.f32 %v4731_v44, %v1910_v37  ;;  %v1928_v37 = vld [vmem:[#allocation4 + $0xa8] sm:$0xff] }
 0x331   : > { %2164 = vst.msk [vmem:[#allocation4 + $0x8] sm:$0xff] %vm799_vm2, %v2132_v34 }
 0x333   : > { %v1817_v60 = vpop.f32.mrf.mxu1  ;;  %1861 = vmatmul.f32.gmra.mxu1 %v3312_v46  ;;  %1897 = vmatmul.f32.gmra.mxu3 %v4751_v53  ;;  %v5315_v46 = vld [vmem:[#allocation35_spill] sm:$0xff] }
 0x334   : > { %v2133_v12 = vadd.f32 %v2101_v28, %v1817_v60  ;;  %v5317_v18 = vsub.f32 %v5315_v46, %v5316_v49 }
 0x336   : > { %2165 = vst.msk [vmem:[#allocation4 + $0x10] sm:$0xff] %vm799_vm2, %v2133_v12  ;;  %v1327_v31 = vmul.f32 1.442695, %v5317_v18  ;;  %v1914_v12 = vld [vmem:[#allocation4 + $0x38] sm:$0xff] }
 0x337   : > { %1669 = vadd.xlane.f32.xlu0 %v4744_v25  ;;  %1671 = vadd.xlane.f32.xlu1 %v4766_v38  ;;  %v2103_v25 = vmul.f32 %v4692_v6, %v1911_v14  ;;  %v1912_v6 = vld [vmem:[#allocation4 + $0x28] sm:$0xff] }
 0x338   : > { %1697 = vadd.xlane.f32.xlu2 %v4768_v56  ;;  %v4847_v56 = vpop.permute.xlu2 %2026  ;;  %3327 = vpow2.f32 %v1327_v31  ;;  %v2104_v42 = vmul.f32 %v4696_v51, %v1912_v6  ;;  %v2105_v51 = vmul.f32 %v4757_v32, %v1913_v1 }
 0x33b   : > { %v1820_v24 = vpop.f32.mrf.mxu1  ;;  %1864 = vmatmul.f32.gmra.mxu1 %v3318_v26  ;;  %1900 = vmatmul.f32.gmra.mxu3 %v4776_v41  ;;  %v4845_v26 = vpop.permute.xlu1 %2031 }
 0x33c   : > { %v2134_v53 = vadd.f32 %v2102_v5, %v1820_v24  ;;  %v4849_v41 = vpop.permute.xlu0 %2051  ;;  %v1585_v5 = vld [vmem:[#allocation3] sm:$0xff] }
 0x33e   : > { %2166 = vst.msk [vmem:[#allocation4 + $0x18] sm:$0xff] %vm799_vm2, %v2134_v53  ;;  %v4863_v61 = vpop.eup %3327  ;;  %v2106_v53 = vmul.f32 %v4735_v10, %v1914_v12  ;;  %v1599_v10 = vld [vmem:[#allocation3 + $0x70] sm:$0xff]  ;;  %v1916_v12 = vld [vmem:[#allocation4 + $0x48] sm:$0xff] }
 0x33f   : > { %1699 = vadd.xlane.f32.xlu0 %v4800_v63  ;;  %1701 = vadd.xlane.f32.xlu1 %v3320_v52  ;;  %v5319_v63 = vld [vmem:[#allocation34_spill] sm:$0xff] }
 0x340   : > { %1673 = vadd.xlane.f32.xlu2 %v4786_v16  ;;  %v5318_v16 = vld [vmem:[#allocation33_spill] sm:$0xff]  ;;  %v4859_v35 = vpop.permute.xlu2 %2041 }
 0x343   : > { %v1823_v44 = vpop.f32.mrf.mxu1  ;;  %1867 = vmatmul.f32.gmra.mxu1 %v3322_v62  ;;  %1903 = vmatmul.f32.gmra.mxu3 %v4791_v27  ;;  %v5320_v27 = vsub.f32 %v5318_v16, %v5319_v63  ;;  %v2047_v29 = vpop.permute.xlu1 %2046  ;;  %v5321_v62 = vld [vmem:[#allocation31_spill] sm:$0xff]  ;;  %v1915_v63 = vld [vmem:[#allocation4 + $0x40] sm:$0xff] }
 0x344   : > { %v2135_v38 = vadd.f32 %v2103_v25, %v1823_v44  ;;  %v4861_v36 = vpop.permute.xlu0 %2066  ;;  %v2120_v32 = vmul.f32 %v2047_v29, %v1928_v37  ;;  %v1586_v29 = vld [vmem:[#allocation3 + $0x8] sm:$0xff] }
 0x345   : > { %v1325_v8 = vmul.f32 1.442695, %v5320_v27  ;;  %v1598_v27 = vld [vmem:[#allocation3 + $0x68] sm:$0xff] }
 0x346   : > { %2167 = vst.msk [vmem:[#allocation4 + $0x20] sm:$0xff] %vm799_vm2, %v2135_v38  ;;  %v5324_v38 = vld [vmem:[#allocation39_spill] sm:$0xff]  ;;  %v1630_v1 = vmul.f32 %v4526_v50, %v1598_v27 }
 0x347   : > { %3329 = vpow2.f32 %v1325_v8  ;;  %v1617_v46 = vmul.f32 %v5324_v38, %v1585_v5  ;;  %v2107_v8 = vmul.f32 %v4707_v55, %v1915_v63  ;;  %v1614_v55 = vld [vmem:[#allocation3 + $0xe8] sm:$0xff]  ;;  %v1613_v5 = vld [vmem:[#allocation3 + $0xe0] sm:$0xff]  ;;  %v1600_v50 = vld [vmem:[#allocation3 + $0x78] sm:$0xff] }
 0x348   : > { %1703 = vadd.xlane.f32.xlu2 %v3326_v39  ;;  %v4876_v34 = vpop.permute.xlu2 %2056 }
 0x34b   : > { %1870 = vmatmul.f32.gmra.mxu1 %v3324_v7  ;;  %v5322_v7 = vld [vmem:[#allocation32_spill] sm:$0xff]  ;;  %v4873_v17 = vpop.permute.xlu1 %2061 }
 0x34c   : > { %v5323_v39 = vsub.f32 %v5321_v62, %v5322_v7  ;;  %v4878_v60 = vpop.permute.xlu0 %2081 }
 0x34d   : > { %v4870_v43 = vpop.eup %3329 }
 0x34e   : > { %v1323_v4 = vmul.f32 1.442695, %v5323_v39  ;;  %v5325_v39 = vld [vmem:[#allocation38_spill] sm:$0xff] }
 0x350   : > { %v1826_v52 = vpop.f32.mrf.mxu1  ;;  %3331 = vpow2.f32 %v1323_v4  ;;  %v4885_v6 = vpop.permute.xlu2 %2071  ;;  %v1618_v4 = vmul.f32 %v5325_v39, %v1586_v29 }
 0x351   : > { %v2136_v40 = vadd.f32 %v2104_v42, %v1826_v52 }
 0x353   : > { %2168 = vst.msk [vmem:[#allocation4 + $0x28] sm:$0xff] %vm799_vm2, %v2136_v40  ;;  %2096 = vperm.xlu0 %3204, %v4863_v61   ;;  %v4883_v49 = vpop.permute.xlu1 %2076  ;;  %v1631_v40 = vmul.f32 %v4569_v15, %v1599_v10  ;;  %v2108_v15 = vmul.f32 %v4812_v9, %v1916_v12  ;;  %v1917_v10 = vld [vmem:[#allocation4 + $0x50] sm:$0xff]  ;;  %v1918_v12 = vld [vmem:[#allocation4 + $0x58] sm:$0xff] }
 0x354   : > { %v2109_v29 = vmul.f32 %v4761_v22, %v1917_v10 }
 0x356   : > { %v3332_v24 = vpop.eup %3331 }
 0x358   : > { %v1829_v58 = vpop.f32.mrf.mxu1  ;;  %2091 = vperm.xlu1 %3203, %v4870_v43  }
 0x359   : > { %v2137_v28 = vadd.f32 %v2105_v51, %v1829_v58 }
 0x35b   : > { %2169 = vst.msk [vmem:[#allocation4 + $0x30] sm:$0xff] %vm799_vm2, %v2137_v28 }
 0x360   : > { %v1832_v14 = vpop.f32.mrf.mxu1  ;;  %2086 = vperm.xlu2 %3202, %v3332_v24  }
 0x361   : > { %v2138_v25 = vadd.f32 %v2106_v53, %v1832_v14  ;;  %v1874_v44 = vpop.f32.mrf.mxu3  ;;  %v1646_v14 = vmul.f32 %v3332_v24, %v1614_v55 }
 0x362   : > { %v2152_v18 = vadd.f32 %v2120_v32, %v1874_v44  ;;  %v1650_v31 = vpop.xlane.xlu0 %1649  ;;  %v1929_v44 = vld [vmem:[#allocation4 + $0xb0] sm:$0xff] }
 0x363   : > { %2170 = vst.msk [vmem:[#allocation4 + $0x38] sm:$0xff] %vm799_vm2, %v2138_v25  ;;  %v1713_v16 = vadd.f32 %v1650_v31, %v1617_v46  ;;  %v1645_v25 = vmul.f32 %v4650_v19, %v1613_v5  ;;  %v2121_v27 = vmul.f32 %v4849_v41, %v1929_v44  ;;  %v1587_v19 = vld [vmem:[#allocation3 + $0x10] sm:$0xff]  ;;  %v1931_v44 = vld [vmem:[#allocation4 + $0xc0] sm:$0xff] }
 0x364   : > { %2184 = vst.msk [vmem:[#allocation4 + $0xa8] sm:$0xff] %vm799_vm2, %v2152_v18  ;;  %v1632_v18 = vmul.f32 %v4563_v13, %v1600_v50  ;;  %v2110_v50 = vmul.f32 %v4770_v47, %v1918_v12 }
 0x365   : > { %1746 = vst.msk [vmem:[#allocation3] sm:$0xff] %vm1745_vm3, %v1713_v16 }
 0x368   : > { %v1835_v42 = vpop.f32.mrf.mxu1 }
 0x369   : > { %v2139_v52 = vadd.f32 %v2107_v8, %v1835_v42  ;;  %v1601_v8 = vld [vmem:[#allocation3 + $0x80] sm:$0xff]  ;;  %v1615_v42 = vld [vmem:[#allocation3 + $0xf0] sm:$0xff] }
 0x36a   : > { %v1678_v62 = vpop.xlane.xlu1 %1677  ;;  %v1676_v7 = vpop.xlane.xlu0 %1675  ;;  %v1633_v41 = vmul.f32 %v4565_v48, %v1601_v8  ;;  %v1602_v48 = vld [vmem:[#allocation3 + $0x88] sm:$0xff] }
 0x36b   : > { %2171 = vst.msk [vmem:[#allocation4 + $0x40] sm:$0xff] %vm799_vm2, %v2139_v52  ;;  %v1727_v51 = vadd.f32 %v1678_v62, %v1631_v40  ;;  %v1726_v58 = vadd.f32 %v1676_v7, %v1630_v1  ;;  %v1652_v28 = vpop.xlane.xlu2 %1651  ;;  %v5326_v1 = vld [vmem:[#allocation37_spill] sm:$0xff]  ;;  %v1930_v7 = vld [vmem:[#allocation4 + $0xb8] sm:$0xff] }
 0x36c   : > { %v1714_v37 = vadd.f32 %v1652_v28, %v1618_v4  ;;  %v1619_v62 = vmul.f32 %v5326_v1, %v1587_v19  ;;  %v2122_v55 = vmul.f32 %v4876_v34, %v1930_v7  ;;  %v1603_v19 = vld [vmem:[#allocation3 + $0x90] sm:$0xff] }
 0x36d   : > { %1760 = vst.msk [vmem:[#allocation3 + $0x70] sm:$0xff] %vm1745_vm3, %v1727_v51  ;;  %v1647_v51 = vmul.f32 %v4870_v43, %v1615_v42 }
 0x36e   : > { %1759 = vst.msk [vmem:[#allocation3 + $0x68] sm:$0xff] %vm1745_vm3, %v1726_v58 }
 0x36f   : > { %1747 = vst.msk [vmem:[#allocation3 + $0x8] sm:$0xff] %vm1745_vm3, %v1714_v37 }
 0x370   : > { %v1838_v53 = vpop.f32.mrf.mxu1 }
 0x371   : > { %v2140_v32 = vadd.f32 %v2108_v15, %v1838_v53  ;;  %v1616_v15 = vld [vmem:[#allocation3 + $0xf8] sm:$0xff] }
 0x372   : > { %v1708_v38 = vpop.xlane.xlu1 %1707  ;;  %v1706_v46 = vpop.xlane.xlu0 %1705  ;;  %v1588_v53 = vld [vmem:[#allocation3 + $0x18] sm:$0xff]  ;;  %v1648_v34 = vmul.f32 %v4863_v61, %v1616_v15  ;;  %v1590_v61 = vld [vmem:[#allocation3 + $0x28] sm:$0xff] }
 0x373   : > { %2172 = vst.msk [vmem:[#allocation4 + $0x48] sm:$0xff] %vm799_vm2, %v2140_v32  ;;  %v1742_v31 = vadd.f32 %v1708_v38, %v1646_v14  ;;  %v1741_v16 = vadd.f32 %v1706_v46, %v1645_v25  ;;  %v1680_v63 = vpop.xlane.xlu2 %1679  ;;  %v1634_v25 = vmul.f32 %v4613_v45, %v1602_v48 }
 0x374   : > { %v1728_v9 = vadd.f32 %v1680_v63, %v1632_v18  ;;  %v1620_v18 = vmul.f32 %v4483_v3, %v1588_v53  ;;  %v1919_v63 = vld [vmem:[#allocation4 + $0x60] sm:$0xff] }
 0x375   : > { %1775 = vst.msk [vmem:[#allocation3 + $0xe8] sm:$0xff] %vm1745_vm3, %v1742_v31 }
 0x376   : > { %1774 = vst.msk [vmem:[#allocation3 + $0xe0] sm:$0xff] %vm1745_vm3, %v1741_v16  ;;  %v1877_v24 = vpop.f32.mrf.mxu3 }
 0x377   : > { %1761 = vst.msk [vmem:[#allocation3 + $0x78] sm:$0xff] %vm1745_vm3, %v1728_v9  ;;  %v2153_v13 = vadd.f32 %v2121_v27, %v1877_v24  ;;  %v2123_v9 = vmul.f32 %v4873_v17, %v1931_v44  ;;  %v1589_v27 = vld [vmem:[#allocation3 + $0x20] sm:$0xff]  ;;  %v2111_v24 = vmul.f32 %v4835_v20, %v1919_v63  ;;  %v1933_v63 = vld [vmem:[#allocation4 + $0xd0] sm:$0xff] }
 0x378   : > { %v1841_v52 = vpop.f32.mrf.mxu1  ;;  %v5328_v17 = vld [vmem:[#allocation40_spill] sm:$0xff] }
 0x379   : > { %2185 = vst.msk [vmem:[#allocation4 + $0xb0] sm:$0xff] %vm799_vm2, %v2153_v13  ;;  %v2141_v40 = vadd.f32 %v2109_v29, %v1841_v52  ;;  %v5327_v13 = vld [vmem:[#allocation41_spill] sm:$0xff]  ;;  %v1621_v52 = vmul.f32 %v5328_v17, %v1589_v27 }
 0x37a   : > { %v1654_v39 = vpop.xlane.xlu1 %1653  ;;  %v1682_v4 = vpop.xlane.xlu0 %1681  ;;  %v1622_v42 = vmul.f32 %v5327_v13, %v1590_v61  ;;  %v1607_v13 = vld [vmem:[#allocation3 + $0xb0] sm:$0xff]  ;;  %v1594_v17 = vld [vmem:[#allocation3 + $0x48] sm:$0xff] }
 0x37b   : > { %2173 = vst.msk [vmem:[#allocation4 + $0x50] sm:$0xff] %vm799_vm2, %v2141_v40  ;;  %v1715_v22 = vadd.f32 %v1654_v39, %v1619_v62  ;;  %v1729_v58 = vadd.f32 %v1682_v4, %v1633_v41  ;;  %v1710_v28 = vpop.xlane.xlu2 %1709  ;;  %v1635_v62 = vmul.f32 %v4600_v0, %v1603_v19  ;;  %v1920_v39 = vld [vmem:[#allocation4 + $0x68] sm:$0xff]  ;;  %v2125_v19 = vmul.f32 %v4885_v6, %v1933_v63  ;;  %v5332_v6 = vld [vmem:[#allocation48_spill] sm:$0xff] }
 0x37c   : > { %v1743_v37 = vadd.f32 %v1710_v28, %v1647_v51  ;;  %v1605_v51 = vld [vmem:[#allocation3 + $0xa0] sm:$0xff]  ;;  %v1591_v28 = vld [vmem:[#allocation3 + $0x30] sm:$0xff] }
 0x37d   : > { %1748 = vst.msk [vmem:[#allocation3 + $0x10] sm:$0xff] %vm1745_vm3, %v1715_v22  ;;  %v1604_v22 = vld [vmem:[#allocation3 + $0x98] sm:$0xff] }
 0x37e   : > { %1762 = vst.msk [vmem:[#allocation3 + $0x80] sm:$0xff] %vm1745_vm3, %v1729_v58  ;;  %v1880_v5 = vpop.f32.mrf.mxu3  ;;  %v2112_v58 = vmul.f32 %v4780_v30, %v1920_v39  ;;  %v1921_v30 = vld [vmem:[#allocation4 + $0x70] sm:$0xff] }
 0x37f   : > { %1776 = vst.msk [vmem:[#allocation3 + $0xf0] sm:$0xff] %vm1745_vm3, %v1743_v37  ;;  %v2154_v43 = vadd.f32 %v2122_v55, %v1880_v5  ;;  %v1637_v37 = vmul.f32 %v4640_v54, %v1605_v51  ;;  %v1636_v55 = vmul.f32 %v4578_v57, %v1604_v22  ;;  %v1932_v5 = vld [vmem:[#allocation4 + $0xc8] sm:$0xff]  ;;  %v1593_v57 = vld [vmem:[#allocation3 + $0x40] sm:$0xff]  ;;  %v2113_v44 = vmul.f32 %v4788_v59, %v1921_v30 }
 0x380   : > { %v1844_v32 = vpop.f32.mrf.mxu1 }
 0x381   : > { %2186 = vst.msk [vmem:[#allocation4 + $0xb8] sm:$0xff] %vm799_vm2, %v2154_v43  ;;  %v2142_v14 = vadd.f32 %v2110_v50, %v1844_v32  ;;  %v1623_v50 = vmul.f32 %v4504_v2, %v1591_v28  ;;  %v1923_v28 = vld [vmem:[#allocation4 + $0x80] sm:$0xff] }
 0x382   : > { %v1684_v38 = vpop.xlane.xlu1 %1683  ;;  %v1712_v46 = vpop.xlane.xlu0 %1711 }
 0x383   : > { %2174 = vst.msk [vmem:[#allocation4 + $0x58] sm:$0xff] %vm799_vm2, %v2142_v14  ;;  %v1730_v47 = vadd.f32 %v1684_v38, %v1634_v25  ;;  %v1744_v31 = vadd.f32 %v1712_v46, %v1648_v34  ;;  %v1656_v16 = vpop.xlane.xlu2 %1655  ;;  %v2124_v25 = vmul.f32 %v4861_v36, %v1932_v5  ;;  %v1592_v34 = vld [vmem:[#allocation3 + $0x38] sm:$0xff]  ;;  %v1606_v38 = vld [vmem:[#allocation3 + $0xa8] sm:$0xff]  ;;  %v5330_v36 = vld [vmem:[#allocation42_spill] sm:$0xff] }
 0x384   : > { %v1716_v10 = vadd.f32 %v1656_v16, %v1620_v18  ;;  %v1624_v16 = vmul.f32 %v5330_v36, %v1592_v34  ;;  %v1595_v5 = vld [vmem:[#allocation3 + $0x50] sm:$0xff] }
 0x385   : > { %1763 = vst.msk [vmem:[#allocation3 + $0x88] sm:$0xff] %vm1745_vm3, %v1730_v47  ;;  %v5329_v47 = vld [vmem:[#allocation43_spill] sm:$0xff]  ;;  %v5336_v34 = vld [vmem:[#allocation50_spill] sm:$0xff] }
 0x386   : > { %1777 = vst.msk [vmem:[#allocation3 + $0xf8] sm:$0xff] %vm1745_vm3, %v1744_v31  ;;  %v1883_v45 = vpop.f32.mrf.mxu3  ;;  %v1625_v31 = vmul.f32 %v5329_v47, %v1593_v57  ;;  %v1611_v36 = vld [vmem:[#allocation3 + $0xd0] sm:$0xff] }
 0x387   : > { %1749 = vst.msk [vmem:[#allocation3 + $0x18] sm:$0xff] %vm1745_vm3, %v1716_v10  ;;  %v2155_v3 = vadd.f32 %v2123_v9, %v1883_v45  ;;  %v1638_v45 = vmul.f32 %v4627_v11, %v1606_v38 }
 0x388   : > { %v1847_v8 = vpop.f32.mrf.mxu1 }
 0x389   : > { %2187 = vst.msk [vmem:[#allocation4 + $0xc0] sm:$0xff] %vm799_vm2, %v2155_v3  ;;  %v2143_v29 = vadd.f32 %v2111_v24, %v1847_v8  ;;  %v1922_v24 = vld [vmem:[#allocation4 + $0x78] sm:$0xff] }
 0x38a   : > { %v1660_v40 = vpop.xlane.xlu1 %1659  ;;  %v1658_v1 = vpop.xlane.xlu0 %1657 }
 0x38b   : > { %2175 = vst.msk [vmem:[#allocation4 + $0x60] sm:$0xff] %vm799_vm2, %v2143_v29  ;;  %v1718_v41 = vadd.f32 %v1660_v40, %v1622_v42  ;;  %v1717_v20 = vadd.f32 %v1658_v1, %v1621_v52  ;;  %v1686_v7 = vpop.xlane.xlu2 %1685  ;;  %v1608_v29 = vld [vmem:[#allocation3 + $0xb8] sm:$0xff]  ;;  %v2114_v42 = vmul.f32 %v4822_v23, %v1922_v24 }
 0x38c   : > { %v1731_v4 = vadd.f32 %v1686_v7, %v1635_v62  ;;  %v5331_v1 = vld [vmem:[#allocation51_spill] sm:$0xff] }
 0x38d   : > { %1751 = vst.msk [vmem:[#allocation3 + $0x28] sm:$0xff] %vm1745_vm3, %v1718_v41  ;;  %v1640_v62 = vmul.f32 %v5331_v1, %v1608_v29  ;;  %v1639_v41 = vmul.f32 %v5332_v6, %v1607_v13  ;;  %v1612_v1 = vld [vmem:[#allocation3 + $0xd8] sm:$0xff] }
 0x38e   : > { %1750 = vst.msk [vmem:[#allocation3 + $0x20] sm:$0xff] %vm1745_vm3, %v1717_v20  ;;  %v1934_v20 = vld [vmem:[#allocation4 + $0xd8] sm:$0xff] }
 0x38f   : > { %1764 = vst.msk [vmem:[#allocation3 + $0x90] sm:$0xff] %vm1745_vm3, %v1731_v4  ;;  %v5333_v4 = vld [vmem:[#allocation45_spill] sm:$0xff] }
 0x390   : > { %v1850_v12 = vpop.f32.mrf.mxu1  ;;  %v1626_v51 = vmul.f32 %v5333_v4, %v1594_v17 }
 0x391   : > { %v2144_v0 = vadd.f32 %v2112_v58, %v1850_v12 }
 0x392   : > { %v1690_v48 = vpop.xlane.xlu1 %1689  ;;  %v1688_v15 = vpop.xlane.xlu0 %1687 }
 0x393   : > { %2176 = vst.msk [vmem:[#allocation4 + $0x68] sm:$0xff] %vm799_vm2, %v2144_v0  ;;  %v1733_v43 = vadd.f32 %v1690_v48, %v1637_v37  ;;  %v1732_v53 = vadd.f32 %v1688_v15, %v1636_v55  ;;  %v1662_v32 = vpop.xlane.xlu2 %1661  ;;  %v2126_v0 = vmul.f32 %v4883_v49, %v1934_v20  ;;  %v1596_v55 = vld [vmem:[#allocation3 + $0x58] sm:$0xff]  ;;  %v2115_v48 = vmul.f32 %v4827_v33, %v1923_v28  ;;  %v5335_v49 = vld [vmem:[#allocation44_spill] sm:$0xff] }
 0x394   : > { %v1719_v14 = vadd.f32 %v1662_v32, %v1623_v50  ;;  %v1609_v50 = vld [vmem:[#allocation3 + $0xc0] sm:$0xff]  ;;  %v5334_v32 = vld [vmem:[#allocation46_spill] sm:$0xff] }
 0x395   : > { %1766 = vst.msk [vmem:[#allocation3 + $0xa0] sm:$0xff] %vm1745_vm3, %v1733_v43  ;;  %v1628_v30 = vmul.f32 %v5334_v32, %v1596_v55 }
 0x396   : > { %1765 = vst.msk [vmem:[#allocation3 + $0x98] sm:$0xff] %vm1745_vm3, %v1732_v53  ;;  %v1886_v54 = vpop.f32.mrf.mxu3 }
 0x397   : > { %1752 = vst.msk [vmem:[#allocation3 + $0x30] sm:$0xff] %vm1745_vm3, %v1719_v14  ;;  %v2156_v2 = vadd.f32 %v2124_v25, %v1886_v54  ;;  %v1627_v14 = vmul.f32 %v5335_v49, %v1595_v5  ;;  %v1935_v25 = vld [vmem:[#allocation4 + $0xe0] sm:$0xff] }
 0x398   : > { %v1853_v46 = vpop.f32.mrf.mxu1  ;;  %v2127_v47 = vmul.f32 %v4878_v60, %v1935_v25  ;;  %v5338_v60 = vld [vmem:[#allocation49_spill] sm:$0xff] }
 0x399   : > { %2188 = vst.msk [vmem:[#allocation4 + $0xc8] sm:$0xff] %vm799_vm2, %v2156_v2  ;;  %v2145_v18 = vadd.f32 %v2113_v44, %v1853_v46  ;;  %v1641_v44 = vmul.f32 %v5336_v34, %v1609_v50  ;;  %v1924_v46 = vld [vmem:[#allocation4 + $0x88] sm:$0xff] }
 0x39a   : > { %v1666_v10 = vpop.xlane.xlu1 %1665  ;;  %v1664_v9 = vpop.xlane.xlu0 %1663  ;;  %v2116_v63 = vmul.f32 %v4847_v56, %v1924_v46 }
 0x39b   : > { %2177 = vst.msk [vmem:[#allocation4 + $0x70] sm:$0xff] %vm799_vm2, %v2145_v18  ;;  %v1721_v59 = vadd.f32 %v1666_v10, %v1625_v31  ;;  %v1720_v61 = vadd.f32 %v1664_v9, %v1624_v16  ;;  %v1692_v27 = vpop.xlane.xlu2 %1691  ;;  %v1610_v16 = vld [vmem:[#allocation3 + $0xc8] sm:$0xff]  ;;  %v1597_v9 = vld [vmem:[#allocation3 + $0x60] sm:$0xff] }
 0x39c   : > { %v1734_v3 = vadd.f32 %v1692_v27, %v1638_v45  ;;  %v1642_v24 = vmul.f32 %v5338_v60, %v1610_v16 }
 0x39d   : > { %1754 = vst.msk [vmem:[#allocation3 + $0x40] sm:$0xff] %vm1745_vm3, %v1721_v59 }
 0x39e   : > { %1753 = vst.msk [vmem:[#allocation3 + $0x38] sm:$0xff] %vm1745_vm3, %v1720_v61  ;;  %v1889_v8 = vpop.f32.mrf.mxu3  ;;  %v5337_v61 = vld [vmem:[#allocation53_spill] sm:$0xff] }
 0x39f   : > { %1767 = vst.msk [vmem:[#allocation3 + $0xa8] sm:$0xff] %vm1745_vm3, %v1734_v3  ;;  %v2157_v11 = vadd.f32 %v2125_v19, %v1889_v8  ;;  %v1643_v27 = vmul.f32 %v5337_v61, %v1611_v36  ;;  %v5339_v8 = vld [vmem:[#allocation47_spill] sm:$0xff] }
 0x3a0   : > { %v1856_v52 = vpop.f32.mrf.mxu1  ;;  %v1629_v29 = vmul.f32 %v5339_v8, %v1597_v9 }
 0x3a1   : > { %2189 = vst.msk [vmem:[#allocation4 + $0xd0] sm:$0xff] %vm799_vm2, %v2157_v11  ;;  %v2146_v40 = vadd.f32 %v2114_v42, %v1856_v52  ;;  %v1925_v11 = vld [vmem:[#allocation4 + $0x90] sm:$0xff] }
 0x3a2   : > { %v1696_v7 = vpop.xlane.xlu1 %1695  ;;  %v1694_v39 = vpop.xlane.xlu0 %1693 }
 0x3a3   : > { %2178 = vst.msk [vmem:[#allocation4 + $0x78] sm:$0xff] %vm799_vm2, %v2146_v40  ;;  %v1736_v23 = vadd.f32 %v1696_v7, %v1640_v62  ;;  %v1735_v22 = vadd.f32 %v1694_v39, %v1639_v41  ;;  %v1668_v58 = vpop.xlane.xlu2 %1667  ;;  %v2117_v40 = vmul.f32 %v4845_v26, %v1925_v11  ;;  %v5340_v41 = vld [vmem:[#allocation52_spill] sm:$0xff]  ;;  %v1926_v39 = vld [vmem:[#allocation4 + $0x98] sm:$0xff]  ;;  %v1936_v26 = vld [vmem:[#allocation4 + $0xe8] sm:$0xff] }
 0x3a4   : > { %v1722_v12 = vadd.f32 %v1668_v58, %v1626_v51  ;;  %v1644_v20 = vmul.f32 %v5340_v41, %v1612_v1 }
 0x3a5   : > { %1769 = vst.msk [vmem:[#allocation3 + $0xb8] sm:$0xff] %vm1745_vm3, %v1736_v23  ;;  %v2118_v23 = vmul.f32 %v4838_v21, %v1926_v39  ;;  %v1937_v21 = vld [vmem:[#allocation4 + $0xf0] sm:$0xff] }
 0x3a6   : > { %1768 = vst.msk [vmem:[#allocation3 + $0xb0] sm:$0xff] %vm1745_vm3, %v1735_v22  ;;  %v1892_v37 = vpop.f32.mrf.mxu3 }
 0x3a7   : > { %1755 = vst.msk [vmem:[#allocation3 + $0x48] sm:$0xff] %vm1745_vm3, %v1722_v12  ;;  %v2158_v15 = vadd.f32 %v2126_v0, %v1892_v37  ;;  %v1938_v12 = vld [vmem:[#allocation4 + $0xf8] sm:$0xff]  ;;  %v1927_v0 = vld [vmem:[#allocation4 + $0xa0] sm:$0xff] }
 0x3a8   : > { %v1859_v43 = vpop.f32.mrf.mxu1  ;;  %v2119_v50 = vmul.f32 %v4859_v35, %v1927_v0 }
 0x3a9   : > { %2190 = vst.msk [vmem:[#allocation4 + $0xd8] sm:$0xff] %vm799_vm2, %v2158_v15  ;;  %v2147_v53 = vadd.f32 %v2115_v48, %v1859_v43 }
 0x3aa   : > { %v1672_v54 = vpop.xlane.xlu1 %1671  ;;  %v1670_v57 = vpop.xlane.xlu0 %1669 }
 0x3ab   : > { %2179 = vst.msk [vmem:[#allocation4 + $0x80] sm:$0xff] %vm799_vm2, %v2147_v53  ;;  %v1724_v33 = vadd.f32 %v1672_v54, %v1628_v30  ;;  %v1723_v2 = vadd.f32 %v1670_v57, %v1627_v14  ;;  %v1698_v38 = vpop.xlane.xlu2 %1697 }
 0x3ac   : > { %v1737_v18 = vadd.f32 %v1698_v38, %v1641_v44 }
 0x3ad   : > { %1757 = vst.msk [vmem:[#allocation3 + $0x58] sm:$0xff] %vm1745_vm3, %v1724_v33 }
 0x3ae   : > { %1756 = vst.msk [vmem:[#allocation3 + $0x50] sm:$0xff] %vm1745_vm3, %v1723_v2  ;;  %v1895_v31 = vpop.f32.mrf.mxu3 }
 0x3af   : > { %1770 = vst.msk [vmem:[#allocation3 + $0xc0] sm:$0xff] %vm1745_vm3, %v1737_v18  ;;  %v2159_v10 = vadd.f32 %v2127_v47, %v1895_v31 }
 0x3b0   : > { %v1862_v45 = vpop.f32.mrf.mxu1 }
 0x3b1   : > { %2191 = vst.msk [vmem:[#allocation4 + $0xe0] sm:$0xff] %vm799_vm2, %v2159_v10  ;;  %v2148_v59 = vadd.f32 %v2116_v63, %v1862_v45 }
 0x3b2   : > { %v1702_v3 = vpop.xlane.xlu1 %1701  ;;  %v1700_v19 = vpop.xlane.xlu0 %1699 }
 0x3b3   : > { %2180 = vst.msk [vmem:[#allocation4 + $0x88] sm:$0xff] %vm799_vm2, %v2148_v59  ;;  %v1739_v13 = vadd.f32 %v1702_v3, %v1643_v27  ;;  %v1738_v56 = vadd.f32 %v1700_v19, %v1642_v24  ;;  %v1674_v42 = vpop.xlane.xlu2 %1673 }
 0x3b4   : > { %v1725_v17 = vadd.f32 %v1674_v42, %v1629_v29 }
 0x3b5   : > { %1772 = vst.msk [vmem:[#allocation3 + $0xd0] sm:$0xff] %vm1745_vm3, %v1739_v13 }
 0x3b6   : > { %1771 = vst.msk [vmem:[#allocation3 + $0xc8] sm:$0xff] %vm1745_vm3, %v1738_v56  ;;  %v1898_v52 = vpop.f32.mrf.mxu3 }
 0x3b7   : > { %1758 = vst.msk [vmem:[#allocation3 + $0x60] sm:$0xff] %vm1745_vm3, %v1725_v17 }
 0x3b8   : > { %v1865_v62 = vpop.f32.mrf.mxu1 }
 0x3b9   : > { %v2149_v6 = vadd.f32 %v2117_v40, %v1865_v62 }
 0x3bb   : > { %2181 = vst.msk [vmem:[#allocation4 + $0x90] sm:$0xff] %vm799_vm2, %v2149_v6  ;;  %v1704_v7 = vpop.xlane.xlu2 %1703 }
 0x3bc   : > { %v1740_v4 = vadd.f32 %v1704_v7, %v1644_v20 }
 0x3be   : > { %1773 = vst.msk [vmem:[#allocation3 + $0xd8] sm:$0xff] %vm1745_vm3, %v1740_v4  ;;  %v1901_v51 = vpop.f32.mrf.mxu3 }
 0x3c0   : > { %v1868_v22 = vpop.f32.mrf.mxu1 }
 0x3c1   : > { %v2150_v58 = vadd.f32 %v2118_v23, %v1868_v22 }
 0x3c3   : > { %2182 = vst.msk [vmem:[#allocation4 + $0x98] sm:$0xff] %vm799_vm2, %v2150_v58  ;;  %v2087_v28 = vpop.permute.xlu2 %2086 }
 0x3c4   : > { %v2128_v37 = vmul.f32 %v2087_v28, %v1936_v26 }
 0x3c5   : > { %v2097_v55 = vpop.permute.xlu0 %2096 }
 0x3c6   : > { %v2160_v5 = vadd.f32 %v2128_v37, %v1898_v52  ;;  %v2130_v48 = vmul.f32 %v2097_v55, %v1938_v12  ;;  %v1904_v15 = vpop.f32.mrf.mxu3 }
 0x3c8   : > { %2192 = vst.msk [vmem:[#allocation4 + $0xe8] sm:$0xff] %vm799_vm2, %v2160_v5  ;;  %v2162_v43 = vadd.f32 %v2130_v48, %v1904_v15  ;;  %v1871_v53 = vpop.f32.mrf.mxu1 }
 0x3c9   : > { %v2151_v32 = vadd.f32 %v2119_v50, %v1871_v53 }
 0x3ca   : > { %2194 = vst.msk [vmem:[#allocation4 + $0xf8] sm:$0xff] %vm799_vm2, %v2162_v43  ;;  %v2092_v30 = vpop.permute.xlu1 %2091 }
 0x3cb   : > { %2183 = vst.msk [vmem:[#allocation4 + $0xa0] sm:$0xff] %vm799_vm2, %v2151_v32  ;;  %v2129_v49 = vmul.f32 %v2092_v30, %v1937_v21  ;;  %2230 = sbr.rel (%p3021_p7) target bundleno = 1185 (0x4a1), region = 120 }
 0x3cd   : > { %v2161_v14 = vadd.f32 %v2129_v49, %v1901_v51 }
 0x3cf   : > { %2193 = vst.msk [vmem:[#allocation4 + $0xf0] sm:$0xff] %vm799_vm2, %v2161_v14 }
 0x3d0   : > { %v2235_v25 = vld [vmem:[#allocation3 + $0x20] sm:$0xff]  ;;  %v2233_v35 = vld [vmem:[#allocation3 + $0x10] sm:$0xff]  ;;  %v3507_v57 = vmov 0   ;;  %v2236_v34 = vld [vmem:[#allocation3 + $0x28] sm:$0xff] }
 0x3d1   : > { %v2231_v54 = vld [vmem:[#allocation3] sm:$0xff]  ;;  %3335 = vset.pattern.permute.xlu2 %v3507_v57  ;;  %3334 = vset.pattern.permute.xlu1 %v3507_v57  ;;  %3336 = vrcp.f32 %v2235_v25  ;;  %v2234_v44 = vld [vmem:[#allocation3 + $0x18] sm:$0xff]  ;;  %v2232_v33 = vld [vmem:[#allocation3 + $0x8] sm:$0xff]  ;;  %vm2267_vm4 = vcmp.eq.f32.partialorder %v2235_v25, 0.0  ;;  %vm2265_vm5 = vcmp.eq.f32.partialorder %v2233_v35, 0.0  ;;  %vm2268_vm7 = vcmp.eq.f32.partialorder %v2236_v34, 0.0 }
 0x3d2   : > { %3333 = vset.pattern.permute.xlu0 %v3507_v57  ;;  %3338 = vrcp.f32 %v2233_v35  ;;  %vm2263_vm6 = vcmp.eq.f32.partialorder %v2231_v54, 0.0  ;;  %v2239_v36 = vld [vmem:[#allocation3 + $0x40] sm:$0xff]  ;;  %v2238_v63 = vld [vmem:[#allocation3 + $0x38] sm:$0xff]  ;;  %vm2266_vm8 = vcmp.eq.f32.partialorder %v2234_v44, 0.0  ;;  %v2237_v9 = vld [vmem:[#allocation3 + $0x30] sm:$0xff]  ;;  %vm2264_vm9 = vcmp.eq.f32.partialorder %v2232_v33, 0.0 }
 0x3d3   : > { %3340 = vrcp.f32 %v2231_v54  ;;  %v2242_v60 = vld [vmem:[#allocation3 + $0x58] sm:$0xff]  ;;  %vm2271_vm10 = vcmp.eq.f32.partialorder %v2239_v36, 0.0  ;;  %v2241_v3 = vld [vmem:[#allocation3 + $0x50] sm:$0xff]  ;;  %vm2270_vm11 = vcmp.eq.f32.partialorder %v2238_v63, 0.0  ;;  %v2240_v8 = vld [vmem:[#allocation3 + $0x48] sm:$0xff]  ;;  %vm2269_vm12 = vcmp.eq.f32.partialorder %v2237_v9, 0.0 }
 0x3d4   : > { %3342 = vrcp.f32 %v2236_v34  ;;  %v2245_v11 = vld [vmem:[#allocation3 + $0x70] sm:$0xff]  ;;  %vm2274_vm13 = vcmp.eq.f32.partialorder %v2242_v60, 0.0  ;;  %v2244_v52 = vld [vmem:[#allocation3 + $0x68] sm:$0xff]  ;;  %vm2273_vm14 = vcmp.eq.f32.partialorder %v2241_v3, 0.0  ;;  %v2243_v1 = vld [vmem:[#allocation3 + $0x60] sm:$0xff]  ;;  %vm2272_vm15 = vcmp.eq.f32.partialorder %v2240_v8, 0.0 }
 0x3d5   : > { %3344 = vrcp.f32 %v2234_v44  ;;  %v2248_v7 = vld [vmem:[#allocation3 + $0x88] sm:$0xff]  ;;  %vm2277_vm0 = vcmp.eq.f32.partialorder %v2245_v11, 0.0  ;;  %v2247_v4 = vld [vmem:[#allocation3 + $0x80] sm:$0xff]  ;;  %vm2276_vm1 = vcmp.eq.f32.partialorder %v2244_v52, 0.0  ;;  %v2246_v23 = vld [vmem:[#allocation3 + $0x78] sm:$0xff]  ;;  %vm2275_vm3 = vcmp.eq.f32.partialorder %v2243_v1, 0.0 }
 0x3d6   : > { %3346 = vrcp.f32 %v2232_v33  ;;  %v2251_v12 = vld [vmem:[#allocation3 + $0xa0] sm:$0xff]  ;;  %v2250_v37 = vld [vmem:[#allocation3 + $0x98] sm:$0xff]  ;;  %v2249_v5 = vld [vmem:[#allocation3 + $0x90] sm:$0xff] }
 0x3d7   : > { %v3337_v2 = vpop.eup %3336  ;;  %3348 = vrcp.f32 %v2239_v36  ;;  %v2254_v53 = vld [vmem:[#allocation3 + $0xb8] sm:$0xff]  ;;  %v2253_v32 = vld [vmem:[#allocation3 + $0xb0] sm:$0xff]  ;;  %v2252_v49 = vld [vmem:[#allocation3 + $0xa8] sm:$0xff] }
 0x3d8   : > { %v3339_v38 = vpop.eup %3338  ;;  %v2331_v46 = vsel %vm2267_vm4, 0.0, %v3337_v2  ;;  %3350 = vrcp.f32 %v2238_v63  ;;  %vm2280_vm4 = vcmp.eq.f32.partialorder %v2248_v7, 0.0  ;;  %v2257_v57 = vld [vmem:[#allocation3 + $0xd0] sm:$0xff]  ;;  %v2256_v44 = vld [vmem:[#allocation3 + $0xc8] sm:$0xff]  ;;  %v2255_v2 = vld [vmem:[#allocation3 + $0xc0] sm:$0xff] }
 0x3d9   : > { %v3341_v18 = vpop.eup %3340  ;;  %2413 = vperm.xlu2 %3335, %v2331_v46   ;;  %v2329_v47 = vsel %vm2265_vm5, 0.0, %v3339_v38  ;;  %3352 = vrcp.f32 %v2237_v9  ;;  %vm2279_vm5 = vcmp.eq.f32.partialorder %v2247_v4, 0.0 }
 0x3da   : > { %2403 = vperm.xlu1 %3334, %v2329_v47   ;;  %v2327_v31 = vsel %vm2263_vm6, 0.0, %v3341_v18  ;;  %v3343_v16 = vpop.eup %3342  ;;  %3354 = vrcp.f32 %v2242_v60  ;;  %vm2278_vm6 = vcmp.eq.f32.partialorder %v2246_v23, 0.0  ;;  %v2262_v60 = vld [vmem:[#allocation3 + $0xf8] sm:$0xff] }
 0x3db   : > { %2393 = vperm.xlu0 %3333, %v2327_v31   ;;  %v3345_v10 = vpop.eup %3344  ;;  %v2332_v59 = vsel %vm2268_vm7, 0.0, %v3343_v16  ;;  %3356 = vrcp.f32 %v2241_v3  ;;  %vm2283_vm7 = vcmp.eq.f32.partialorder %v2251_v12, 0.0  ;;  %v2260_v31 = vld [vmem:[#allocation3 + $0xe8] sm:$0xff]  ;;  %v2259_v16 = vld [vmem:[#allocation3 + $0xe0] sm:$0xff]  ;;  %v2261_v3 = vld [vmem:[#allocation3 + $0xf0] sm:$0xff] }
 0x3dc   : > { %v3347_v45 = vpop.eup %3346  ;;  %v2330_v61 = vsel %vm2266_vm8, 0.0, %v3345_v10  ;;  %3358 = vrcp.f32 %v2240_v8  ;;  %vm2282_vm8 = vcmp.eq.f32.partialorder %v2250_v37, 0.0  ;;  %v2258_v10 = vld [vmem:[#allocation3 + $0xd8] sm:$0xff] }
 0x3dd   : > { %v2328_v27 = vsel %vm2264_vm9, 0.0, %v3347_v45  ;;  %v3349_v24 = vpop.eup %3348  ;;  %3360 = vrcp.f32 %v2245_v11  ;;  %vm2281_vm9 = vcmp.eq.f32.partialorder %v2249_v5, 0.0 }
 0x3de   : > { %v3351_v19 = vpop.eup %3350  ;;  %v2335_v13 = vsel %vm2271_vm10, 0.0, %v3349_v24  ;;  %3362 = vrcp.f32 %v2244_v52  ;;  %vm2286_vm10 = vcmp.eq.f32.partialorder %v2254_v53, 0.0  ;;  %v2363_v52 = vld [vmem:[#allocation4 + $0x20] sm:$0xff] }
 0x3df   : > { %v3353_v29 = vpop.eup %3352  ;;  %v2334_v56 = vsel %vm2270_vm11, 0.0, %v3351_v19  ;;  %3364 = vrcp.f32 %v2243_v1  ;;  %vm2285_vm11 = vcmp.eq.f32.partialorder %v2253_v32, 0.0 }
 0x3e0   : > { %v2333_v42 = vsel %vm2269_vm12, 0.0, %v3353_v29  ;;  %v3355_v17 = vpop.eup %3354  ;;  %3366 = vrcp.f32 %v2248_v7  ;;  %vm2284_vm12 = vcmp.eq.f32.partialorder %v2252_v49, 0.0 }
 0x3e1   : > { %2418 = vperm.xlu2 %3335, %v2332_v59   ;;  %v3357_v40 = vpop.eup %3356  ;;  %v2338_v6 = vsel %vm2274_vm13, 0.0, %v3355_v17  ;;  %3368 = vrcp.f32 %v2247_v4  ;;  %vm2289_vm13 = vcmp.eq.f32.partialorder %v2257_v57, 0.0  ;;  %v2370_v4 = vld [vmem:[#allocation4 + $0x58] sm:$0xff] }
 0x3e2   : > { %2408 = vperm.xlu1 %3334, %v2330_v61   ;;  %v3359_v62 = vpop.eup %3358  ;;  %v2337_v41 = vsel %vm2273_vm14, 0.0, %v3357_v40  ;;  %3370 = vrcp.f32 %v2246_v23  ;;  %vm2288_vm14 = vcmp.eq.f32.partialorder %v2256_v44, 0.0 }
 0x3e3   : > { %2398 = vperm.xlu0 %3333, %v2328_v27   ;;  %v2336_v20 = vsel %vm2272_vm15, 0.0, %v3359_v62  ;;  %v3361_v39 = vpop.eup %3360  ;;  %3372 = vrcp.f32 %v2251_v12  ;;  %vm2287_vm15 = vcmp.eq.f32.partialorder %v2255_v2, 0.0  ;;  %v2364_v62 = vld [vmem:[#allocation4 + $0x28] sm:$0xff] }
 0x3e4   : > { %v3363_v51 = vpop.eup %3362  ;;  %v2341_v58 = vsel %vm2277_vm0, 0.0, %v3361_v39  ;;  %3374 = vrcp.f32 %v2250_v37  ;;  %vm2292_vm0 = vcmp.eq.f32.partialorder %v2260_v31, 0.0  ;;  %v2373_v37 = vld [vmem:[#allocation4 + $0x70] sm:$0xff] }
 0x3e5   : > { %v3365_v22 = vpop.eup %3364  ;;  %v2340_v26 = vsel %vm2276_vm1, 0.0, %v3363_v51  ;;  %3376 = vrcp.f32 %v2249_v5  ;;  %vm2291_vm1 = vcmp.eq.f32.partialorder %v2259_v16, 0.0  ;;  %v2361_v51 = vld [vmem:[#allocation4 + $0x10] sm:$0xff] }
 0x3e6   : > { %v2339_v28 = vsel %vm2275_vm3, 0.0, %v3365_v22  ;;  %v3367_v0 = vpop.eup %3366  ;;  %3378 = vrcp.f32 %v2254_v53  ;;  %vm2290_vm3 = vcmp.eq.f32.partialorder %v2258_v10, 0.0  ;;  %v2359_v22 = vld [vmem:[#allocation4] sm:$0xff] }
 0x3e7   : > { %v3369_v55 = vpop.eup %3368  ;;  %v2344_v15 = vsel %vm2280_vm4, 0.0, %v3367_v0  ;;  %3380 = vrcp.f32 %v2253_v32  ;;  %vm2294_vm4 = vcmp.eq.f32.partialorder %v2262_v60, 0.0  ;;  %v2376_v32 = vld [vmem:[#allocation4 + $0x88] sm:$0xff] }
 0x3e8   : > { %v3371_v48 = vpop.eup %3370  ;;  %v2343_v50 = vsel %vm2279_vm5, 0.0, %v3369_v55  ;;  %3382 = vrcp.f32 %v2252_v49  ;;  %vm2293_vm5 = vcmp.eq.f32.partialorder %v2261_v3, 0.0  ;;  %v2362_v55 = vld [vmem:[#allocation4 + $0x18] sm:$0xff] }
 0x3e9   : > { %2433 = vperm.xlu2 %3335, %v2335_v13   ;;  %v2342_v43 = vsel %vm2278_vm6, 0.0, %v3371_v48  ;;  %v3373_v21 = vpop.eup %3372  ;;  %3384 = vrcp.f32 %v2257_v57  ;;  %v2360_v48 = vld [vmem:[#allocation4 + $0x8] sm:$0xff] }
 0x3ea   : > { %2428 = vperm.xlu1 %3334, %v2334_v56   ;;  %v3375_v30 = vpop.eup %3374  ;;  %v2347_v25 = vsel %vm2283_vm7, 0.0, %v3373_v21  ;;  %3386 = vrcp.f32 %v2256_v44  ;;  %v2379_v44 = vld [vmem:[#allocation4 + $0xa0] sm:$0xff] }
 0x3eb   : > { %2423 = vperm.xlu0 %3333, %v2333_v42   ;;  %v3377_v14 = vpop.eup %3376  ;;  %v2346_v35 = vsel %vm2282_vm8, 0.0, %v3375_v30  ;;  %3388 = vrcp.f32 %v2255_v2  ;;  %v2366_v30 = vld [vmem:[#allocation4 + $0x38] sm:$0xff] }
 0x3ec   : > { %v2345_v54 = vsel %vm2281_vm9, 0.0, %v3377_v14  ;;  %v3379_v34 = vpop.eup %3378  ;;  %3390 = vrcp.f32 %v2260_v31  ;;  %v2365_v14 = vld [vmem:[#allocation4 + $0x30] sm:$0xff] }
 0x3ed   : > { %v3381_v33 = vpop.eup %3380  ;;  %v2350_v46 = vsel %vm2286_vm10, 0.0, %v3379_v34  ;;  %3392 = vrcp.f32 %v2259_v16  ;;  %v2382_v16 = vld [vmem:[#allocation4 + $0xb8] sm:$0xff] }
 0x3ee   : > { %v3383_v38 = vpop.eup %3382  ;;  %v2349_v18 = vsel %vm2285_vm11, 0.0, %v3381_v33  ;;  %3394 = vrcp.f32 %v2258_v10  ;;  %v2369_v33 = vld [vmem:[#allocation4 + $0x50] sm:$0xff] }
 0x3ef   : > { %v2348_v47 = vsel %vm2284_vm12, 0.0, %v3383_v38  ;;  %v3385_v36 = vpop.eup %3384  ;;  %3396 = vrcp.f32 %v2262_v60  ;;  %v2368_v38 = vld [vmem:[#allocation4 + $0x48] sm:$0xff] }
 0x3f0   : > { %v3387_v63 = vpop.eup %3386  ;;  %v2353_v45 = vsel %vm2289_vm13, 0.0, %v3385_v36  ;;  %3398 = vrcp.f32 %v2261_v3  ;;  %v2375_v3 = vld [vmem:[#allocation4 + $0x80] sm:$0xff] }
 0x3f1   : > { %2448 = vperm.xlu2 %3335, %v2338_v6   ;;  %v3389_v9 = vpop.eup %3388  ;;  %v2352_v59 = vsel %vm2288_vm14, 0.0, %v3387_v63  ;;  %v2372_v63 = vld [vmem:[#allocation4 + $0x68] sm:$0xff] }
 0x3f2   : > { %2443 = vperm.xlu1 %3334, %v2337_v41   ;;  %v2351_v61 = vsel %vm2287_vm15, 0.0, %v3389_v9  ;;  %v3391_v27 = vpop.eup %3390  ;;  %v2371_v9 = vld [vmem:[#allocation4 + $0x60] sm:$0xff] }
 0x3f3   : > { %2438 = vperm.xlu0 %3333, %v2336_v20   ;;  %v3393_v24 = vpop.eup %3392  ;;  %v2356_v8 = vsel %vm2292_vm0, 0.0, %v3391_v27  ;;  %v2367_v20 = vld [vmem:[#allocation4 + $0x40] sm:$0xff] }
 0x3f4   : > { %v3395_v19 = vpop.eup %3394  ;;  %v2355_v29 = vsel %vm2291_vm1, 0.0, %v3393_v24  ;;  %v2385_v24 = vld [vmem:[#allocation4 + $0xd0] sm:$0xff] }
 0x3f5   : > { %v2354_v13 = vsel %vm2290_vm3, 0.0, %v3395_v19  ;;  %v3397_v56 = vpop.eup %3396 }
 0x3f6   : > { %v3399_v42 = vpop.eup %3398  ;;  %v2358_v11 = vsel %vm2294_vm4, 0.0, %v3397_v56 }
 0x3f7   : > { %v2357_v17 = vsel %vm2293_vm5, 0.0, %v3399_v42 }
 0x3f9   : > { %2463 = vperm.xlu2 %3335, %v2341_v58  }
 0x3fa   : > { %2458 = vperm.xlu1 %3334, %v2340_v26  }
 0x3fb   : > { %2453 = vperm.xlu0 %3333, %v2339_v28  }
 0x401   : > { %2478 = vperm.xlu2 %3335, %v2344_v15  }
 0x402   : > { %2473 = vperm.xlu1 %3334, %v2343_v50  }
 0x403   : > { %2468 = vperm.xlu0 %3333, %v2342_v43  }
 0x409   : > { %2493 = vperm.xlu2 %3335, %v2347_v25  }
 0x40a   : > { %2488 = vperm.xlu1 %3334, %v2346_v35  }
 0x40b   : > { %2483 = vperm.xlu0 %3333, %v2345_v54  }
 0x411   : > { %2508 = vperm.xlu2 %3335, %v2350_v46  }
 0x412   : > { %2503 = vperm.xlu1 %3334, %v2349_v18  }
 0x413   : > { %2498 = vperm.xlu0 %3333, %v2348_v47  }
 0x419   : > { %2523 = vperm.xlu2 %3335, %v2353_v45  }
 0x41a   : > { %2518 = vperm.xlu1 %3334, %v2352_v59  }
 0x41b   : > { %2513 = vperm.xlu0 %3333, %v2351_v61  }
 0x421   : > { %2538 = vperm.xlu2 %3335, %v2356_v8   ;;  %v2374_v8 = vld [vmem:[#allocation4 + $0x78] sm:$0xff] }
 0x422   : > { %2533 = vperm.xlu1 %3334, %v2355_v29  }
 0x423   : > { %2528 = vperm.xlu0 %3333, %v2354_v13  }
 0x42a   : > { %2548 = vperm.xlu1 %3334, %v2358_v11  }
 0x42b   : > { %2543 = vperm.xlu0 %3333, %v2357_v17   ;;  %v2388_v17 = vld [vmem:[#allocation4 + $0xe8] sm:$0xff] }
 0x433   : > { %v2414_v40 = vpop.permute.xlu2 %2413 }
 0x434   : > { %v2555_v1 = vmul.f32 %v2414_v40, %v2363_v52  ;;  %v2378_v52 = vld [vmem:[#allocation4 + $0x98] sm:$0xff] }
 0x436   : > { %2587 = vst.msk [vmem:[%s3781_s26 + $0x20] sm:$0xff] %vm799_vm2, %v2555_v1  ;;  %v2377_v1 = vld [vmem:[#allocation4 + $0x90] sm:$0xff] }
 0x43b   : > { %v2419_v6 = vpop.permute.xlu2 %2418 }
 0x43c   : > { %v2556_v41 = vmul.f32 %v2419_v6, %v2364_v62 }
 0x43e   : > { %2588 = vst.msk [vmem:[%s3781_s26 + $0x28] sm:$0xff] %vm799_vm2, %v2556_v41 }
 0x443   : > { %v2434_v7 = vpop.permute.xlu2 %2433 }
 0x444   : > { %v2559_v39 = vmul.f32 %v2434_v7, %v2367_v20 }
 0x446   : > { %2591 = vst.msk [vmem:[%s3781_s26 + $0x40] sm:$0xff] %vm799_vm2, %v2559_v39  ;;  %v2381_v39 = vld [vmem:[#allocation4 + $0xb0] sm:$0xff] }
 0x44b   : > { %v2449_v23 = vpop.permute.xlu2 %2448 }
 0x44c   : > { %v2562_v58 = vmul.f32 %v2449_v23, %v2370_v4  ;;  %v2404_v26 = vpop.permute.xlu1 %2403  ;;  %v2380_v4 = vld [vmem:[#allocation4 + $0xa8] sm:$0xff] }
 0x44d   : > { %v2553_v28 = vmul.f32 %v2404_v26, %v2361_v51  ;;  %v2394_v12 = vpop.permute.xlu0 %2393  ;;  %v2384_v26 = vld [vmem:[#allocation4 + $0xc8] sm:$0xff] }
 0x44e   : > { %2594 = vst.msk [vmem:[%s3781_s26 + $0x58] sm:$0xff] %vm799_vm2, %v2562_v58  ;;  %v2551_v0 = vmul.f32 %v2394_v12, %v2359_v22 }
 0x44f   : > { %2585 = vst.msk [vmem:[%s3781_s26 + $0x10] sm:$0xff] %vm799_vm2, %v2553_v28  ;;  %v2383_v28 = vld [vmem:[#allocation4 + $0xc0] sm:$0xff] }
 0x450   : > { %2583 = vst.msk [vmem:[%s3781_s26] sm:$0xff] %vm799_vm2, %v2551_v0 }
 0x453   : > { %v2464_v5 = vpop.permute.xlu2 %2463 }
 0x454   : > { %v2565_v15 = vmul.f32 %v2464_v5, %v2373_v37  ;;  %v2409_v50 = vpop.permute.xlu1 %2408  ;;  %v2387_v5 = vld [vmem:[#allocation4 + $0xe0] sm:$0xff] }
 0x455   : > { %v2554_v43 = vmul.f32 %v2409_v50, %v2362_v55  ;;  %v2399_v53 = vpop.permute.xlu0 %2398 }
 0x456   : > { %2597 = vst.msk [vmem:[%s3781_s26 + $0x70] sm:$0xff] %vm799_vm2, %v2565_v15  ;;  %v2552_v21 = vmul.f32 %v2399_v53, %v2360_v48  ;;  %v2386_v48 = vld [vmem:[#allocation4 + $0xd8] sm:$0xff] }
 0x457   : > { %2586 = vst.msk [vmem:[%s3781_s26 + $0x18] sm:$0xff] %vm799_vm2, %v2554_v43 }
 0x458   : > { %2584 = vst.msk [vmem:[%s3781_s26 + $0x8] sm:$0xff] %vm799_vm2, %v2552_v21  ;;  %v2390_v21 = vld [vmem:[#allocation4 + $0xf8] sm:$0xff] }
 0x45b   : > { %v2479_v49 = vpop.permute.xlu2 %2478 }
 0x45c   : > { %v2568_v25 = vmul.f32 %v2479_v49, %v2376_v32  ;;  %v2429_v35 = vpop.permute.xlu1 %2428  ;;  %v2389_v32 = vld [vmem:[#allocation4 + $0xf0] sm:$0xff] }
 0x45d   : > { %v2558_v54 = vmul.f32 %v2429_v35, %v2366_v30  ;;  %v2424_v57 = vpop.permute.xlu0 %2423 }
 0x45e   : > { %2600 = vst.msk [vmem:[%s3781_s26 + $0x88] sm:$0xff] %vm799_vm2, %v2568_v25  ;;  %v2557_v34 = vmul.f32 %v2424_v57, %v2365_v14 }
 0x45f   : > { %2590 = vst.msk [vmem:[%s3781_s26 + $0x38] sm:$0xff] %vm799_vm2, %v2558_v54 }
 0x460   : > { %2589 = vst.msk [vmem:[%s3781_s26 + $0x30] sm:$0xff] %vm799_vm2, %v2557_v34 }
 0x463   : > { %v2494_v2 = vpop.permute.xlu2 %2493 }
 0x464   : > { %v2571_v46 = vmul.f32 %v2494_v2, %v2379_v44  ;;  %v2444_v18 = vpop.permute.xlu1 %2443 }
 0x465   : > { %v2561_v47 = vmul.f32 %v2444_v18, %v2369_v33  ;;  %v2439_v31 = vpop.permute.xlu0 %2438 }
 0x466   : > { %2603 = vst.msk [vmem:[%s3781_s26 + $0xa0] sm:$0xff] %vm799_vm2, %v2571_v46  ;;  %v2560_v36 = vmul.f32 %v2439_v31, %v2368_v38 }
 0x467   : > { %2593 = vst.msk [vmem:[%s3781_s26 + $0x50] sm:$0xff] %vm799_vm2, %v2561_v47 }
 0x468   : > { %2592 = vst.msk [vmem:[%s3781_s26 + $0x48] sm:$0xff] %vm799_vm2, %v2560_v36 }
 0x46b   : > { %v2509_v10 = vpop.permute.xlu2 %2508 }
 0x46c   : > { %v2574_v45 = vmul.f32 %v2509_v10, %v2382_v16  ;;  %v2459_v59 = vpop.permute.xlu1 %2458 }
 0x46d   : > { %v2564_v61 = vmul.f32 %v2459_v59, %v2372_v63  ;;  %v2454_v27 = vpop.permute.xlu0 %2453 }
 0x46e   : > { %2606 = vst.msk [vmem:[%s3781_s26 + $0xb8] sm:$0xff] %vm799_vm2, %v2574_v45  ;;  %v2563_v60 = vmul.f32 %v2454_v27, %v2371_v9 }
 0x46f   : > { %2596 = vst.msk [vmem:[%s3781_s26 + $0x68] sm:$0xff] %vm799_vm2, %v2564_v61 }
 0x470   : > { %2595 = vst.msk [vmem:[%s3781_s26 + $0x60] sm:$0xff] %vm799_vm2, %v2563_v60 }
 0x473   : > { %v2524_v19 = vpop.permute.xlu2 %2523 }
 0x474   : > { %v2577_v29 = vmul.f32 %v2524_v19, %v2385_v24  ;;  %v2474_v13 = vpop.permute.xlu1 %2473 }
 0x475   : > { %v2567_v56 = vmul.f32 %v2474_v13, %v2375_v3  ;;  %v2469_v42 = vpop.permute.xlu0 %2468 }
 0x476   : > { %2609 = vst.msk [vmem:[%s3781_s26 + $0xd0] sm:$0xff] %vm799_vm2, %v2577_v29  ;;  %v2566_v11 = vmul.f32 %v2469_v42, %v2374_v8 }
 0x477   : > { %2599 = vst.msk [vmem:[%s3781_s26 + $0x80] sm:$0xff] %vm799_vm2, %v2567_v56 }
 0x478   : > { %2598 = vst.msk [vmem:[%s3781_s26 + $0x78] sm:$0xff] %vm799_vm2, %v2566_v11 }
 0x47b   : > { %v2539_v40 = vpop.permute.xlu2 %2538 }
 0x47c   : > { %v2580_v62 = vmul.f32 %v2539_v40, %v2388_v17  ;;  %v2489_v6 = vpop.permute.xlu1 %2488 }
 0x47d   : > { %v2570_v41 = vmul.f32 %v2489_v6, %v2378_v52  ;;  %v2484_v20 = vpop.permute.xlu0 %2483 }
 0x47e   : > { %2612 = vst.msk [vmem:[%s3781_s26 + $0xe8] sm:$0xff] %vm799_vm2, %v2580_v62  ;;  %v2569_v7 = vmul.f32 %v2484_v20, %v2377_v1 }
 0x47f   : > { %2602 = vst.msk [vmem:[%s3781_s26 + $0x98] sm:$0xff] %vm799_vm2, %v2570_v41 }
 0x480   : > { %2601 = vst.msk [vmem:[%s3781_s26 + $0x90] sm:$0xff] %vm799_vm2, %v2569_v7 }
 0x484   : > { %v2504_v51 = vpop.permute.xlu1 %2503 }
 0x485   : > { %v2573_v23 = vmul.f32 %v2504_v51, %v2381_v39  ;;  %v2499_v22 = vpop.permute.xlu0 %2498 }
 0x486   : > { %v2572_v58 = vmul.f32 %v2499_v22, %v2380_v4 }
 0x487   : > { %2605 = vst.msk [vmem:[%s3781_s26 + $0xb0] sm:$0xff] %vm799_vm2, %v2573_v23 }
 0x488   : > { %2604 = vst.msk [vmem:[%s3781_s26 + $0xa8] sm:$0xff] %vm799_vm2, %v2572_v58 }
 0x48c   : > { %v2519_v12 = vpop.permute.xlu1 %2518 }
 0x48d   : > { %v2576_v0 = vmul.f32 %v2519_v12, %v2384_v26  ;;  %v2514_v37 = vpop.permute.xlu0 %2513 }
 0x48e   : > { %v2575_v55 = vmul.f32 %v2514_v37, %v2383_v28 }
 0x48f   : > { %2608 = vst.msk [vmem:[%s3781_s26 + $0xc8] sm:$0xff] %vm799_vm2, %v2576_v0 }
 0x490   : > { %2607 = vst.msk [vmem:[%s3781_s26 + $0xc0] sm:$0xff] %vm799_vm2, %v2575_v55 }
 0x494   : > { %v2534_v15 = vpop.permute.xlu1 %2533 }
 0x495   : > { %v2579_v50 = vmul.f32 %v2534_v15, %v2387_v5  ;;  %v2529_v43 = vpop.permute.xlu0 %2528 }
 0x496   : > { %v2578_v53 = vmul.f32 %v2529_v43, %v2386_v48 }
 0x497   : > { %2611 = vst.msk [vmem:[%s3781_s26 + $0xe0] sm:$0xff] %vm799_vm2, %v2579_v50 }
 0x498   : > { %2610 = vst.msk [vmem:[%s3781_s26 + $0xd8] sm:$0xff] %vm799_vm2, %v2578_v53 }
 0x49c   : > { %v2549_v30 = vpop.permute.xlu1 %2548 }
 0x49d   : > { %v2582_v49 = vmul.f32 %v2549_v30, %v2390_v21  ;;  %v2544_v14 = vpop.permute.xlu0 %2543 }
 0x49e   : > { %v2581_v25 = vmul.f32 %v2544_v14, %v2389_v32 }
 0x49f   : > { %2614 = vst.msk [vmem:[%s3781_s26 + $0xf8] sm:$0xff] %vm799_vm2, %v2582_v49 }
 0x4a0   : > { %2613 = vst.msk [vmem:[%s3781_s26 + $0xf0] sm:$0xff] %vm799_vm2, %v2581_v25 }
 0x4a1 PF: > { %2621 = sbr.rel (!%p3631_p10) target bundleno = 1229 (0x4cd), region = 124  ;;  %s5341_s0 = sld [smem:[#allocation8_spill]] (%p3631_p10)  ;;  %v2719_v35 = vld [vmem:[%s3781_s26] sm:$0xff] (%p3631_p10)  ;;  %v2721_v54 = vld [vmem:[%s3781_s26 + $0x8] sm:$0xff] (%p3631_p10)  ;;  %v2723_v57 = vld [vmem:[%s3781_s26 + $0x10] sm:$0xff] (%p3631_p10) }
 0x4a2   : > { %s5342_s3 = sld [smem:[#allocation9_spill]] (%p3631_p10)  ;;  %v2725_v34 = vld [vmem:[%s3781_s26 + $0x18] sm:$0xff] (%p3631_p10)  ;;  %v2727_v44 = vld [vmem:[%s3781_s26 + $0x20] sm:$0xff] (%p3631_p10)  ;;  %v2729_v33 = vld [vmem:[%s3781_s26 + $0x28] sm:$0xff] (%p3631_p10) }
 0x4a3   : > { %s5343_s19 = sld [smem:[#allocation10_spill]] (%p3631_p10)  ;;  %v2731_v2 = vld [vmem:[%s3781_s26 + $0x30] sm:$0xff] (%p3631_p10)  ;;  %v2733_v38 = vld [vmem:[%s3781_s26 + $0x38] sm:$0xff] (%p3631_p10)  ;;  %v2735_v46 = vld [vmem:[%s3781_s26 + $0x40] sm:$0xff] (%p3631_p10) }
 0x4a4   : > { %s5344_s2 = sld [smem:[#allocation58_spill]] (%p3631_p10)  ;;  %v2737_v18 = vld [vmem:[%s3781_s26 + $0x48] sm:$0xff] (%p3631_p10)  ;;  %v2739_v47 = vld [vmem:[%s3781_s26 + $0x50] sm:$0xff] (%p3631_p10)  ;;  %v2741_v31 = vld [vmem:[%s3781_s26 + $0x58] sm:$0xff] (%p3631_p10) }
 0x4a5   : > { %v2743_v36 = vld [vmem:[%s3781_s26 + $0x60] sm:$0xff] (%p3631_p10)  ;;  %v2745_v16 = vld [vmem:[%s3781_s26 + $0x68] sm:$0xff] (%p3631_p10)  ;;  %v2747_v63 = vld [vmem:[%s3781_s26 + $0x70] sm:$0xff] (%p3631_p10) }
 0x4a6   : > { %v2749_v10 = vld [vmem:[%s3781_s26 + $0x78] sm:$0xff]  ;;  %v2751_v9 = vld [vmem:[%s3781_s26 + $0x80] sm:$0xff]  ;;  %v2753_v45 = vld [vmem:[%s3781_s26 + $0x88] sm:$0xff] }
 0x4a7   : > { %s3023_s28 = sshll.u32 %s5341_s0, 4  ;;  %v2755_v59 = vld [vmem:[%s3781_s26 + $0x90] sm:$0xff]  ;;  %v2757_v61 = vld [vmem:[%s3781_s26 + $0x98] sm:$0xff]  ;;  %v2759_v27 = vld [vmem:[%s3781_s26 + $0xa0] sm:$0xff] }
 0x4a8   : > { %s3024_s29 = sshll.u32 %s5342_s3, 6  ;;  %v2761_v60 = vld [vmem:[%s3781_s26 + $0xa8] sm:$0xff]  ;;  %v2763_v24 = vld [vmem:[%s3781_s26 + $0xb0] sm:$0xff]  ;;  %v2765_v3 = vld [vmem:[%s3781_s26 + $0xb8] sm:$0xff] }
 0x4a9   : > { %s2624_s5 = sadd.s32 %s3024_s29, %s3023_s28  ;;  %s3025_s30 = sshll.u32 %s5343_s19, 7  ;;  %v2767_v19 = vld [vmem:[%s3781_s26 + $0xc0] sm:$0xff]  ;;  %v2769_v8 = vld [vmem:[%s3781_s26 + $0xc8] sm:$0xff]  ;;  %v2771_v29 = vld [vmem:[%s3781_s26 + $0xd0] sm:$0xff] }
 0x4aa   : > { %s2626_s7 = sadd.s32 %s3025_s30, %s2624_s5  ;;  %v2773_v13 = vld [vmem:[%s3781_s26 + $0xd8] sm:$0xff]  ;;  %v2775_v56 = vld [vmem:[%s3781_s26 + $0xe0] sm:$0xff]  ;;  %v2777_v42 = vld [vmem:[%s3781_s26 + $0xe8] sm:$0xff] }
 0x4ab   : > { %s3026_s9 = sshll.u32 %s2626_s7, 3  ;;  %v2779_v11 = vld [vmem:[%s3781_s26 + $0xf0] sm:$0xff]  ;;  %v2781_v17 = vld [vmem:[%s3781_s26 + $0xf8] sm:$0xff] }
 0x4ac   : > { %s5069_s1 = scalar_lea.vmem %s5344_s2, %s3026_s9 }
 0x4ad   : > { %2720 = vst [vmem:[%s5069_s1] sm:$0xff] %v2719_v35 }
 0x4ae   : > { %2722 = vst [vmem:[%s5069_s1 + $0x8] sm:$0xff] %v2721_v54 }
 0x4af   : > { %2724 = vst [vmem:[%s5069_s1 + $0x10] sm:$0xff] %v2723_v57 }
 0x4b0   : > { %2726 = vst [vmem:[%s5069_s1 + $0x18] sm:$0xff] %v2725_v34 }
 0x4b1   : > { %2728 = vst [vmem:[%s5069_s1 + $0x20] sm:$0xff] %v2727_v44 }
 0x4b2   : > { %2730 = vst [vmem:[%s5069_s1 + $0x28] sm:$0xff] %v2729_v33 }
 0x4b3   : > { %2732 = vst [vmem:[%s5069_s1 + $0x30] sm:$0xff] %v2731_v2 }
 0x4b4   : > { %2734 = vst [vmem:[%s5069_s1 + $0x38] sm:$0xff] %v2733_v38 }
 0x4b5   : > { %2736 = vst [vmem:[%s5069_s1 + $0x40] sm:$0xff] %v2735_v46 }
 0x4b6   : > { %2738 = vst [vmem:[%s5069_s1 + $0x48] sm:$0xff] %v2737_v18 }
 0x4b7   : > { %2740 = vst [vmem:[%s5069_s1 + $0x50] sm:$0xff] %v2739_v47 }
 0x4b8   : > { %2742 = vst [vmem:[%s5069_s1 + $0x58] sm:$0xff] %v2741_v31 }
 0x4b9   : > { %2744 = vst [vmem:[%s5069_s1 + $0x60] sm:$0xff] %v2743_v36 }
 0x4ba   : > { %2746 = vst [vmem:[%s5069_s1 + $0x68] sm:$0xff] %v2745_v16 }
 0x4bb   : > { %2748 = vst [vmem:[%s5069_s1 + $0x70] sm:$0xff] %v2747_v63 }
 0x4bc   : > { %2750 = vst [vmem:[%s5069_s1 + $0x78] sm:$0xff] %v2749_v10 }
 0x4bd   : > { %2752 = vst [vmem:[%s5069_s1 + $0x100] sm:$0xff] %v2751_v9 }
 0x4be   : > { %2754 = vst [vmem:[%s5069_s1 + $0x108] sm:$0xff] %v2753_v45 }
 0x4bf   : > { %2756 = vst [vmem:[%s5069_s1 + $0x110] sm:$0xff] %v2755_v59 }
 0x4c0   : > { %2758 = vst [vmem:[%s5069_s1 + $0x118] sm:$0xff] %v2757_v61 }
 0x4c1   : > { %2760 = vst [vmem:[%s5069_s1 + $0x120] sm:$0xff] %v2759_v27 }
 0x4c2   : > { %2762 = vst [vmem:[%s5069_s1 + $0x128] sm:$0xff] %v2761_v60 }
 0x4c3   : > { %2764 = vst [vmem:[%s5069_s1 + $0x130] sm:$0xff] %v2763_v24 }
 0x4c4   : > { %2766 = vst [vmem:[%s5069_s1 + $0x138] sm:$0xff] %v2765_v3 }
 0x4c5   : > { %2768 = vst [vmem:[%s5069_s1 + $0x140] sm:$0xff] %v2767_v19 }
 0x4c6   : > { %2770 = vst [vmem:[%s5069_s1 + $0x148] sm:$0xff] %v2769_v8 }
 0x4c7   : > { %2772 = vst [vmem:[%s5069_s1 + $0x150] sm:$0xff] %v2771_v29 }
 0x4c8   : > { %2774 = vst [vmem:[%s5069_s1 + $0x158] sm:$0xff] %v2773_v13 }
 0x4c9   : > { %2776 = vst [vmem:[%s5069_s1 + $0x160] sm:$0xff] %v2775_v56 }
 0x4ca   : > { %2778 = vst [vmem:[%s5069_s1 + $0x168] sm:$0xff] %v2777_v42 }
 0x4cb   : > { %2780 = vst [vmem:[%s5069_s1 + $0x170] sm:$0xff] %v2779_v11 }
 0x4cc   : > { %2782 = vst [vmem:[%s5069_s1 + $0x178] sm:$0xff] %v2781_v17 }
 0x4cd PF: > { %s14_s27 = sadd.s32 1, %s3502_s27   ;;  %s5346_s12 = sld [smem:[#allocation11_spill]] }
 0x4ce   : > { %p5134_p8 = scmp.ge.s32.totalorder %s14_s27, 18   ;;  %s5347_s26 = sld [smem:[#allocation12_spill]] }
 0x4cf   : > { %s5348_s6 = sld [smem:[#allocation13_spill]]  ;;  %s5351_s15 = smov %s3458_s16 }
 0x4d0   : > { %s5349_s13 = sld [smem:[#allocation14_spill]]  ;;  %s5352_s16 = smov %s3651_s22 }
 0x4d1   : > { %s5350_s8 = sld [smem:[#allocation15_spill]]  ;;  %s5353_s17 = smov %s3466_s18 }
 0x4d2   : > { %s5354_s18 = smov %s3648_s21  ;;  %s5355_s19 = smov %s3486_s23 }
 0x4d3   : > { %s5356_s20 = smov %s3490_s24  ;;  %s5357_s21 = smov %s3494_s25 }
 0x4d4   : > { %s5358_s22 = smov %s5346_s12  ;;  %s5359_s23 = smov %s5347_s26 }
 0x4d5   : > { %s5360_s24 = smov %s5348_s6  ;;  %13 = sbr.rel (!%p5134_p8) target bundleno = 13 (0xd), region = 207 }
 0x4d6   : > { %s5361_s25 = smov %s5349_s13 }
 0x4d7   : > { %s5362_s26 = smov %s5350_s8 }

</bundles_post_ra>
